<compile_context>
chip_gen: v7x
topology: tpu7x:2x2x1
jax: 0.10.0
libtpu: 0.0.40
codegen_flags: <defaults>
</compile_context>

<pallas_src>
import functools

import numpy as np
import jax
import jax.numpy as jnp
from jax import lax
from jax.experimental import pallas as pl
from jax.experimental.pallas import tpu as pltpu


def _rep(shape):
    """BlockSpec for a whole array that is re-used (replicated) by every grid step."""
    return pl.BlockSpec(shape, lambda b: (0,) * len(shape))


# ---------------------------------------------------------------------------
# In-kernel helpers
# ---------------------------------------------------------------------------

def _layer_norm(h, g, b):
    # fp32 LayerNorm over the last dim, eps = 1e-5 (PyTorch default).
    mu = jnp.mean(h, axis=-1, keepdims=True)
    d = h - mu
    var = jnp.mean(d * d, axis=-1, keepdims=True)
    return d * lax.rsqrt(var + 1e-5) * g + b


def _mha(x, wqkv, bqkv, wo, bo, bias, *, num_heads, scale):
    """Multi-head self-attention over rows of x with additive score bias `bias`.

    x: (M, E) f32.
    wqkv: (E, 3E) bf16, columns ordered [Wq | Wk | Wv], heads contiguous inside
          each E-wide block (mirrors torch in_proj_weight^T).
    bqkv: (1, 3E) f32.  wo: (E, E) bf16 (out_proj^T).  bo: (1, E) f32.
    bias: (M, M) f32 additive mask (0 where attention allowed, -1e30 elsewhere).
    """
    M, E = x.shape
    H = num_heads
    dh = E // H

    # One fused QKV projection: (M,E) x (E,3E) -> (M,3E), f32 accumulation.
    qkv = jnp.dot(x.astype(jnp.bfloat16), wqkv,
                  preferred_element_type=jnp.float32) + bqkv
    # Fold the 1/sqrt(dh) scale into q (bias already added, matching torch).
    q = qkv[:, :E] * scale
    k = qkv[:, E:2 * E]
    v = qkv[:, 2 * E:]

    # Head split via static lane slices + leading-axis stack (no minor-dim transpose).
    qh = jnp.stack([q[:, h * dh:(h + 1) * dh] for h in range(H)], axis=0)   # (H,M,dh)
    kh = jnp.stack([k[:, h * dh:(h + 1) * dh] for h in range(H)], axis=0)
    vh = jnp.stack([v[:, h * dh:(h + 1) * dh] for h in range(H)], axis=0)

    s = jnp.einsum("hqd,hkd->hqk", qh.astype(jnp.bfloat16), kh.astype(jnp.bfloat16),
                   preferred_element_type=jnp.float32) + bias[None]          # (H,M,M)
    s = s - jnp.max(s, axis=-1, keepdims=True)
    p = jnp.exp(s)
    p = p / jnp.sum(p, axis=-1, keepdims=True)       # exact softmax (rows sum to 1)

    ctx = jnp.einsum("hqk,hkd->hqd", p.astype(jnp.bfloat16), vh.astype(jnp.bfloat16),
                     preferred_element_type=jnp.float32)                     # (H,M,dh)
    # Concat heads along lanes (== torch concat), then one (M,E)x(E,E) out-proj.
    ctx_flat = jnp.concatenate([ctx[h] for h in range(H)], axis=-1)          # (M,E)
    return jnp.dot(ctx_flat.astype(jnp.bfloat16), wo,
                   preferred_element_type=jnp.float32) + bo


# ---------------------------------------------------------------------------
# Fused forward kernel (one batch element per grid step)
# ---------------------------------------------------------------------------

def fused_forward_kernel(x_ref, emb_w_ref, emb_b_ref, pos_ref, bias_t_ref, bias_s_ref,
                         a0_wqkv_ref, a0_bqkv_ref, a0_wo_ref, a0_bo_ref,
                         l_wqkv_ref, l_bqkv_ref, l_wo_ref, l_bo_ref,
                         l_g1_ref, l_be1_ref, l_w1_ref, l_b1_ref,
                         l_w2_ref, l_b2_ref, l_g2_ref, l_be2_ref,
                         avg_ref, fc_w_ref, fc_b_ref, o_ref,
                         *, num_heads, num_layers, scale):
    # ---- embedding + positional encoding ------------------------------------
    x = x_ref[0]                                               # (M, F) f32, rows (t, n)
    h = jnp.dot(x.astype(jnp.bfloat16), emb_w_ref[...],
                preferred_element_type=jnp.float32)
    h = h + emb_b_ref[...] + pos_ref[...]

    # ---- cross-stock ("time_step") attention: output REPLACES h (no residual)
    # rows attend iff they share the same time step t (additive bias_t).
    h = _mha(h, a0_wqkv_ref[...], a0_bqkv_ref[...], a0_wo_ref[...], a0_bo_ref[...],
             bias_t_ref[...], num_heads=num_heads, scale=scale)

    # ---- per-stock temporal TransformerEncoder layers (post-norm) -----------
    # rows attend iff they belong to the same stock n (additive bias_s).
    bias_s = bias_s_ref[...]
    for l in range(num_layers):
        attn = _mha(h, l_wqkv_ref[l], l_bqkv_ref[l], l_wo_ref[l], l_bo_ref[l],
                    bias_s, num_heads=num_heads, scale=scale)
        h = _layer_norm(h + attn, l_g1_ref[l], l_be1_ref[l])
        f = jnp.dot(h.astype(jnp.bfloat16), l_w1_ref[l],
                    preferred_element_type=jnp.float32) + l_b1_ref[l]
        f = jnp.maximum(f, 0.0)
        f = jnp.dot(f.astype(jnp.bfloat16), l_w2_ref[l],
                    preferred_element_type=jnp.float32) + l_b2_ref[l]
        h = _layer_norm(h + f, l_g2_ref[l], l_be2_ref[l])

    # ---- head: mean over T per stock, fc_out, softmax over stocks -----------
    m = jnp.dot(avg_ref[...], h, preferred_element_type=jnp.float32)       # (N_s, E)
    logits = lax.dot_general(fc_w_ref[...], m, (((1,), (1,)), ((), ())),
                             preferred_element_type=jnp.float32) + fc_b_ref[0, 0]
    logits = logits - jnp.max(logits, axis=-1, keepdims=True)
    p = jnp.exp(logits)
    o_ref[0] = p / jnp.sum(p, axis=-1, keepdims=True)                       # (1, N_s)


# ---------------------------------------------------------------------------
# Forward pass (single pallas_call)
# ---------------------------------------------------------------------------

@functools.partial(jax.jit, static_argnames=("num_heads",))
def investor_transformer_forward(params, x, *, num_heads):
    B, T, N_s, F = x.shape
    M = T * N_s
    E = params["emb_b"].shape[-1]
    L = params["l_wqkv"].shape[0]
    Eh = params["l_w1"].shape[-1]
    dh = E // num_heads

    x = x.astype(jnp.float32).reshape(B, M, F)          # rows ordered (t, n), n fastest

    # Shape-derived compile-time constants: additive masks + averaging matrix.
    idx = np.arange(M)
    g_time = idx // N_s                                  # time-step id of each row
    g_stock = idx % N_s                                  # stock id of each row
    NEG = np.float32(-1e30)
    bias_t = jnp.asarray(
        np.where(g_time[:, None] == g_time[None, :], np.float32(0.0), NEG))
    bias_s = jnp.asarray(
        np.where(g_stock[:, None] == g_stock[None, :], np.float32(0.0), NEG))
    avg = jnp.asarray(
        (g_stock[None, :] == np.arange(N_s)[:, None]).astype(np.float32) / T)   # (N_s, M)

    pos_tiled = jnp.tile(params["pos"], (T, 1))          # (M, E): pos[n] for row (t, n)

    kern = functools.partial(fused_forward_kernel, num_heads=num_heads,
                             num_layers=int(L), scale=float(1.0 / np.sqrt(dh)))

    out = pl.pallas_call(
        kern,
        out_shape=jax.ShapeDtypeStruct((B, 1, N_s), jnp.float32),
        grid=(B,),
        in_specs=[
            pl.BlockSpec((1, M, F), lambda b: (b, 0, 0)),            # raw features
            _rep((F, E)), _rep((1, E)), _rep((M, E)),                # embed + pos
            _rep((M, M)), _rep((M, M)),                              # additive masks
            _rep((E, 3 * E)), _rep((1, 3 * E)), _rep((E, E)), _rep((1, E)),   # attn0
            _rep((L, E, 3 * E)), _rep((L, 1, 3 * E)),                # encoder layers
            _rep((L, E, E)), _rep((L, 1, E)),
            _rep((L, 1, E)), _rep((L, 1, E)),
            _rep((L, E, Eh)), _rep((L, 1, Eh)), _rep((L, Eh, E)), _rep((L, 1, E)),
            _rep((L, 1, E)), _rep((L, 1, E)),
            _rep((N_s, M)), _rep((1, E)),                            # head
            pl.BlockSpec(memory_space=pltpu.MemorySpace.SMEM),       # fc_b scalar
        ],
        out_specs=pl.BlockSpec((1, 1, N_s), lambda b: (b, 0, 0)),
        compiler_params=pltpu.CompilerParams(
            dimension_semantics=("parallel",),   # batch axis -> one elem / TC on v7x
            vmem_limit_bytes=32 * 1024 * 1024),
    )(x, params["emb_w"], params["emb_b"], pos_tiled, bias_t, bias_s,
      params["a0_wqkv"], params["a0_bqkv"], params["a0_wo"], params["a0_bo"],
      params["l_wqkv"], params["l_bqkv"], params["l_wo"], params["l_bo"],
      params["l_g1"], params["l_be1"], params["l_w1"], params["l_b1"],
      params["l_w2"], params["l_b2"], params["l_g2"], params["l_be2"],
      avg, params["fc_w"], params["fc_b"])

    return out.reshape(B, N_s)


# ---------------------------------------------------------------------------
# Parameters (deterministic synthetic init; shapes mirror the nn.Module,
# stored in the fused/pre-transposed layout the kernel consumes)
# ---------------------------------------------------------------------------

def init_params(key, input_dim, embed_dim, num_stocks, num_heads, num_layers):
    E, F, L = embed_dim, input_dim, num_layers
    s = 0.05
    ks = iter(jax.random.split(key, 64))

    def nrm(shape, dtype=jnp.float32):
        return (jax.random.normal(next(ks), shape, jnp.float32) * s).astype(dtype)

    return {
        # embedding
        "emb_w": nrm((F, E), jnp.bfloat16),
        "emb_b": nrm((1, E)),
        # positional encoding (PyTorch inits zeros; random here to exercise the add)
        "pos": nrm((num_stocks, E)),
        # time_step_attention (fused in_proj^T, out_proj^T)
        "a0_wqkv": nrm((E, 3 * E), jnp.bfloat16),
        "a0_bqkv": nrm((1, 3 * E)),
        "a0_wo": nrm((E, E), jnp.bfloat16),
        "a0_bo": nrm((1, E)),
        # stacked TransformerEncoder layers
        "l_wqkv": nrm((L, E, 3 * E), jnp.bfloat16),
        "l_bqkv": nrm((L, 1, 3 * E)),
        "l_wo": nrm((L, E, E), jnp.bfloat16),
        "l_bo": nrm((L, 1, E)),
        "l_g1": jnp.ones((L, 1, E), jnp.float32),
        "l_be1": jnp.zeros((L, 1, E), jnp.float32),
        "l_w1": nrm((L, E, 4 * E), jnp.bfloat16),
        "l_b1": nrm((L, 1, 4 * E)),
        "l_w2": nrm((L, 4 * E, E), jnp.bfloat16),
        "l_b2": nrm((L, 1, E)),
        "l_g2": jnp.ones((L, 1, E), jnp.float32),
        "l_be2": jnp.zeros((L, 1, E), jnp.float32),
        # fc_out
        "fc_w": nrm((1, E)),
        "fc_b": jnp.zeros((1, 1), jnp.float32),
    }


# ---------------------------------------------------------------------------
# Main
# ---------------------------------------------------------------------------

if __name__ == "__main__":
    # Small config: input_dim=8, embed_dim=32, num_stocks=4, num_heads=4,
    # num_layers=2, dropout=0.0; batch=2, T=8.
    B, T, num_stocks, input_dim = 2, 8, 4, 8
    embed_dim, num_heads, num_layers = 32, 4, 2

    key = jax.random.PRNGKey(0)
    k_param, k_x = jax.random.split(key)
    params = init_params(k_param, input_dim, embed_dim, num_stocks, num_heads, num_layers)
    x = jax.random.normal(k_x, (B, T, num_stocks, input_dim), jnp.float32)

    out = investor_transformer_forward(params, x, num_heads=num_heads)
    jax.block_until_ready(out)

    assert out.shape == (B, num_stocks)
    assert bool(jnp.all(jnp.isfinite(out)))
    # softmax sanity: rows sum to 1
    assert bool(jnp.allclose(jnp.sum(out, axis=1), 1.0, atol=1e-4))
    print("KERNEL_OK")
</pallas_src>

<mosaic_0001>
module attributes {stable_mosaic.version = 11 : i64} {
  func.func @fused_forward_kernel(%arg0: i32, %arg1: memref<1x32x8xf32, #tpu.memory_space<vmem>>, %arg2: memref<8x32xbf16, #tpu.memory_space<vmem>>, %arg3: memref<1x32xf32, #tpu.memory_space<vmem>>, %arg4: memref<32x32xf32, #tpu.memory_space<vmem>>, %arg5: memref<32x32xf32, #tpu.memory_space<vmem>>, %arg6: memref<32x32xf32, #tpu.memory_space<vmem>>, %arg7: memref<32x96xbf16, #tpu.memory_space<vmem>>, %arg8: memref<1x96xf32, #tpu.memory_space<vmem>>, %arg9: memref<32x32xbf16, #tpu.memory_space<vmem>>, %arg10: memref<1x32xf32, #tpu.memory_space<vmem>>, %arg11: memref<2x32x96xbf16, #tpu.memory_space<vmem>>, %arg12: memref<2x1x96xf32, #tpu.memory_space<vmem>>, %arg13: memref<2x32x32xbf16, #tpu.memory_space<vmem>>, %arg14: memref<2x1x32xf32, #tpu.memory_space<vmem>>, %arg15: memref<2x1x32xf32, #tpu.memory_space<vmem>>, %arg16: memref<2x1x32xf32, #tpu.memory_space<vmem>>, %arg17: memref<2x32x128xbf16, #tpu.memory_space<vmem>>, %arg18: memref<2x1x128xf32, #tpu.memory_space<vmem>>, %arg19: memref<2x128x32xbf16, #tpu.memory_space<vmem>>, %arg20: memref<2x1x32xf32, #tpu.memory_space<vmem>>, %arg21: memref<2x1x32xf32, #tpu.memory_space<vmem>>, %arg22: memref<2x1x32xf32, #tpu.memory_space<vmem>>, %arg23: memref<4x32xf32, #tpu.memory_space<vmem>>, %arg24: memref<1x32xf32, #tpu.memory_space<vmem>>, %arg25: memref<1x1xf32, #tpu.memory_space<smem>>, %arg26: memref<1x1x4xf32, #tpu.memory_space<vmem>>) attributes {dimension_semantics = [#tpu.dimension_semantics<parallel>], iteration_bounds = array<i64: 2>, scalar_prefetch = 0 : i64, scratch_operands = 0 : i64, tpu.core_type = #tpu.core_type<tc>, window_params = [{transform_indices = @transform_0, window_bounds = array<i64: 1, 32, 8>}, {pipeline_mode = #tpu.pipeline_mode<synchronous>, transform_indices = @transform_1, window_bounds = array<i64: 8, 32>}, {pipeline_mode = #tpu.pipeline_mode<synchronous>, transform_indices = @transform_2, window_bounds = array<i64: 1, 32>}, {pipeline_mode = #tpu.pipeline_mode<synchronous>, transform_indices = @transform_3, window_bounds = array<i64: 32, 32>}, {pipeline_mode = #tpu.pipeline_mode<synchronous>, transform_indices = @transform_4, window_bounds = array<i64: 32, 32>}, {pipeline_mode = #tpu.pipeline_mode<synchronous>, transform_indices = @transform_5, window_bounds = array<i64: 32, 32>}, {pipeline_mode = #tpu.pipeline_mode<synchronous>, transform_indices = @transform_6, window_bounds = array<i64: 32, 96>}, {pipeline_mode = #tpu.pipeline_mode<synchronous>, transform_indices = @transform_7, window_bounds = array<i64: 1, 96>}, {pipeline_mode = #tpu.pipeline_mode<synchronous>, transform_indices = @transform_8, window_bounds = array<i64: 32, 32>}, {pipeline_mode = #tpu.pipeline_mode<synchronous>, transform_indices = @transform_9, window_bounds = array<i64: 1, 32>}, {pipeline_mode = #tpu.pipeline_mode<synchronous>, transform_indices = @transform_10, window_bounds = array<i64: 2, 32, 96>}, {pipeline_mode = #tpu.pipeline_mode<synchronous>, transform_indices = @transform_11, window_bounds = array<i64: 2, 1, 96>}, {pipeline_mode = #tpu.pipeline_mode<synchronous>, transform_indices = @transform_12, window_bounds = array<i64: 2, 32, 32>}, {pipeline_mode = #tpu.pipeline_mode<synchronous>, transform_indices = @transform_13, window_bounds = array<i64: 2, 1, 32>}, {pipeline_mode = #tpu.pipeline_mode<synchronous>, transform_indices = @transform_14, window_bounds = array<i64: 2, 1, 32>}, {pipeline_mode = #tpu.pipeline_mode<synchronous>, transform_indices = @transform_15, window_bounds = array<i64: 2, 1, 32>}, {pipeline_mode = #tpu.pipeline_mode<synchronous>, transform_indices = @transform_16, window_bounds = array<i64: 2, 32, 128>}, {pipeline_mode = #tpu.pipeline_mode<synchronous>, transform_indices = @transform_17, window_bounds = array<i64: 2, 1, 128>}, {pipeline_mode = #tpu.pipeline_mode<synchronous>, transform_indices = @transform_18, window_bounds = array<i64: 2, 128, 32>}, {pipeline_mode = #tpu.pipeline_mode<synchronous>, transform_indices = @transform_19, window_bounds = array<i64: 2, 1, 32>}, {pipeline_mode = #tpu.pipeline_mode<synchronous>, transform_indices = @transform_20, window_bounds = array<i64: 2, 1, 32>}, {pipeline_mode = #tpu.pipeline_mode<synchronous>, transform_indices = @transform_21, window_bounds = array<i64: 2, 1, 32>}, {pipeline_mode = #tpu.pipeline_mode<synchronous>, transform_indices = @transform_22, window_bounds = array<i64: 4, 32>}, {pipeline_mode = #tpu.pipeline_mode<synchronous>, transform_indices = @transform_23, window_bounds = array<i64: 1, 32>}, {transform_indices = @transform_24, window_bounds = array<i64: 1, 1>}, {transform_indices = @transform_25, window_bounds = array<i64: 1, 1, 4>}]} {
    %c0 = arith.constant 0 : index
    %c0_0 = arith.constant 0 : index
    %c0_1 = arith.constant 0 : index
    %0 = vector.load %arg1[%c0, %c0_0, %c0_1] : memref<1x32x8xf32, #tpu.memory_space<vmem>>, vector<1x32x8xf32>
    %1 = vector.shape_cast %0 : vector<1x32x8xf32> to vector<32x8xf32>
    %2 = arith.truncf %1 : vector<32x8xf32> to vector<32x8xbf16>
    %c0_2 = arith.constant 0 : index
    %c0_3 = arith.constant 0 : index
    %3 = vector.load %arg2[%c0_2, %c0_3] : memref<8x32xbf16, #tpu.memory_space<vmem>>, vector<8x32xbf16>
    %cst = arith.constant dense<0.000000e+00> : vector<32x32xf32>
    %4 = tpu.matmul %2, %3, %cst {dimension_numbers = #tpu.dot_dimension_numbers<[1], [0], [0], [1], [0, 0, 1, 1], [], []>} : vector<32x8xbf16>, vector<8x32xbf16>, vector<32x32xf32> -> vector<32x32xf32>
    %c0_4 = arith.constant 0 : index
    %c0_5 = arith.constant 0 : index
    %5 = vector.load %arg3[%c0_4, %c0_5] : memref<1x32xf32, #tpu.memory_space<vmem>>, vector<1x32xf32>
    %6 = vector.broadcast %5 : vector<1x32xf32> to vector<32x32xf32>
    %7 = arith.addf %4, %6 : vector<32x32xf32>
    %c0_6 = arith.constant 0 : index
    %c0_7 = arith.constant 0 : index
    %8 = vector.load %arg4[%c0_6, %c0_7] : memref<32x32xf32, #tpu.memory_space<vmem>>, vector<32x32xf32>
    %9 = arith.addf %7, %8 : vector<32x32xf32>
    %c0_8 = arith.constant 0 : index
    %c0_9 = arith.constant 0 : index
    %10 = vector.load %arg7[%c0_8, %c0_9] : memref<32x96xbf16, #tpu.memory_space<vmem>>, vector<32x96xbf16>
    %c0_10 = arith.constant 0 : index
    %c0_11 = arith.constant 0 : index
    %11 = vector.load %arg8[%c0_10, %c0_11] : memref<1x96xf32, #tpu.memory_space<vmem>>, vector<1x96xf32>
    %c0_12 = arith.constant 0 : index
    %c0_13 = arith.constant 0 : index
    %12 = vector.load %arg9[%c0_12, %c0_13] : memref<32x32xbf16, #tpu.memory_space<vmem>>, vector<32x32xbf16>
    %c0_14 = arith.constant 0 : index
    %c0_15 = arith.constant 0 : index
    %13 = vector.load %arg10[%c0_14, %c0_15] : memref<1x32xf32, #tpu.memory_space<vmem>>, vector<1x32xf32>
    %c0_16 = arith.constant 0 : index
    %c0_17 = arith.constant 0 : index
    %14 = vector.load %arg5[%c0_16, %c0_17] : memref<32x32xf32, #tpu.memory_space<vmem>>, vector<32x32xf32>
    %15 = arith.truncf %9 : vector<32x32xf32> to vector<32x32xbf16>
    %cst_18 = arith.constant dense<0.000000e+00> : vector<32x96xf32>
    %16 = tpu.matmul %15, %10, %cst_18 {dimension_numbers = #tpu.dot_dimension_numbers<[1], [0], [0], [1], [0, 0, 1, 1], [], []>} : vector<32x32xbf16>, vector<32x96xbf16>, vector<32x96xf32> -> vector<32x96xf32>
    %17 = vector.broadcast %11 : vector<1x96xf32> to vector<32x96xf32>
    %18 = arith.addf %16, %17 : vector<32x96xf32>
    %19 = vector.extract_strided_slice %18 {offsets = [0, 0], sizes = [32, 32], strides = [1, 1]} : vector<32x96xf32> to vector<32x32xf32>
    %cst_19 = arith.constant 0.353553385 : f32
    %20 = vector.broadcast %cst_19 : f32 to vector<32x32xf32>
    %21 = arith.mulf %19, %20 : vector<32x32xf32>
    %22 = vector.extract_strided_slice %18 {offsets = [0, 32], sizes = [32, 32], strides = [1, 1]} : vector<32x96xf32> to vector<32x32xf32>
    %23 = vector.extract_strided_slice %18 {offsets = [0, 64], sizes = [32, 32], strides = [1, 1]} : vector<32x96xf32> to vector<32x32xf32>
    %24 = vector.extract_strided_slice %21 {offsets = [0, 0], sizes = [32, 8], strides = [1, 1]} : vector<32x32xf32> to vector<32x8xf32>
    %25 = vector.extract_strided_slice %21 {offsets = [0, 8], sizes = [32, 8], strides = [1, 1]} : vector<32x32xf32> to vector<32x8xf32>
    %26 = vector.extract_strided_slice %21 {offsets = [0, 16], sizes = [32, 8], strides = [1, 1]} : vector<32x32xf32> to vector<32x8xf32>
    %27 = vector.extract_strided_slice %21 {offsets = [0, 24], sizes = [32, 8], strides = [1, 1]} : vector<32x32xf32> to vector<32x8xf32>
    %28 = vector.shape_cast %24 : vector<32x8xf32> to vector<1x32x8xf32>
    %29 = vector.shape_cast %25 : vector<32x8xf32> to vector<1x32x8xf32>
    %30 = vector.shape_cast %26 : vector<32x8xf32> to vector<1x32x8xf32>
    %31 = vector.shape_cast %27 : vector<32x8xf32> to vector<1x32x8xf32>
    %32 = tpu.concatenate %28, %29, %30, %31 in 0 : vector<1x32x8xf32>, vector<1x32x8xf32>, vector<1x32x8xf32>, vector<1x32x8xf32> -> vector<4x32x8xf32>
    %33 = vector.extract_strided_slice %22 {offsets = [0, 0], sizes = [32, 8], strides = [1, 1]} : vector<32x32xf32> to vector<32x8xf32>
    %34 = vector.extract_strided_slice %22 {offsets = [0, 8], sizes = [32, 8], strides = [1, 1]} : vector<32x32xf32> to vector<32x8xf32>
    %35 = vector.extract_strided_slice %22 {offsets = [0, 16], sizes = [32, 8], strides = [1, 1]} : vector<32x32xf32> to vector<32x8xf32>
    %36 = vector.extract_strided_slice %22 {offsets = [0, 24], sizes = [32, 8], strides = [1, 1]} : vector<32x32xf32> to vector<32x8xf32>
    %37 = vector.shape_cast %33 : vector<32x8xf32> to vector<1x32x8xf32>
    %38 = vector.shape_cast %34 : vector<32x8xf32> to vector<1x32x8xf32>
    %39 = vector.shape_cast %35 : vector<32x8xf32> to vector<1x32x8xf32>
    %40 = vector.shape_cast %36 : vector<32x8xf32> to vector<1x32x8xf32>
    %41 = tpu.concatenate %37, %38, %39, %40 in 0 : vector<1x32x8xf32>, vector<1x32x8xf32>, vector<1x32x8xf32>, vector<1x32x8xf32> -> vector<4x32x8xf32>
    %42 = vector.extract_strided_slice %23 {offsets = [0, 0], sizes = [32, 8], strides = [1, 1]} : vector<32x32xf32> to vector<32x8xf32>
    %43 = vector.extract_strided_slice %23 {offsets = [0, 8], sizes = [32, 8], strides = [1, 1]} : vector<32x32xf32> to vector<32x8xf32>
    %44 = vector.extract_strided_slice %23 {offsets = [0, 16], sizes = [32, 8], strides = [1, 1]} : vector<32x32xf32> to vector<32x8xf32>
    %45 = vector.extract_strided_slice %23 {offsets = [0, 24], sizes = [32, 8], strides = [1, 1]} : vector<32x32xf32> to vector<32x8xf32>
    %46 = vector.shape_cast %42 : vector<32x8xf32> to vector<1x32x8xf32>
    %47 = vector.shape_cast %43 : vector<32x8xf32> to vector<1x32x8xf32>
    %48 = vector.shape_cast %44 : vector<32x8xf32> to vector<1x32x8xf32>
    %49 = vector.shape_cast %45 : vector<32x8xf32> to vector<1x32x8xf32>
    %50 = tpu.concatenate %46, %47, %48, %49 in 0 : vector<1x32x8xf32>, vector<1x32x8xf32>, vector<1x32x8xf32>, vector<1x32x8xf32> -> vector<4x32x8xf32>
    %51 = arith.truncf %32 : vector<4x32x8xf32> to vector<4x32x8xbf16>
    %52 = arith.truncf %41 : vector<4x32x8xf32> to vector<4x32x8xbf16>
    "tpu.trace_start"() <{level = 10 : i32, message = "hqd,hkd->hqk"}> : () -> ()
    %cst_20 = arith.constant dense<0.000000e+00> : vector<4x32x32xf32>
    %53 = tpu.matmul %51, %52, %cst_20 {dimension_numbers = #tpu.dot_dimension_numbers<[2], [2], [1], [1], [0, 0, 0, 1, 1, 1], [0], [0]>} : vector<4x32x8xbf16>, vector<4x32x8xbf16>, vector<4x32x32xf32> -> vector<4x32x32xf32>
    "tpu.trace_stop"() : () -> ()
    %54 = vector.shape_cast %14 : vector<32x32xf32> to vector<1x32x32xf32>
    %55 = vector.broadcast %54 : vector<1x32x32xf32> to vector<4x32x32xf32>
    %56 = arith.addf %53, %55 : vector<4x32x32xf32>
    %cst_21 = arith.constant dense<0xFF800000> : vector<4x32xf32>
    %57 = vector.multi_reduction <maximumf>, %56, %cst_21 [2] : vector<4x32x32xf32> to vector<4x32xf32>
    %58 = vector.shape_cast %57 : vector<4x32xf32> to vector<4x32x1xf32>
    %59 = vector.broadcast %58 : vector<4x32x1xf32> to vector<4x32x32xf32>
    %60 = arith.subf %56, %59 : vector<4x32x32xf32>
    %61 = math.exp %60 : vector<4x32x32xf32>
    %cst_22 = arith.constant dense<0.000000e+00> : vector<4x32xf32>
    %62 = vector.multi_reduction <add>, %61, %cst_22 [2] : vector<4x32x32xf32> to vector<4x32xf32>
    %63 = vector.shape_cast %62 : vector<4x32xf32> to vector<4x32x1xf32>
    %64 = vector.broadcast %63 : vector<4x32x1xf32> to vector<4x32x32xf32>
    %65 = arith.divf %61, %64 : vector<4x32x32xf32>
    %66 = arith.truncf %65 : vector<4x32x32xf32> to vector<4x32x32xbf16>
    %67 = arith.truncf %50 : vector<4x32x8xf32> to vector<4x32x8xbf16>
    "tpu.trace_start"() <{level = 10 : i32, message = "hqk,hkd->hqd"}> : () -> ()
    %cst_23 = arith.constant dense<0.000000e+00> : vector<4x32x8xf32>
    %68 = tpu.matmul %66, %67, %cst_23 {dimension_numbers = #tpu.dot_dimension_numbers<[2], [1], [1], [2], [0, 0, 0, 1, 1, 2], [0], [0]>} : vector<4x32x32xbf16>, vector<4x32x8xbf16>, vector<4x32x8xf32> -> vector<4x32x8xf32>
    "tpu.trace_stop"() : () -> ()
    %69 = vector.extract_strided_slice %68 {offsets = [0, 0, 0], sizes = [1, 32, 8], strides = [1, 1, 1]} : vector<4x32x8xf32> to vector<1x32x8xf32>
    %70 = vector.shape_cast %69 : vector<1x32x8xf32> to vector<32x8xf32>
    %71 = vector.extract_strided_slice %68 {offsets = [1, 0, 0], sizes = [1, 32, 8], strides = [1, 1, 1]} : vector<4x32x8xf32> to vector<1x32x8xf32>
    %72 = vector.shape_cast %71 : vector<1x32x8xf32> to vector<32x8xf32>
    %73 = vector.extract_strided_slice %68 {offsets = [2, 0, 0], sizes = [1, 32, 8], strides = [1, 1, 1]} : vector<4x32x8xf32> to vector<1x32x8xf32>
    %74 = vector.shape_cast %73 : vector<1x32x8xf32> to vector<32x8xf32>
    %75 = vector.extract_strided_slice %68 {offsets = [3, 0, 0], sizes = [1, 32, 8], strides = [1, 1, 1]} : vector<4x32x8xf32> to vector<1x32x8xf32>
    %76 = vector.shape_cast %75 : vector<1x32x8xf32> to vector<32x8xf32>
    %77 = tpu.concatenate %70, %72, %74, %76 in 1 : vector<32x8xf32>, vector<32x8xf32>, vector<32x8xf32>, vector<32x8xf32> -> vector<32x32xf32>
    %78 = arith.truncf %77 : vector<32x32xf32> to vector<32x32xbf16>
    %cst_24 = arith.constant dense<0.000000e+00> : vector<32x32xf32>
    %79 = tpu.matmul %78, %12, %cst_24 {dimension_numbers = #tpu.dot_dimension_numbers<[1], [0], [0], [1], [0, 0, 1, 1], [], []>} : vector<32x32xbf16>, vector<32x32xbf16>, vector<32x32xf32> -> vector<32x32xf32>
    %80 = vector.broadcast %13 : vector<1x32xf32> to vector<32x32xf32>
    %81 = arith.addf %79, %80 : vector<32x32xf32>
    %c0_25 = arith.constant 0 : index
    %c0_26 = arith.constant 0 : index
    %82 = vector.load %arg6[%c0_25, %c0_26] : memref<32x32xf32, #tpu.memory_space<vmem>>, vector<32x32xf32>
    %c0_27 = arith.constant 0 : index
    %c0_28 = arith.constant 0 : index
    %c0_29 = arith.constant 0 : index
    %83 = vector.load %arg11[%c0_27, %c0_28, %c0_29] : memref<2x32x96xbf16, #tpu.memory_space<vmem>>, vector<1x32x96xbf16>
    %84 = vector.shape_cast %83 : vector<1x32x96xbf16> to vector<32x96xbf16>
    %c0_30 = arith.constant 0 : index
    %c0_31 = arith.constant 0 : index
    %c0_32 = arith.constant 0 : index
    %85 = vector.load %arg12[%c0_30, %c0_31, %c0_32] : memref<2x1x96xf32, #tpu.memory_space<vmem>>, vector<1x1x96xf32>
    %86 = vector.shape_cast %85 : vector<1x1x96xf32> to vector<1x96xf32>
    %c0_33 = arith.constant 0 : index
    %c0_34 = arith.constant 0 : index
    %c0_35 = arith.constant 0 : index
    %87 = vector.load %arg13[%c0_33, %c0_34, %c0_35] : memref<2x32x32xbf16, #tpu.memory_space<vmem>>, vector<1x32x32xbf16>
    %88 = vector.shape_cast %87 : vector<1x32x32xbf16> to vector<32x32xbf16>
    %c0_36 = arith.constant 0 : index
    %c0_37 = arith.constant 0 : index
    %c0_38 = arith.constant 0 : index
    %89 = vector.load %arg14[%c0_36, %c0_37, %c0_38] : memref<2x1x32xf32, #tpu.memory_space<vmem>>, vector<1x1x32xf32>
    %90 = vector.shape_cast %89 : vector<1x1x32xf32> to vector<1x32xf32>
    %91 = arith.truncf %81 : vector<32x32xf32> to vector<32x32xbf16>
    %cst_39 = arith.constant dense<0.000000e+00> : vector<32x96xf32>
    %92 = tpu.matmul %91, %84, %cst_39 {dimension_numbers = #tpu.dot_dimension_numbers<[1], [0], [0], [1], [0, 0, 1, 1], [], []>} : vector<32x32xbf16>, vector<32x96xbf16>, vector<32x96xf32> -> vector<32x96xf32>
    %93 = vector.broadcast %86 : vector<1x96xf32> to vector<32x96xf32>
    %94 = arith.addf %92, %93 : vector<32x96xf32>
    %95 = vector.extract_strided_slice %94 {offsets = [0, 0], sizes = [32, 32], strides = [1, 1]} : vector<32x96xf32> to vector<32x32xf32>
    %cst_40 = arith.constant 0.353553385 : f32
    %96 = vector.broadcast %cst_40 : f32 to vector<32x32xf32>
    %97 = arith.mulf %95, %96 : vector<32x32xf32>
    %98 = vector.extract_strided_slice %94 {offsets = [0, 32], sizes = [32, 32], strides = [1, 1]} : vector<32x96xf32> to vector<32x32xf32>
    %99 = vector.extract_strided_slice %94 {offsets = [0, 64], sizes = [32, 32], strides = [1, 1]} : vector<32x96xf32> to vector<32x32xf32>
    %100 = vector.extract_strided_slice %97 {offsets = [0, 0], sizes = [32, 8], strides = [1, 1]} : vector<32x32xf32> to vector<32x8xf32>
    %101 = vector.extract_strided_slice %97 {offsets = [0, 8], sizes = [32, 8], strides = [1, 1]} : vector<32x32xf32> to vector<32x8xf32>
    %102 = vector.extract_strided_slice %97 {offsets = [0, 16], sizes = [32, 8], strides = [1, 1]} : vector<32x32xf32> to vector<32x8xf32>
    %103 = vector.extract_strided_slice %97 {offsets = [0, 24], sizes = [32, 8], strides = [1, 1]} : vector<32x32xf32> to vector<32x8xf32>
    %104 = vector.shape_cast %100 : vector<32x8xf32> to vector<1x32x8xf32>
    %105 = vector.shape_cast %101 : vector<32x8xf32> to vector<1x32x8xf32>
    %106 = vector.shape_cast %102 : vector<32x8xf32> to vector<1x32x8xf32>
    %107 = vector.shape_cast %103 : vector<32x8xf32> to vector<1x32x8xf32>
    %108 = tpu.concatenate %104, %105, %106, %107 in 0 : vector<1x32x8xf32>, vector<1x32x8xf32>, vector<1x32x8xf32>, vector<1x32x8xf32> -> vector<4x32x8xf32>
    %109 = vector.extract_strided_slice %98 {offsets = [0, 0], sizes = [32, 8], strides = [1, 1]} : vector<32x32xf32> to vector<32x8xf32>
    %110 = vector.extract_strided_slice %98 {offsets = [0, 8], sizes = [32, 8], strides = [1, 1]} : vector<32x32xf32> to vector<32x8xf32>
    %111 = vector.extract_strided_slice %98 {offsets = [0, 16], sizes = [32, 8], strides = [1, 1]} : vector<32x32xf32> to vector<32x8xf32>
    %112 = vector.extract_strided_slice %98 {offsets = [0, 24], sizes = [32, 8], strides = [1, 1]} : vector<32x32xf32> to vector<32x8xf32>
    %113 = vector.shape_cast %109 : vector<32x8xf32> to vector<1x32x8xf32>
    %114 = vector.shape_cast %110 : vector<32x8xf32> to vector<1x32x8xf32>
    %115 = vector.shape_cast %111 : vector<32x8xf32> to vector<1x32x8xf32>
    %116 = vector.shape_cast %112 : vector<32x8xf32> to vector<1x32x8xf32>
    %117 = tpu.concatenate %113, %114, %115, %116 in 0 : vector<1x32x8xf32>, vector<1x32x8xf32>, vector<1x32x8xf32>, vector<1x32x8xf32> -> vector<4x32x8xf32>
    %118 = vector.extract_strided_slice %99 {offsets = [0, 0], sizes = [32, 8], strides = [1, 1]} : vector<32x32xf32> to vector<32x8xf32>
    %119 = vector.extract_strided_slice %99 {offsets = [0, 8], sizes = [32, 8], strides = [1, 1]} : vector<32x32xf32> to vector<32x8xf32>
    %120 = vector.extract_strided_slice %99 {offsets = [0, 16], sizes = [32, 8], strides = [1, 1]} : vector<32x32xf32> to vector<32x8xf32>
    %121 = vector.extract_strided_slice %99 {offsets = [0, 24], sizes = [32, 8], strides = [1, 1]} : vector<32x32xf32> to vector<32x8xf32>
    %122 = vector.shape_cast %118 : vector<32x8xf32> to vector<1x32x8xf32>
    %123 = vector.shape_cast %119 : vector<32x8xf32> to vector<1x32x8xf32>
    %124 = vector.shape_cast %120 : vector<32x8xf32> to vector<1x32x8xf32>
    %125 = vector.shape_cast %121 : vector<32x8xf32> to vector<1x32x8xf32>
    %126 = tpu.concatenate %122, %123, %124, %125 in 0 : vector<1x32x8xf32>, vector<1x32x8xf32>, vector<1x32x8xf32>, vector<1x32x8xf32> -> vector<4x32x8xf32>
    %127 = arith.truncf %108 : vector<4x32x8xf32> to vector<4x32x8xbf16>
    %128 = arith.truncf %117 : vector<4x32x8xf32> to vector<4x32x8xbf16>
    "tpu.trace_start"() <{level = 10 : i32, message = "hqd,hkd->hqk"}> : () -> ()
    %cst_41 = arith.constant dense<0.000000e+00> : vector<4x32x32xf32>
    %129 = tpu.matmul %127, %128, %cst_41 {dimension_numbers = #tpu.dot_dimension_numbers<[2], [2], [1], [1], [0, 0, 0, 1, 1, 1], [0], [0]>} : vector<4x32x8xbf16>, vector<4x32x8xbf16>, vector<4x32x32xf32> -> vector<4x32x32xf32>
    "tpu.trace_stop"() : () -> ()
    %130 = vector.shape_cast %82 : vector<32x32xf32> to vector<1x32x32xf32>
    %131 = vector.broadcast %130 : vector<1x32x32xf32> to vector<4x32x32xf32>
    %132 = arith.addf %129, %131 : vector<4x32x32xf32>
    %cst_42 = arith.constant dense<0xFF800000> : vector<4x32xf32>
    %133 = vector.multi_reduction <maximumf>, %132, %cst_42 [2] : vector<4x32x32xf32> to vector<4x32xf32>
    %134 = vector.shape_cast %133 : vector<4x32xf32> to vector<4x32x1xf32>
    %135 = vector.broadcast %134 : vector<4x32x1xf32> to vector<4x32x32xf32>
    %136 = arith.subf %132, %135 : vector<4x32x32xf32>
    %137 = math.exp %136 : vector<4x32x32xf32>
    %cst_43 = arith.constant dense<0.000000e+00> : vector<4x32xf32>
    %138 = vector.multi_reduction <add>, %137, %cst_43 [2] : vector<4x32x32xf32> to vector<4x32xf32>
    %139 = vector.shape_cast %138 : vector<4x32xf32> to vector<4x32x1xf32>
    %140 = vector.broadcast %139 : vector<4x32x1xf32> to vector<4x32x32xf32>
    %141 = arith.divf %137, %140 : vector<4x32x32xf32>
    %142 = arith.truncf %141 : vector<4x32x32xf32> to vector<4x32x32xbf16>
    %143 = arith.truncf %126 : vector<4x32x8xf32> to vector<4x32x8xbf16>
    "tpu.trace_start"() <{level = 10 : i32, message = "hqk,hkd->hqd"}> : () -> ()
    %cst_44 = arith.constant dense<0.000000e+00> : vector<4x32x8xf32>
    %144 = tpu.matmul %142, %143, %cst_44 {dimension_numbers = #tpu.dot_dimension_numbers<[2], [1], [1], [2], [0, 0, 0, 1, 1, 2], [0], [0]>} : vector<4x32x32xbf16>, vector<4x32x8xbf16>, vector<4x32x8xf32> -> vector<4x32x8xf32>
    "tpu.trace_stop"() : () -> ()
    %145 = vector.extract_strided_slice %144 {offsets = [0, 0, 0], sizes = [1, 32, 8], strides = [1, 1, 1]} : vector<4x32x8xf32> to vector<1x32x8xf32>
    %146 = vector.shape_cast %145 : vector<1x32x8xf32> to vector<32x8xf32>
    %147 = vector.extract_strided_slice %144 {offsets = [1, 0, 0], sizes = [1, 32, 8], strides = [1, 1, 1]} : vector<4x32x8xf32> to vector<1x32x8xf32>
    %148 = vector.shape_cast %147 : vector<1x32x8xf32> to vector<32x8xf32>
    %149 = vector.extract_strided_slice %144 {offsets = [2, 0, 0], sizes = [1, 32, 8], strides = [1, 1, 1]} : vector<4x32x8xf32> to vector<1x32x8xf32>
    %150 = vector.shape_cast %149 : vector<1x32x8xf32> to vector<32x8xf32>
    %151 = vector.extract_strided_slice %144 {offsets = [3, 0, 0], sizes = [1, 32, 8], strides = [1, 1, 1]} : vector<4x32x8xf32> to vector<1x32x8xf32>
    %152 = vector.shape_cast %151 : vector<1x32x8xf32> to vector<32x8xf32>
    %153 = tpu.concatenate %146, %148, %150, %152 in 1 : vector<32x8xf32>, vector<32x8xf32>, vector<32x8xf32>, vector<32x8xf32> -> vector<32x32xf32>
    %154 = arith.truncf %153 : vector<32x32xf32> to vector<32x32xbf16>
    %cst_45 = arith.constant dense<0.000000e+00> : vector<32x32xf32>
    %155 = tpu.matmul %154, %88, %cst_45 {dimension_numbers = #tpu.dot_dimension_numbers<[1], [0], [0], [1], [0, 0, 1, 1], [], []>} : vector<32x32xbf16>, vector<32x32xbf16>, vector<32x32xf32> -> vector<32x32xf32>
    %156 = vector.broadcast %90 : vector<1x32xf32> to vector<32x32xf32>
    %157 = arith.addf %155, %156 : vector<32x32xf32>
    %158 = arith.addf %81, %157 : vector<32x32xf32>
    %c0_46 = arith.constant 0 : index
    %c0_47 = arith.constant 0 : index
    %c0_48 = arith.constant 0 : index
    %159 = vector.load %arg15[%c0_46, %c0_47, %c0_48] : memref<2x1x32xf32, #tpu.memory_space<vmem>>, vector<1x1x32xf32>
    %160 = vector.shape_cast %159 : vector<1x1x32xf32> to vector<1x32xf32>
    %c0_49 = arith.constant 0 : index
    %c0_50 = arith.constant 0 : index
    %c0_51 = arith.constant 0 : index
    %161 = vector.load %arg16[%c0_49, %c0_50, %c0_51] : memref<2x1x32xf32, #tpu.memory_space<vmem>>, vector<1x1x32xf32>
    %162 = vector.shape_cast %161 : vector<1x1x32xf32> to vector<1x32xf32>
    %cst_52 = arith.constant dense<0.000000e+00> : vector<32xf32>
    %163 = vector.multi_reduction <add>, %158, %cst_52 [1] : vector<32x32xf32> to vector<32xf32>
    %164 = vector.shape_cast %163 : vector<32xf32> to vector<32x1xf32>
    %cst_53 = arith.constant 3.200000e+01 : f32
    %165 = vector.broadcast %cst_53 : f32 to vector<32x1xf32>
    %166 = arith.divf %164, %165 : vector<32x1xf32>
    %167 = vector.broadcast %166 : vector<32x1xf32> to vector<32x32xf32>
    %168 = arith.subf %158, %167 : vector<32x32xf32>
    %169 = arith.mulf %168, %168 : vector<32x32xf32>
    %cst_54 = arith.constant dense<0.000000e+00> : vector<32xf32>
    %170 = vector.multi_reduction <add>, %169, %cst_54 [1] : vector<32x32xf32> to vector<32xf32>
    %171 = vector.shape_cast %170 : vector<32xf32> to vector<32x1xf32>
    %cst_55 = arith.constant 3.200000e+01 : f32
    %172 = vector.broadcast %cst_55 : f32 to vector<32x1xf32>
    %173 = arith.divf %171, %172 : vector<32x1xf32>
    %cst_56 = arith.constant 9.99999974E-6 : f32
    %174 = vector.broadcast %cst_56 : f32 to vector<32x1xf32>
    %175 = arith.addf %173, %174 : vector<32x1xf32>
    %176 = math.rsqrt %175 : vector<32x1xf32>
    %177 = vector.broadcast %176 : vector<32x1xf32> to vector<32x32xf32>
    %178 = arith.mulf %168, %177 : vector<32x32xf32>
    %179 = vector.broadcast %160 : vector<1x32xf32> to vector<32x32xf32>
    %180 = arith.mulf %178, %179 : vector<32x32xf32>
    %181 = vector.broadcast %162 : vector<1x32xf32> to vector<32x32xf32>
    %182 = arith.addf %180, %181 : vector<32x32xf32>
    %183 = arith.truncf %182 : vector<32x32xf32> to vector<32x32xbf16>
    %c0_57 = arith.constant 0 : index
    %c0_58 = arith.constant 0 : index
    %c0_59 = arith.constant 0 : index
    %184 = vector.load %arg17[%c0_57, %c0_58, %c0_59] : memref<2x32x128xbf16, #tpu.memory_space<vmem>>, vector<1x32x128xbf16>
    %185 = vector.shape_cast %184 : vector<1x32x128xbf16> to vector<32x128xbf16>
    %cst_60 = arith.constant dense<0.000000e+00> : vector<32x128xf32>
    %186 = tpu.matmul %183, %185, %cst_60 {dimension_numbers = #tpu.dot_dimension_numbers<[1], [0], [0], [1], [0, 0, 1, 1], [], []>} : vector<32x32xbf16>, vector<32x128xbf16>, vector<32x128xf32> -> vector<32x128xf32>
    %c0_61 = arith.constant 0 : index
    %c0_62 = arith.constant 0 : index
    %c0_63 = arith.constant 0 : index
    %187 = vector.load %arg18[%c0_61, %c0_62, %c0_63] : memref<2x1x128xf32, #tpu.memory_space<vmem>>, vector<1x1x128xf32>
    %188 = vector.shape_cast %187 : vector<1x1x128xf32> to vector<1x128xf32>
    %189 = vector.broadcast %188 : vector<1x128xf32> to vector<32x128xf32>
    %190 = arith.addf %186, %189 : vector<32x128xf32>
    %cst_64 = arith.constant 0.000000e+00 : f32
    %191 = vector.broadcast %cst_64 : f32 to vector<32x128xf32>
    %192 = arith.maximumf %190, %191 : vector<32x128xf32>
    %193 = arith.truncf %192 : vector<32x128xf32> to vector<32x128xbf16>
    %c0_65 = arith.constant 0 : index
    %c0_66 = arith.constant 0 : index
    %c0_67 = arith.constant 0 : index
    %194 = vector.load %arg19[%c0_65, %c0_66, %c0_67] : memref<2x128x32xbf16, #tpu.memory_space<vmem>>, vector<1x128x32xbf16>
    %195 = vector.shape_cast %194 : vector<1x128x32xbf16> to vector<128x32xbf16>
    %cst_68 = arith.constant dense<0.000000e+00> : vector<32x32xf32>
    %196 = tpu.matmul %193, %195, %cst_68 {dimension_numbers = #tpu.dot_dimension_numbers<[1], [0], [0], [1], [0, 0, 1, 1], [], []>} : vector<32x128xbf16>, vector<128x32xbf16>, vector<32x32xf32> -> vector<32x32xf32>
    %c0_69 = arith.constant 0 : index
    %c0_70 = arith.constant 0 : index
    %c0_71 = arith.constant 0 : index
    %197 = vector.load %arg20[%c0_69, %c0_70, %c0_71] : memref<2x1x32xf32, #tpu.memory_space<vmem>>, vector<1x1x32xf32>
    %198 = vector.shape_cast %197 : vector<1x1x32xf32> to vector<1x32xf32>
    %199 = vector.broadcast %198 : vector<1x32xf32> to vector<32x32xf32>
    %200 = arith.addf %196, %199 : vector<32x32xf32>
    %201 = arith.addf %182, %200 : vector<32x32xf32>
    %c0_72 = arith.constant 0 : index
    %c0_73 = arith.constant 0 : index
    %c0_74 = arith.constant 0 : index
    %202 = vector.load %arg21[%c0_72, %c0_73, %c0_74] : memref<2x1x32xf32, #tpu.memory_space<vmem>>, vector<1x1x32xf32>
    %203 = vector.shape_cast %202 : vector<1x1x32xf32> to vector<1x32xf32>
    %c0_75 = arith.constant 0 : index
    %c0_76 = arith.constant 0 : index
    %c0_77 = arith.constant 0 : index
    %204 = vector.load %arg22[%c0_75, %c0_76, %c0_77] : memref<2x1x32xf32, #tpu.memory_space<vmem>>, vector<1x1x32xf32>
    %205 = vector.shape_cast %204 : vector<1x1x32xf32> to vector<1x32xf32>
    %cst_78 = arith.constant dense<0.000000e+00> : vector<32xf32>
    %206 = vector.multi_reduction <add>, %201, %cst_78 [1] : vector<32x32xf32> to vector<32xf32>
    %207 = vector.shape_cast %206 : vector<32xf32> to vector<32x1xf32>
    %cst_79 = arith.constant 3.200000e+01 : f32
    %208 = vector.broadcast %cst_79 : f32 to vector<32x1xf32>
    %209 = arith.divf %207, %208 : vector<32x1xf32>
    %210 = vector.broadcast %209 : vector<32x1xf32> to vector<32x32xf32>
    %211 = arith.subf %201, %210 : vector<32x32xf32>
    %212 = arith.mulf %211, %211 : vector<32x32xf32>
    %cst_80 = arith.constant dense<0.000000e+00> : vector<32xf32>
    %213 = vector.multi_reduction <add>, %212, %cst_80 [1] : vector<32x32xf32> to vector<32xf32>
    %214 = vector.shape_cast %213 : vector<32xf32> to vector<32x1xf32>
    %cst_81 = arith.constant 3.200000e+01 : f32
    %215 = vector.broadcast %cst_81 : f32 to vector<32x1xf32>
    %216 = arith.divf %214, %215 : vector<32x1xf32>
    %cst_82 = arith.constant 9.99999974E-6 : f32
    %217 = vector.broadcast %cst_82 : f32 to vector<32x1xf32>
    %218 = arith.addf %216, %217 : vector<32x1xf32>
    %219 = math.rsqrt %218 : vector<32x1xf32>
    %220 = vector.broadcast %219 : vector<32x1xf32> to vector<32x32xf32>
    %221 = arith.mulf %211, %220 : vector<32x32xf32>
    %222 = vector.broadcast %203 : vector<1x32xf32> to vector<32x32xf32>
    %223 = arith.mulf %221, %222 : vector<32x32xf32>
    %224 = vector.broadcast %205 : vector<1x32xf32> to vector<32x32xf32>
    %225 = arith.addf %223, %224 : vector<32x32xf32>
    %c1 = arith.constant 1 : index
    %c0_83 = arith.constant 0 : index
    %c0_84 = arith.constant 0 : index
    %226 = vector.load %arg11[%c1, %c0_83, %c0_84] : memref<2x32x96xbf16, #tpu.memory_space<vmem>>, vector<1x32x96xbf16>
    %227 = vector.shape_cast %226 : vector<1x32x96xbf16> to vector<32x96xbf16>
    %c1_85 = arith.constant 1 : index
    %c0_86 = arith.constant 0 : index
    %c0_87 = arith.constant 0 : index
    %228 = vector.load %arg12[%c1_85, %c0_86, %c0_87] : memref<2x1x96xf32, #tpu.memory_space<vmem>>, vector<1x1x96xf32>
    %229 = vector.shape_cast %228 : vector<1x1x96xf32> to vector<1x96xf32>
    %c1_88 = arith.constant 1 : index
    %c0_89 = arith.constant 0 : index
    %c0_90 = arith.constant 0 : index
    %230 = vector.load %arg13[%c1_88, %c0_89, %c0_90] : memref<2x32x32xbf16, #tpu.memory_space<vmem>>, vector<1x32x32xbf16>
    %231 = vector.shape_cast %230 : vector<1x32x32xbf16> to vector<32x32xbf16>
    %c1_91 = arith.constant 1 : index
    %c0_92 = arith.constant 0 : index
    %c0_93 = arith.constant 0 : index
    %232 = vector.load %arg14[%c1_91, %c0_92, %c0_93] : memref<2x1x32xf32, #tpu.memory_space<vmem>>, vector<1x1x32xf32>
    %233 = vector.shape_cast %232 : vector<1x1x32xf32> to vector<1x32xf32>
    %234 = arith.truncf %225 : vector<32x32xf32> to vector<32x32xbf16>
    %cst_94 = arith.constant dense<0.000000e+00> : vector<32x96xf32>
    %235 = tpu.matmul %234, %227, %cst_94 {dimension_numbers = #tpu.dot_dimension_numbers<[1], [0], [0], [1], [0, 0, 1, 1], [], []>} : vector<32x32xbf16>, vector<32x96xbf16>, vector<32x96xf32> -> vector<32x96xf32>
    %236 = vector.broadcast %229 : vector<1x96xf32> to vector<32x96xf32>
    %237 = arith.addf %235, %236 : vector<32x96xf32>
    %238 = vector.extract_strided_slice %237 {offsets = [0, 0], sizes = [32, 32], strides = [1, 1]} : vector<32x96xf32> to vector<32x32xf32>
    %cst_95 = arith.constant 0.353553385 : f32
    %239 = vector.broadcast %cst_95 : f32 to vector<32x32xf32>
    %240 = arith.mulf %238, %239 : vector<32x32xf32>
    %241 = vector.extract_strided_slice %237 {offsets = [0, 32], sizes = [32, 32], strides = [1, 1]} : vector<32x96xf32> to vector<32x32xf32>
    %242 = vector.extract_strided_slice %237 {offsets = [0, 64], sizes = [32, 32], strides = [1, 1]} : vector<32x96xf32> to vector<32x32xf32>
    %243 = vector.extract_strided_slice %240 {offsets = [0, 0], sizes = [32, 8], strides = [1, 1]} : vector<32x32xf32> to vector<32x8xf32>
    %244 = vector.extract_strided_slice %240 {offsets = [0, 8], sizes = [32, 8], strides = [1, 1]} : vector<32x32xf32> to vector<32x8xf32>
    %245 = vector.extract_strided_slice %240 {offsets = [0, 16], sizes = [32, 8], strides = [1, 1]} : vector<32x32xf32> to vector<32x8xf32>
    %246 = vector.extract_strided_slice %240 {offsets = [0, 24], sizes = [32, 8], strides = [1, 1]} : vector<32x32xf32> to vector<32x8xf32>
    %247 = vector.shape_cast %243 : vector<32x8xf32> to vector<1x32x8xf32>
    %248 = vector.shape_cast %244 : vector<32x8xf32> to vector<1x32x8xf32>
    %249 = vector.shape_cast %245 : vector<32x8xf32> to vector<1x32x8xf32>
    %250 = vector.shape_cast %246 : vector<32x8xf32> to vector<1x32x8xf32>
    %251 = tpu.concatenate %247, %248, %249, %250 in 0 : vector<1x32x8xf32>, vector<1x32x8xf32>, vector<1x32x8xf32>, vector<1x32x8xf32> -> vector<4x32x8xf32>
    %252 = vector.extract_strided_slice %241 {offsets = [0, 0], sizes = [32, 8], strides = [1, 1]} : vector<32x32xf32> to vector<32x8xf32>
    %253 = vector.extract_strided_slice %241 {offsets = [0, 8], sizes = [32, 8], strides = [1, 1]} : vector<32x32xf32> to vector<32x8xf32>
    %254 = vector.extract_strided_slice %241 {offsets = [0, 16], sizes = [32, 8], strides = [1, 1]} : vector<32x32xf32> to vector<32x8xf32>
    %255 = vector.extract_strided_slice %241 {offsets = [0, 24], sizes = [32, 8], strides = [1, 1]} : vector<32x32xf32> to vector<32x8xf32>
    %256 = vector.shape_cast %252 : vector<32x8xf32> to vector<1x32x8xf32>
    %257 = vector.shape_cast %253 : vector<32x8xf32> to vector<1x32x8xf32>
    %258 = vector.shape_cast %254 : vector<32x8xf32> to vector<1x32x8xf32>
    %259 = vector.shape_cast %255 : vector<32x8xf32> to vector<1x32x8xf32>
    %260 = tpu.concatenate %256, %257, %258, %259 in 0 : vector<1x32x8xf32>, vector<1x32x8xf32>, vector<1x32x8xf32>, vector<1x32x8xf32> -> vector<4x32x8xf32>
    %261 = vector.extract_strided_slice %242 {offsets = [0, 0], sizes = [32, 8], strides = [1, 1]} : vector<32x32xf32> to vector<32x8xf32>
    %262 = vector.extract_strided_slice %242 {offsets = [0, 8], sizes = [32, 8], strides = [1, 1]} : vector<32x32xf32> to vector<32x8xf32>
    %263 = vector.extract_strided_slice %242 {offsets = [0, 16], sizes = [32, 8], strides = [1, 1]} : vector<32x32xf32> to vector<32x8xf32>
    %264 = vector.extract_strided_slice %242 {offsets = [0, 24], sizes = [32, 8], strides = [1, 1]} : vector<32x32xf32> to vector<32x8xf32>
    %265 = vector.shape_cast %261 : vector<32x8xf32> to vector<1x32x8xf32>
    %266 = vector.shape_cast %262 : vector<32x8xf32> to vector<1x32x8xf32>
    %267 = vector.shape_cast %263 : vector<32x8xf32> to vector<1x32x8xf32>
    %268 = vector.shape_cast %264 : vector<32x8xf32> to vector<1x32x8xf32>
    %269 = tpu.concatenate %265, %266, %267, %268 in 0 : vector<1x32x8xf32>, vector<1x32x8xf32>, vector<1x32x8xf32>, vector<1x32x8xf32> -> vector<4x32x8xf32>
    %270 = arith.truncf %251 : vector<4x32x8xf32> to vector<4x32x8xbf16>
    %271 = arith.truncf %260 : vector<4x32x8xf32> to vector<4x32x8xbf16>
    "tpu.trace_start"() <{level = 10 : i32, message = "hqd,hkd->hqk"}> : () -> ()
    %cst_96 = arith.constant dense<0.000000e+00> : vector<4x32x32xf32>
    %272 = tpu.matmul %270, %271, %cst_96 {dimension_numbers = #tpu.dot_dimension_numbers<[2], [2], [1], [1], [0, 0, 0, 1, 1, 1], [0], [0]>} : vector<4x32x8xbf16>, vector<4x32x8xbf16>, vector<4x32x32xf32> -> vector<4x32x32xf32>
    "tpu.trace_stop"() : () -> ()
    %273 = vector.shape_cast %82 : vector<32x32xf32> to vector<1x32x32xf32>
    %274 = vector.broadcast %273 : vector<1x32x32xf32> to vector<4x32x32xf32>
    %275 = arith.addf %272, %274 : vector<4x32x32xf32>
    %cst_97 = arith.constant dense<0xFF800000> : vector<4x32xf32>
    %276 = vector.multi_reduction <maximumf>, %275, %cst_97 [2] : vector<4x32x32xf32> to vector<4x32xf32>
    %277 = vector.shape_cast %276 : vector<4x32xf32> to vector<4x32x1xf32>
    %278 = vector.broadcast %277 : vector<4x32x1xf32> to vector<4x32x32xf32>
    %279 = arith.subf %275, %278 : vector<4x32x32xf32>
    %280 = math.exp %279 : vector<4x32x32xf32>
    %cst_98 = arith.constant dense<0.000000e+00> : vector<4x32xf32>
    %281 = vector.multi_reduction <add>, %280, %cst_98 [2] : vector<4x32x32xf32> to vector<4x32xf32>
    %282 = vector.shape_cast %281 : vector<4x32xf32> to vector<4x32x1xf32>
    %283 = vector.broadcast %282 : vector<4x32x1xf32> to vector<4x32x32xf32>
    %284 = arith.divf %280, %283 : vector<4x32x32xf32>
    %285 = arith.truncf %284 : vector<4x32x32xf32> to vector<4x32x32xbf16>
    %286 = arith.truncf %269 : vector<4x32x8xf32> to vector<4x32x8xbf16>
    "tpu.trace_start"() <{level = 10 : i32, message = "hqk,hkd->hqd"}> : () -> ()
    %cst_99 = arith.constant dense<0.000000e+00> : vector<4x32x8xf32>
    %287 = tpu.matmul %285, %286, %cst_99 {dimension_numbers = #tpu.dot_dimension_numbers<[2], [1], [1], [2], [0, 0, 0, 1, 1, 2], [0], [0]>} : vector<4x32x32xbf16>, vector<4x32x8xbf16>, vector<4x32x8xf32> -> vector<4x32x8xf32>
    "tpu.trace_stop"() : () -> ()
    %288 = vector.extract_strided_slice %287 {offsets = [0, 0, 0], sizes = [1, 32, 8], strides = [1, 1, 1]} : vector<4x32x8xf32> to vector<1x32x8xf32>
    %289 = vector.shape_cast %288 : vector<1x32x8xf32> to vector<32x8xf32>
    %290 = vector.extract_strided_slice %287 {offsets = [1, 0, 0], sizes = [1, 32, 8], strides = [1, 1, 1]} : vector<4x32x8xf32> to vector<1x32x8xf32>
    %291 = vector.shape_cast %290 : vector<1x32x8xf32> to vector<32x8xf32>
    %292 = vector.extract_strided_slice %287 {offsets = [2, 0, 0], sizes = [1, 32, 8], strides = [1, 1, 1]} : vector<4x32x8xf32> to vector<1x32x8xf32>
    %293 = vector.shape_cast %292 : vector<1x32x8xf32> to vector<32x8xf32>
    %294 = vector.extract_strided_slice %287 {offsets = [3, 0, 0], sizes = [1, 32, 8], strides = [1, 1, 1]} : vector<4x32x8xf32> to vector<1x32x8xf32>
    %295 = vector.shape_cast %294 : vector<1x32x8xf32> to vector<32x8xf32>
    %296 = tpu.concatenate %289, %291, %293, %295 in 1 : vector<32x8xf32>, vector<32x8xf32>, vector<32x8xf32>, vector<32x8xf32> -> vector<32x32xf32>
    %297 = arith.truncf %296 : vector<32x32xf32> to vector<32x32xbf16>
    %cst_100 = arith.constant dense<0.000000e+00> : vector<32x32xf32>
    %298 = tpu.matmul %297, %231, %cst_100 {dimension_numbers = #tpu.dot_dimension_numbers<[1], [0], [0], [1], [0, 0, 1, 1], [], []>} : vector<32x32xbf16>, vector<32x32xbf16>, vector<32x32xf32> -> vector<32x32xf32>
    %299 = vector.broadcast %233 : vector<1x32xf32> to vector<32x32xf32>
    %300 = arith.addf %298, %299 : vector<32x32xf32>
    %301 = arith.addf %225, %300 : vector<32x32xf32>
    %c1_101 = arith.constant 1 : index
    %c0_102 = arith.constant 0 : index
    %c0_103 = arith.constant 0 : index
    %302 = vector.load %arg15[%c1_101, %c0_102, %c0_103] : memref<2x1x32xf32, #tpu.memory_space<vmem>>, vector<1x1x32xf32>
    %303 = vector.shape_cast %302 : vector<1x1x32xf32> to vector<1x32xf32>
    %c1_104 = arith.constant 1 : index
    %c0_105 = arith.constant 0 : index
    %c0_106 = arith.constant 0 : index
    %304 = vector.load %arg16[%c1_104, %c0_105, %c0_106] : memref<2x1x32xf32, #tpu.memory_space<vmem>>, vector<1x1x32xf32>
    %305 = vector.shape_cast %304 : vector<1x1x32xf32> to vector<1x32xf32>
    %cst_107 = arith.constant dense<0.000000e+00> : vector<32xf32>
    %306 = vector.multi_reduction <add>, %301, %cst_107 [1] : vector<32x32xf32> to vector<32xf32>
    %307 = vector.shape_cast %306 : vector<32xf32> to vector<32x1xf32>
    %cst_108 = arith.constant 3.200000e+01 : f32
    %308 = vector.broadcast %cst_108 : f32 to vector<32x1xf32>
    %309 = arith.divf %307, %308 : vector<32x1xf32>
    %310 = vector.broadcast %309 : vector<32x1xf32> to vector<32x32xf32>
    %311 = arith.subf %301, %310 : vector<32x32xf32>
    %312 = arith.mulf %311, %311 : vector<32x32xf32>
    %cst_109 = arith.constant dense<0.000000e+00> : vector<32xf32>
    %313 = vector.multi_reduction <add>, %312, %cst_109 [1] : vector<32x32xf32> to vector<32xf32>
    %314 = vector.shape_cast %313 : vector<32xf32> to vector<32x1xf32>
    %cst_110 = arith.constant 3.200000e+01 : f32
    %315 = vector.broadcast %cst_110 : f32 to vector<32x1xf32>
    %316 = arith.divf %314, %315 : vector<32x1xf32>
    %cst_111 = arith.constant 9.99999974E-6 : f32
    %317 = vector.broadcast %cst_111 : f32 to vector<32x1xf32>
    %318 = arith.addf %316, %317 : vector<32x1xf32>
    %319 = math.rsqrt %318 : vector<32x1xf32>
    %320 = vector.broadcast %319 : vector<32x1xf32> to vector<32x32xf32>
    %321 = arith.mulf %311, %320 : vector<32x32xf32>
    %322 = vector.broadcast %303 : vector<1x32xf32> to vector<32x32xf32>
    %323 = arith.mulf %321, %322 : vector<32x32xf32>
    %324 = vector.broadcast %305 : vector<1x32xf32> to vector<32x32xf32>
    %325 = arith.addf %323, %324 : vector<32x32xf32>
    %326 = arith.truncf %325 : vector<32x32xf32> to vector<32x32xbf16>
    %c1_112 = arith.constant 1 : index
    %c0_113 = arith.constant 0 : index
    %c0_114 = arith.constant 0 : index
    %327 = vector.load %arg17[%c1_112, %c0_113, %c0_114] : memref<2x32x128xbf16, #tpu.memory_space<vmem>>, vector<1x32x128xbf16>
    %328 = vector.shape_cast %327 : vector<1x32x128xbf16> to vector<32x128xbf16>
    %cst_115 = arith.constant dense<0.000000e+00> : vector<32x128xf32>
    %329 = tpu.matmul %326, %328, %cst_115 {dimension_numbers = #tpu.dot_dimension_numbers<[1], [0], [0], [1], [0, 0, 1, 1], [], []>} : vector<32x32xbf16>, vector<32x128xbf16>, vector<32x128xf32> -> vector<32x128xf32>
    %c1_116 = arith.constant 1 : index
    %c0_117 = arith.constant 0 : index
    %c0_118 = arith.constant 0 : index
    %330 = vector.load %arg18[%c1_116, %c0_117, %c0_118] : memref<2x1x128xf32, #tpu.memory_space<vmem>>, vector<1x1x128xf32>
    %331 = vector.shape_cast %330 : vector<1x1x128xf32> to vector<1x128xf32>
    %332 = vector.broadcast %331 : vector<1x128xf32> to vector<32x128xf32>
    %333 = arith.addf %329, %332 : vector<32x128xf32>
    %cst_119 = arith.constant 0.000000e+00 : f32
    %334 = vector.broadcast %cst_119 : f32 to vector<32x128xf32>
    %335 = arith.maximumf %333, %334 : vector<32x128xf32>
    %336 = arith.truncf %335 : vector<32x128xf32> to vector<32x128xbf16>
    %c1_120 = arith.constant 1 : index
    %c0_121 = arith.constant 0 : index
    %c0_122 = arith.constant 0 : index
    %337 = vector.load %arg19[%c1_120, %c0_121, %c0_122] : memref<2x128x32xbf16, #tpu.memory_space<vmem>>, vector<1x128x32xbf16>
    %338 = vector.shape_cast %337 : vector<1x128x32xbf16> to vector<128x32xbf16>
    %cst_123 = arith.constant dense<0.000000e+00> : vector<32x32xf32>
    %339 = tpu.matmul %336, %338, %cst_123 {dimension_numbers = #tpu.dot_dimension_numbers<[1], [0], [0], [1], [0, 0, 1, 1], [], []>} : vector<32x128xbf16>, vector<128x32xbf16>, vector<32x32xf32> -> vector<32x32xf32>
    %c1_124 = arith.constant 1 : index
    %c0_125 = arith.constant 0 : index
    %c0_126 = arith.constant 0 : index
    %340 = vector.load %arg20[%c1_124, %c0_125, %c0_126] : memref<2x1x32xf32, #tpu.memory_space<vmem>>, vector<1x1x32xf32>
    %341 = vector.shape_cast %340 : vector<1x1x32xf32> to vector<1x32xf32>
    %342 = vector.broadcast %341 : vector<1x32xf32> to vector<32x32xf32>
    %343 = arith.addf %339, %342 : vector<32x32xf32>
    %344 = arith.addf %325, %343 : vector<32x32xf32>
    %c1_127 = arith.constant 1 : index
    %c0_128 = arith.constant 0 : index
    %c0_129 = arith.constant 0 : index
    %345 = vector.load %arg21[%c1_127, %c0_128, %c0_129] : memref<2x1x32xf32, #tpu.memory_space<vmem>>, vector<1x1x32xf32>
    %346 = vector.shape_cast %345 : vector<1x1x32xf32> to vector<1x32xf32>
    %c1_130 = arith.constant 1 : index
    %c0_131 = arith.constant 0 : index
    %c0_132 = arith.constant 0 : index
    %347 = vector.load %arg22[%c1_130, %c0_131, %c0_132] : memref<2x1x32xf32, #tpu.memory_space<vmem>>, vector<1x1x32xf32>
    %348 = vector.shape_cast %347 : vector<1x1x32xf32> to vector<1x32xf32>
    %cst_133 = arith.constant dense<0.000000e+00> : vector<32xf32>
    %349 = vector.multi_reduction <add>, %344, %cst_133 [1] : vector<32x32xf32> to vector<32xf32>
    %350 = vector.shape_cast %349 : vector<32xf32> to vector<32x1xf32>
    %cst_134 = arith.constant 3.200000e+01 : f32
    %351 = vector.broadcast %cst_134 : f32 to vector<32x1xf32>
    %352 = arith.divf %350, %351 : vector<32x1xf32>
    %353 = vector.broadcast %352 : vector<32x1xf32> to vector<32x32xf32>
    %354 = arith.subf %344, %353 : vector<32x32xf32>
    %355 = arith.mulf %354, %354 : vector<32x32xf32>
    %cst_135 = arith.constant dense<0.000000e+00> : vector<32xf32>
    %356 = vector.multi_reduction <add>, %355, %cst_135 [1] : vector<32x32xf32> to vector<32xf32>
    %357 = vector.shape_cast %356 : vector<32xf32> to vector<32x1xf32>
    %cst_136 = arith.constant 3.200000e+01 : f32
    %358 = vector.broadcast %cst_136 : f32 to vector<32x1xf32>
    %359 = arith.divf %357, %358 : vector<32x1xf32>
    %cst_137 = arith.constant 9.99999974E-6 : f32
    %360 = vector.broadcast %cst_137 : f32 to vector<32x1xf32>
    %361 = arith.addf %359, %360 : vector<32x1xf32>
    %362 = math.rsqrt %361 : vector<32x1xf32>
    %363 = vector.broadcast %362 : vector<32x1xf32> to vector<32x32xf32>
    %364 = arith.mulf %354, %363 : vector<32x32xf32>
    %365 = vector.broadcast %346 : vector<1x32xf32> to vector<32x32xf32>
    %366 = arith.mulf %364, %365 : vector<32x32xf32>
    %367 = vector.broadcast %348 : vector<1x32xf32> to vector<32x32xf32>
    %368 = arith.addf %366, %367 : vector<32x32xf32>
    %c0_138 = arith.constant 0 : index
    %c0_139 = arith.constant 0 : index
    %369 = vector.load %arg23[%c0_138, %c0_139] : memref<4x32xf32, #tpu.memory_space<vmem>>, vector<4x32xf32>
    %cst_140 = arith.constant dense<0.000000e+00> : vector<4x32xf32>
    %370 = tpu.matmul %369, %368, %cst_140 {dimension_numbers = #tpu.dot_dimension_numbers<[1], [0], [0], [1], [0, 0, 1, 1], [], []>} : vector<4x32xf32>, vector<32x32xf32>, vector<4x32xf32> -> vector<4x32xf32>
    %c0_141 = arith.constant 0 : index
    %c0_142 = arith.constant 0 : index
    %371 = vector.load %arg24[%c0_141, %c0_142] : memref<1x32xf32, #tpu.memory_space<vmem>>, vector<1x32xf32>
    %cst_143 = arith.constant dense<0.000000e+00> : vector<1x4xf32>
    %372 = tpu.matmul %371, %370, %cst_143 {dimension_numbers = #tpu.dot_dimension_numbers<[1], [1], [0], [0], [0, 0, 1, 0], [], []>} : vector<1x32xf32>, vector<4x32xf32>, vector<1x4xf32> -> vector<1x4xf32>
    %c0_144 = arith.constant 0 : index
    %c0_145 = arith.constant 0 : index
    %373 = memref.load %arg25[%c0_144, %c0_145] : memref<1x1xf32, #tpu.memory_space<smem>>
    %374 = vector.broadcast %373 : f32 to vector<1x4xf32>
    %375 = arith.addf %372, %374 : vector<1x4xf32>
    %cst_146 = arith.constant dense<0xFF800000> : vector<1xf32>
    %376 = vector.multi_reduction <maximumf>, %375, %cst_146 [1] : vector<1x4xf32> to vector<1xf32>
    %377 = vector.shape_cast %376 : vector<1xf32> to vector<1x1xf32>
    %378 = vector.broadcast %377 : vector<1x1xf32> to vector<1x4xf32>
    %379 = arith.subf %375, %378 : vector<1x4xf32>
    %380 = math.exp %379 : vector<1x4xf32>
    %cst_147 = arith.constant dense<0.000000e+00> : vector<1xf32>
    %381 = vector.multi_reduction <add>, %380, %cst_147 [1] : vector<1x4xf32> to vector<1xf32>
    %382 = vector.shape_cast %381 : vector<1xf32> to vector<1x1xf32>
    %383 = vector.broadcast %382 : vector<1x1xf32> to vector<1x4xf32>
    %384 = arith.divf %380, %383 : vector<1x4xf32>
    %c0_148 = arith.constant 0 : index
    %c0_149 = arith.constant 0 : index
    %c0_150 = arith.constant 0 : index
    %385 = vector.load %arg26[%c0_148, %c0_149, %c0_150] : memref<1x1x4xf32, #tpu.memory_space<vmem>>, vector<1x1x4xf32>
    %386 = vector.shape_cast %385 : vector<1x1x4xf32> to vector<1x4xf32>
    %387 = vector.shape_cast %384 : vector<1x4xf32> to vector<1x1x4xf32>
    tpu.vector_store %arg26[%c0_148, %c0_149, %c0_150], %387 {strides = array<i32>} : memref<1x1x4xf32, #tpu.memory_space<vmem>>, vector<1x1x4xf32>,
    return
  }
  func.func @transform_0(%arg0: i32) -> (i32, i32, i32) {
    %c0_i32 = arith.constant 0 : i32
    %c0_i32_0 = arith.constant 0 : i32
    %c0_i32_1 = arith.constant 0 : i32
    return %arg0, %c0_i32, %c0_i32_0 : i32, i32, i32
  }
  func.func @transform_1(%arg0: i32) -> (i32, i32) {
    %c0_i32 = arith.constant 0 : i32
    %c0_i32_0 = arith.constant 0 : i32
    %c0_i32_1 = arith.constant 0 : i32
    return %c0_i32, %c0_i32_0 : i32, i32
  }
  func.func @transform_2(%arg0: i32) -> (i32, i32) {
    %c0_i32 = arith.constant 0 : i32
    %c0_i32_0 = arith.constant 0 : i32
    %c0_i32_1 = arith.constant 0 : i32
    return %c0_i32, %c0_i32_0 : i32, i32
  }
  func.func @transform_3(%arg0: i32) -> (i32, i32) {
    %c0_i32 = arith.constant 0 : i32
    %c0_i32_0 = arith.constant 0 : i32
    %c0_i32_1 = arith.constant 0 : i32
    return %c0_i32, %c0_i32_0 : i32, i32
  }
  func.func @transform_4(%arg0: i32) -> (i32, i32) {
    %c0_i32 = arith.constant 0 : i32
    %c0_i32_0 = arith.constant 0 : i32
    %c0_i32_1 = arith.constant 0 : i32
    return %c0_i32, %c0_i32_0 : i32, i32
  }
  func.func @transform_5(%arg0: i32) -> (i32, i32) {
    %c0_i32 = arith.constant 0 : i32
    %c0_i32_0 = arith.constant 0 : i32
    %c0_i32_1 = arith.constant 0 : i32
    return %c0_i32, %c0_i32_0 : i32, i32
  }
  func.func @transform_6(%arg0: i32) -> (i32, i32) {
    %c0_i32 = arith.constant 0 : i32
    %c0_i32_0 = arith.constant 0 : i32
    %c0_i32_1 = arith.constant 0 : i32
    return %c0_i32, %c0_i32_0 : i32, i32
  }
  func.func @transform_7(%arg0: i32) -> (i32, i32) {
    %c0_i32 = arith.constant 0 : i32
    %c0_i32_0 = arith.constant 0 : i32
    %c0_i32_1 = arith.constant 0 : i32
    return %c0_i32, %c0_i32_0 : i32, i32
  }
  func.func @transform_8(%arg0: i32) -> (i32, i32) {
    %c0_i32 = arith.constant 0 : i32
    %c0_i32_0 = arith.constant 0 : i32
    %c0_i32_1 = arith.constant 0 : i32
    return %c0_i32, %c0_i32_0 : i32, i32
  }
  func.func @transform_9(%arg0: i32) -> (i32, i32) {
    %c0_i32 = arith.constant 0 : i32
    %c0_i32_0 = arith.constant 0 : i32
    %c0_i32_1 = arith.constant 0 : i32
    return %c0_i32, %c0_i32_0 : i32, i32
  }
  func.func @transform_10(%arg0: i32) -> (i32, i32, i32) {
    %c0_i32 = arith.constant 0 : i32
    %c0_i32_0 = arith.constant 0 : i32
    %c0_i32_1 = arith.constant 0 : i32
    %c0_i32_2 = arith.constant 0 : i32
    return %c0_i32, %c0_i32_0, %c0_i32_1 : i32, i32, i32
  }
  func.func @transform_11(%arg0: i32) -> (i32, i32, i32) {
    %c0_i32 = arith.constant 0 : i32
    %c0_i32_0 = arith.constant 0 : i32
    %c0_i32_1 = arith.constant 0 : i32
    %c0_i32_2 = arith.constant 0 : i32
    return %c0_i32, %c0_i32_0, %c0_i32_1 : i32, i32, i32
  }
  func.func @transform_12(%arg0: i32) -> (i32, i32, i32) {
    %c0_i32 = arith.constant 0 : i32
    %c0_i32_0 = arith.constant 0 : i32
    %c0_i32_1 = arith.constant 0 : i32
    %c0_i32_2 = arith.constant 0 : i32
    return %c0_i32, %c0_i32_0, %c0_i32_1 : i32, i32, i32
  }
  func.func @transform_13(%arg0: i32) -> (i32, i32, i32) {
    %c0_i32 = arith.constant 0 : i32
    %c0_i32_0 = arith.constant 0 : i32
    %c0_i32_1 = arith.constant 0 : i32
    %c0_i32_2 = arith.constant 0 : i32
    return %c0_i32, %c0_i32_0, %c0_i32_1 : i32, i32, i32
  }
  func.func @transform_14(%arg0: i32) -> (i32, i32, i32) {
    %c0_i32 = arith.constant 0 : i32
    %c0_i32_0 = arith.constant 0 : i32
    %c0_i32_1 = arith.constant 0 : i32
    %c0_i32_2 = arith.constant 0 : i32
    return %c0_i32, %c0_i32_0, %c0_i32_1 : i32, i32, i32
  }
  func.func @transform_15(%arg0: i32) -> (i32, i32, i32) {
    %c0_i32 = arith.constant 0 : i32
    %c0_i32_0 = arith.constant 0 : i32
    %c0_i32_1 = arith.constant 0 : i32
    %c0_i32_2 = arith.constant 0 : i32
    return %c0_i32, %c0_i32_0, %c0_i32_1 : i32, i32, i32
  }
  func.func @transform_16(%arg0: i32) -> (i32, i32, i32) {
    %c0_i32 = arith.constant 0 : i32
    %c0_i32_0 = arith.constant 0 : i32
    %c0_i32_1 = arith.constant 0 : i32
    %c0_i32_2 = arith.constant 0 : i32
    return %c0_i32, %c0_i32_0, %c0_i32_1 : i32, i32, i32
  }
  func.func @transform_17(%arg0: i32) -> (i32, i32, i32) {
    %c0_i32 = arith.constant 0 : i32
    %c0_i32_0 = arith.constant 0 : i32
    %c0_i32_1 = arith.constant 0 : i32
    %c0_i32_2 = arith.constant 0 : i32
    return %c0_i32, %c0_i32_0, %c0_i32_1 : i32, i32, i32
  }
  func.func @transform_18(%arg0: i32) -> (i32, i32, i32) {
    %c0_i32 = arith.constant 0 : i32
    %c0_i32_0 = arith.constant 0 : i32
    %c0_i32_1 = arith.constant 0 : i32
    %c0_i32_2 = arith.constant 0 : i32
    return %c0_i32, %c0_i32_0, %c0_i32_1 : i32, i32, i32
  }
  func.func @transform_19(%arg0: i32) -> (i32, i32, i32) {
    %c0_i32 = arith.constant 0 : i32
    %c0_i32_0 = arith.constant 0 : i32
    %c0_i32_1 = arith.constant 0 : i32
    %c0_i32_2 = arith.constant 0 : i32
    return %c0_i32, %c0_i32_0, %c0_i32_1 : i32, i32, i32
  }
  func.func @transform_20(%arg0: i32) -> (i32, i32, i32) {
    %c0_i32 = arith.constant 0 : i32
    %c0_i32_0 = arith.constant 0 : i32
    %c0_i32_1 = arith.constant 0 : i32
    %c0_i32_2 = arith.constant 0 : i32
    return %c0_i32, %c0_i32_0, %c0_i32_1 : i32, i32, i32
  }
  func.func @transform_21(%arg0: i32) -> (i32, i32, i32) {
    %c0_i32 = arith.constant 0 : i32
    %c0_i32_0 = arith.constant 0 : i32
    %c0_i32_1 = arith.constant 0 : i32
    %c0_i32_2 = arith.constant 0 : i32
    return %c0_i32, %c0_i32_0, %c0_i32_1 : i32, i32, i32
  }
  func.func @transform_22(%arg0: i32) -> (i32, i32) {
    %c0_i32 = arith.constant 0 : i32
    %c0_i32_0 = arith.constant 0 : i32
    %c0_i32_1 = arith.constant 0 : i32
    return %c0_i32, %c0_i32_0 : i32, i32
  }
  func.func @transform_23(%arg0: i32) -> (i32, i32) {
    %c0_i32 = arith.constant 0 : i32
    %c0_i32_0 = arith.constant 0 : i32
    %c0_i32_1 = arith.constant 0 : i32
    return %c0_i32, %c0_i32_0 : i32, i32
  }
  func.func @transform_24(%arg0: i32) -> (i32, i32) {
    %c0_i32 = arith.constant 0 : i32
    %c0_i32_0 = arith.constant 0 : i32
    %c0_i32_1 = arith.constant 0 : i32
    return %c0_i32, %c0_i32_0 : i32, i32
  }
  func.func @transform_25(%arg0: i32) -> (i32, i32, i32) {
    %c0_i32 = arith.constant 0 : i32
    %c0_i32_0 = arith.constant 0 : i32
    %c0_i32_1 = arith.constant 0 : i32
    return %arg0, %c0_i32, %c0_i32_0 : i32, i32, i32
  }
}

</mosaic_0001>

<bundles_post_ra>
// kernel: investor_transformer_forward.1
= control target key start
LH: loop header
LB: loop body
LE: loop exit
PB: predicated region body
PF: predicated region fallthrough
CT: control target
= control target key end

     0   :  { %s8893_s0 = inlined_call_operand.vmem [shape: f32[2,32,8], index: 0, kind: input, shape index: {}]   ;;  %s8894_s1 = inlined_call_operand.hbm [shape: bf16[8,32], index: 1, kind: input, shape index: {}]   ;;  %s8895_s2 = inlined_call_operand.hbm [shape: f32[1,32], index: 2, kind: input, shape index: {}]   ;;  %s8896_s3 = inlined_call_operand.vmem [shape: f32[32,32], index: 3, kind: input, shape index: {}]   ;;  %s8897_s4 = inlined_call_operand.vmem [shape: f32[32,32], index: 4, kind: input, shape index: {}]   ;;  %s8898_s5 = inlined_call_operand.vmem [shape: f32[32,32], index: 5, kind: input, shape index: {}]   ;;  %s8899_s6 = inlined_call_operand.hbm [shape: bf16[32,96], index: 6, kind: input, shape index: {}]   ;;  %s8900_s7 = inlined_call_operand.hbm [shape: f32[1,96], index: 7, kind: input, shape index: {}]   ;;  %s8901_s8 = inlined_call_operand.hbm [shape: bf16[32,32], index: 8, kind: input, shape index: {}]   ;;  %s8902_s9 = inlined_call_operand.hbm [shape: f32[1,32], index: 9, kind: input, shape index: {}]   ;;  %s8903_s10 = inlined_call_operand.vmem [shape: bf16[2,32,96], index: 10, kind: input, shape index: {}]   ;;  %s8904_s11 = inlined_call_operand.hbm [shape: f32[2,1,96], index: 11, kind: input, shape index: {}]   ;;  %s8905_s12 = inlined_call_operand.vmem [shape: bf16[2,32,32], index: 12, kind: input, shape index: {}]   ;;  %s8906_s13 = inlined_call_operand.hbm [shape: f32[2,1,32], index: 13, kind: input, shape index: {}]   ;;  %s8907_s14 = inlined_call_operand.hbm [shape: f32[2,1,32], index: 14, kind: input, shape index: {}]   ;;  %s8908_s15 = inlined_call_operand.hbm [shape: f32[2,1,32], index: 15, kind: input, shape index: {}]   ;;  %s8909_s16 = inlined_call_operand.vmem [shape: bf16[2,32,128], index: 16, kind: input, shape index: {}]   ;;  %s8910_s17 = inlined_call_operand.hbm [shape: f32[2,1,128], index: 17, kind: input, shape index: {}]   ;;  %s8911_s18 = inlined_call_operand.vmem [shape: bf16[2,128,32], index: 18, kind: input, shape index: {}]   ;;  %s8912_s19 = inlined_call_operand.hbm [shape: f32[2,1,32], index: 19, kind: input, shape index: {}]   ;;  %s8913_s20 = inlined_call_operand.hbm [shape: f32[2,1,32], index: 20, kind: input, shape index: {}]   ;;  %s8914_s21 = inlined_call_operand.hbm [shape: f32[2,1,32], index: 21, kind: input, shape index: {}]   ;;  %s8915_s22 = inlined_call_operand.vmem [shape: f32[4,32], index: 22, kind: input, shape index: {}]   ;;  %s8916_s23 = inlined_call_operand.hbm [shape: f32[1,32], index: 23, kind: input, shape index: {}]   ;;  %s8917_s24 = inlined_call_operand.<no memory space> [shape: f32[1,1], index: 24, kind: input, shape index: {}]   ;;  %s8918_s25 = inlined_call_operand.hbm [shape: f32[2,1,4], index: 25, kind: output, shape index: {}]  }
   0x1   :  { %8949 = sst [smem:[#allocation45_spill]] %s8893_s0 }
   0x2   :  { %8950 = sst [smem:[#allocation46_spill]] %s8894_s1 }
   0x3   :  { %8951 = sst [smem:[#allocation47_spill]] %s8895_s2 }
   0x4   :  { %8952 = sst [smem:[#allocation48_spill]] %s8896_s3 }
   0x5   :  { %8953 = sst [smem:[#allocation49_spill]] %s8897_s4 }
   0x6   :  { %8954 = sst [smem:[#allocation50_spill]] %s8898_s5 }
   0x7   :  { %8955 = sst [smem:[#allocation51_spill]] %s8899_s6 }
   0x8   :  { %8956 = sst [smem:[#allocation52_spill]] %s8900_s7 }
   0x9   :  { %8957 = sst [smem:[#allocation53_spill]] %s8901_s8 }
   0xa   :  { %8958 = sst [smem:[#allocation54_spill]] %s8902_s9 }
   0xb   :  { %8959 = sst [smem:[#allocation55_spill]] %s8906_s13 }
   0xc   :  { %8960 = sst [smem:[#allocation56_spill]] %s8908_s15 }
   0xd   :  { %8961 = sst [smem:[#allocation57_spill]] %s8912_s19 }
   0xe   :  { %8962 = sst [smem:[#allocation58_spill]] %s8914_s21 }
   0xf   :  { %8963 = sst [smem:[#allocation59_spill]] %s8915_s22 }
  0x10   :  { %8964 = sst [smem:[#allocation60_spill]] %s8918_s25 }
  0x11   :  { %30 = sst [smem:[#allocation2]] %s8917_s24 }
  0x12   :  { %31 = vsyncpa [#allocation4], 0 }
  0x13   :  { %32 = vsyncpa [#allocation7], 0 }
  0x14   :  { %33 = vsyncpa [#allocation10], 0 }
  0x15   :  { %34 = vsyncpa [#allocation13], 0 }
  0x16   :  { %35 = vsyncpa [#allocation16], 0 }
  0x17   :  { %36 = vsyncpa [#allocation19], 0 }
  0x18   :  { %37 = vsyncpa [#allocation22], 0 }
  0x19   :  { %38 = vsyncpa [#allocation25], 0 }
  0x1a   :  { %39 = vsyncpa [#allocation5], 0 }
  0x1b   :  { %41 = vsyncpa [#allocation5 + $0x1], 0  ;;  %s7343_s6 = smov 0   ;;  %s7345_s30 = smov 0  }
  0x1c   :  { %s7347_s7 = smov 0   ;;  %s7349_s3 = smov 0  }
  0x1d LB: > { %8965 = sst [smem:[#allocation37_spill]] %s7165_s6  ;;  %s7364_s24 = sadd.s32 4294967295, %s7177_s3   ;;  %s7177_s3 = sphi %s7349_s3, %s9020_s3   ;;  %s7173_s7 = sphi %s7347_s7, %s9023_s7   ;;  %s7169_s30 = sphi %s7345_s30, %s9022_s30   ;;  %s7165_s6 = sphi %s7343_s6, %s9021_s6  }
  0x1e   : > { %8966 = sst [smem:[#allocation38_spill]] %s7169_s30  ;;  %s5229_s26 = sadd.s32 4294967294, %s7177_s3  }
  0x1f   : > { %8967 = sst [smem:[#allocation39_spill]] %s7173_s7  ;;  %s7368_s1 = sadd.s32 1, %s7177_s3  }
  0x20   : > { %8968 = sst [smem:[#allocation40_spill]] %s7177_s3  ;;  %s584_s8 = sadd.s32 1, %s7173_s7 }
  0x21   : > { %8969 = sst [smem:[#allocation41_spill]] %s7368_s1  ;;  %s581_s27 = ssub.s32 %s7177_s3, %s7368_s1 }
  0x22   : > { %p594_p0 = scmp.ne.s32.totalorder %s7173_s7, %s7169_s30  ;;  %p582_p1 = scmp.eq.s32.totalorder %s581_s27, 0 }
  0x23   : > { %p595_p2 = scmp.eq.s32.totalorder %s7364_s24, 1  ;;  %p600_p3 = scmp.ne.s32.totalorder %s7169_s30, %s7165_s6 }
  0x24   : > { %p601_p4 = scmp.eq.s32.totalorder %s5229_s26, 1  ;;  %p5230_p7 = scmp.ge.s32.totalorder %s7177_s3, 1 }
  0x25   : > { %s7379_s4 = scalar_select %p582_p1, %s7173_s7, %s584_s8  }
  0x26   : > { %p7381_p5 = por %p595_p2, %p594_p0  ;;  %p7385_p6 = por %p601_p4, %p600_p3 }
  0x27   : > { %8970 = sst [smem:[#allocation42_spill]] %s7379_s4  ;;  %p608_p8 = scmp.lt.s32.totalorder %s7177_s3, 3 }
  0x28   : > { %s8971_s28 = scalar_select %p7381_p5, 1, 0 }
  0x29   : > { %s8973_s9 = scalar_select %p7385_p6, 1, 0 }
  0x2a   : > { %8972 = sst [smem:[#allocation43_spill]] %s8971_s28  ;;  %p8935_p9 = scmp.eq.s32.totalorder %s7364_s24, 0 }
  0x2b   : > { %8974 = sst [smem:[#allocation44_spill]] %s8973_s9  ;;  %p7392_p10 = pnand %p5230_p7, %p608_p8 }
  0x2c   : > { %s7179_s0 = smov [#allocation6]   ;;  %s7180_s2 = smov [#allocation9]  }
  0x2d   : > { %s8975_s5 = scalar_select %p7392_p10, 1, 0 }
  0x2e   : > { %s632_s29 = sshll.u32 %s7179_s0, 4  ;;  %p5986_p11 = pneg %p7392_p10  ;;  %s633_s29 = int_to_ptr.vmem [resolvable:$true] %s632_s29 }
  0x2f   : > { %s665_s26 = sshll.u32 %s7180_s2, 4  ;;  %s7181_s27 = smov [#allocation12]   ;;  %s7404_s26 = int_to_ptr.vmem [resolvable:$true] %s665_s26 }
  0x30   : > { %p7400_p12 = pnand %p8935_p9, %p5986_p11  ;;  %s689_s4 = sshll.u32 %s7181_s27, 4  ;;  %s7406_s4 = int_to_ptr.vmem [resolvable:$true] %s689_s4 }
  0x31   : > { %s8977_s0 = sld [smem:[#allocation47_spill]] }
  0x32   : > { %p7416_p0 = pneg %p7400_p12 }
  0x37   : > { %s6663_s9 = scalar_lea.hbm %s8977_s0, 16 }
  0x38   : > { %p6664_p13 = scmp.ne.s32.totalorder %s8977_s0, %s6663_s9  ;;  %p6670_p3 = scmp.lt.u32.totalorder %s6663_s9, %s8977_s0 }
  0x3a   : > { %p6666_p1 = pnand %p7416_p0, %p6664_p13 }
  0x3c   : > { %p6667_p2 = pneg %p6666_p1 }
  0x3e   : > { %p6672_p4 = pnand %p6670_p3, %p6667_p2 }
  0x40   : > { %6675 = shalt.err (!%p6672_p4)
}
  0x41   : > { %s6676_s7 = scalar_lea.vmem %s633_s29, 16  ;;  %s6683_s6 = scalar_lea.vmem %s633_s29, 32 }
  0x42   : > { %p6677_p7 = scmp.ne.s32.totalorder %s633_s29, %s6676_s7  ;;  %p6684_p9 = scmp.lt.s32.totalorder %s633_s29, %s633_s29 }
  0x43   : > { %p6685_p6 = scmp.lt.s32.totalorder %s6683_s6, %s6676_s7 }
  0x44   : > { %p6679_p8 = pnand %p6677_p7, %p7416_p0 }
  0x45   : > { %p6686_p5 = por %p6685_p6, %p6684_p9 }
  0x46   : > { %p6680_p11 = pneg %p6679_p8 }
  0x48   : > { %p6687_p10 = pnand %p6686_p5, %p6680_p11 }
  0x4a   : > { %6690 = shalt.err (!%p6687_p10)
}
  0x4b   : > { %5992 = dma.hbm_to_vmem [thread:$0]  (!%p7400_p12), %s8977_s0, 16, %s633_s29, [#allocation7]  }
  0x4c   : > { %s8979_s27 = sld [smem:[#allocation52_spill]] }
  0x52   : > { %s6691_s28 = scalar_lea.hbm %s8979_s27, 16 }
  0x53   : > { %p6692_p13 = scmp.ne.s32.totalorder %s8979_s27, %s6691_s28  ;;  %p6698_p5 = scmp.lt.u32.totalorder %s6691_s28, %s8979_s27 }
  0x55   : > { %p6694_p1 = pnand %p6692_p13, %p7416_p0 }
  0x57   : > { %p6695_p6 = pneg %p6694_p1 }
  0x59   : > { %p6700_p9 = pnand %p6698_p5, %p6695_p6 }
  0x5b   : > { %6703 = shalt.err (!%p6700_p9)
}
  0x5c   : > { %s6704_s29 = scalar_lea.vmem %s7404_s26, 16  ;;  %s6711_s22 = scalar_lea.vmem %s7404_s26, 32 }
  0x5d   : > { %p6705_p10 = scmp.ne.s32.totalorder %s7404_s26, %s6704_s29  ;;  %p6712_p4 = scmp.lt.s32.totalorder %s7404_s26, %s7404_s26 }
  0x5e   : > { %p6713_p7 = scmp.lt.s32.totalorder %s6711_s22, %s6704_s29 }
  0x5f   : > { %p6707_p2 = pnand %p6705_p10, %p7416_p0 }
  0x60   : > { %p6714_p8 = por %p6713_p7, %p6712_p4 }
  0x61   : > { %p6708_p3 = pneg %p6707_p2 }
  0x63   : > { %p6715_p11 = pnand %p6714_p8, %p6708_p3 }
  0x65   : > { %6718 = shalt.err (!%p6715_p11)
}
  0x66   : > { %5998 = dma.hbm_to_vmem [thread:$0]  (!%p7400_p12), %s8979_s27, 16, %s7404_s26, [#allocation10]  }
  0x67   : > { %s8980_s25 = sld [smem:[#allocation54_spill]] }
  0x6d   : > { %s6719_s9 = scalar_lea.hbm %s8980_s25, 16 }
  0x6e   : > { %p6720_p13 = scmp.ne.s32.totalorder %s8980_s25, %s6719_s9  ;;  %p6726_p5 = scmp.lt.u32.totalorder %s6719_s9, %s8980_s25 }
  0x70   : > { %p6722_p1 = pnand %p6720_p13, %p7416_p0 }
  0x72   : > { %p6723_p6 = pneg %p6722_p1 }
  0x74   : > { %p6728_p9 = pnand %p6726_p5, %p6723_p6 }
  0x76   : > { %6731 = shalt.err (!%p6728_p9)
}
  0x77   : > { %s6732_s26 = scalar_lea.vmem %s7406_s4, 16  ;;  %s6739_s30 = scalar_lea.vmem %s7406_s4, 32 }
  0x78   : > { %p6733_p10 = scmp.ne.s32.totalorder %s7406_s4, %s6732_s26  ;;  %p6740_p4 = scmp.lt.s32.totalorder %s7406_s4, %s7406_s4 }
  0x79   : > { %p6741_p7 = scmp.lt.s32.totalorder %s6739_s30, %s6732_s26 }
  0x7a   : > { %p6735_p2 = pnand %p6733_p10, %p7416_p0 }
  0x7b   : > { %p6742_p8 = por %p6741_p7, %p6740_p4 }
  0x7c   : > { %p6736_p3 = pneg %p6735_p2 }
  0x7e   : > { %p6743_p11 = pnand %p6742_p8, %p6736_p3 }
  0x80   : > { %6746 = shalt.err (!%p6743_p11)
}
  0x81   : > { %6004 = dma.hbm_to_vmem [thread:$0]  (!%p7400_p12), %s8980_s25, 16, %s7406_s4, [#allocation13]  }
  0x82   : > { %s7182_s1 = smov [#allocation15]   ;;  %s7183_s7 = smov [#allocation18]  }
  0x83   : > { %s718_s9 = sshll.u32 %s7182_s1, 4  ;;  %s744_s6 = sshll.u32 %s7183_s7, 4  ;;  %s719_s9 = int_to_ptr.vmem [resolvable:$true] %s718_s9  ;;  %s745_s6 = int_to_ptr.vmem [resolvable:$true] %s744_s6 }
  0x84   : > { %s8981_s13 = sld [smem:[#allocation55_spill]] }
  0x8a   : > { %s6747_s26 = scalar_lea.hbm %s8981_s13, 32 }
  0x8b   : > { %p6748_p13 = scmp.ne.s32.totalorder %s8981_s13, %s6747_s26  ;;  %p6754_p5 = scmp.lt.u32.totalorder %s6747_s26, %s8981_s13 }
  0x8d   : > { %p6750_p1 = pnand %p6748_p13, %p7416_p0 }
  0x8f   : > { %p6751_p6 = pneg %p6750_p1 }
  0x91   : > { %p6756_p9 = pnand %p6754_p5, %p6751_p6 }
  0x93   : > { %6759 = shalt.err (!%p6756_p9)
}
  0x94   : > { %s6760_s4 = scalar_lea.vmem %s719_s9, 32  ;;  %p6768_p4 = scmp.lt.s32.totalorder %s719_s9, %s719_s9 }
  0x95   : > { %p6761_p10 = scmp.ne.s32.totalorder %s719_s9, %s6760_s4  ;;  %p6769_p7 = scmp.lt.s32.totalorder %s6760_s4, %s6760_s4 }
  0x97   : > { %p6763_p2 = pnand %p6761_p10, %p7416_p0  ;;  %p6770_p8 = por %p6769_p7, %p6768_p4 }
  0x99   : > { %p6764_p3 = pneg %p6763_p2 }
  0x9b   : > { %p6771_p11 = pnand %p6770_p8, %p6764_p3 }
  0x9d   : > { %6774 = shalt.err (!%p6771_p11)
}
  0x9e   : > { %s8944_s0 = smov 16   ;;  %s8946_s3 = smov 1  }
  0x9f   : > { %6010 = dma.hbm_to_vmem [thread:$0]  (!%p7400_p12), %s8981_s13, 32, %s719_s9, [#allocation16], %s8944_s0, %s8944_s0, %s8946_s3  }
  0xa0   : > { %s8982_s15 = sld [smem:[#allocation56_spill]] }
  0xa6   : > { %s6775_s22 = scalar_lea.hbm %s8982_s15, 32 }
  0xa7   : > { %p6776_p13 = scmp.ne.s32.totalorder %s8982_s15, %s6775_s22  ;;  %p6782_p5 = scmp.lt.u32.totalorder %s6775_s22, %s8982_s15 }
  0xa9   : > { %p6778_p1 = pnand %p6776_p13, %p7416_p0 }
  0xab   : > { %p6779_p6 = pneg %p6778_p1 }
  0xad   : > { %p6784_p9 = pnand %p6782_p5, %p6779_p6 }
  0xaf   : > { %6787 = shalt.err (!%p6784_p9)
}
  0xb0   : > { %s6788_s27 = scalar_lea.vmem %s745_s6, 32  ;;  %p6796_p4 = scmp.lt.s32.totalorder %s745_s6, %s745_s6 }
  0xb1   : > { %p6789_p10 = scmp.ne.s32.totalorder %s745_s6, %s6788_s27  ;;  %p6797_p7 = scmp.lt.s32.totalorder %s6788_s27, %s6788_s27 }
  0xb3   : > { %p6791_p2 = pnand %p6789_p10, %p7416_p0  ;;  %p6798_p8 = por %p6797_p7, %p6796_p4 }
  0xb5   : > { %p6792_p3 = pneg %p6791_p2 }
  0xb7   : > { %p6799_p11 = pnand %p6798_p8, %p6792_p3 }
  0xb9   : > { %6802 = shalt.err (!%p6799_p11)
}
  0xba   : > { %6016 = dma.hbm_to_vmem [thread:$0]  (!%p7400_p12), %s8982_s15, 32, %s745_s6, [#allocation19], %s8944_s0, %s8944_s0, %s8946_s3  }
  0xbb   : > { %s7186_s7 = smov [#allocation21]   ;;  %s7187_s22 = smov [#allocation24]  }
  0xbc   : > { %s776_s29 = sshll.u32 %s7186_s7, 4  ;;  %s802_s26 = sshll.u32 %s7187_s22, 4  ;;  %s777_s29 = int_to_ptr.vmem [resolvable:$true] %s776_s29  ;;  %s803_s26 = int_to_ptr.vmem [resolvable:$true] %s802_s26 }
  0xbd   : > { %s8983_s19 = sld [smem:[#allocation57_spill]] }
  0xc3   : > { %s6803_s4 = scalar_lea.hbm %s8983_s19, 32 }
  0xc4   : > { %p6804_p13 = scmp.ne.s32.totalorder %s8983_s19, %s6803_s4  ;;  %p6810_p5 = scmp.lt.u32.totalorder %s6803_s4, %s8983_s19 }
  0xc6   : > { %p6806_p1 = pnand %p6804_p13, %p7416_p0 }
  0xc8   : > { %p6807_p6 = pneg %p6806_p1 }
  0xca   : > { %p6812_p9 = pnand %p6810_p5, %p6807_p6 }
  0xcc   : > { %6815 = shalt.err (!%p6812_p9)
}
  0xcd   : > { %s6816_s6 = scalar_lea.vmem %s777_s29, 32  ;;  %p6824_p4 = scmp.lt.s32.totalorder %s777_s29, %s777_s29 }
  0xce   : > { %p6817_p10 = scmp.ne.s32.totalorder %s777_s29, %s6816_s6  ;;  %p6825_p7 = scmp.lt.s32.totalorder %s6816_s6, %s6816_s6 }
  0xd0   : > { %p6819_p2 = pnand %p6817_p10, %p7416_p0  ;;  %p6826_p8 = por %p6825_p7, %p6824_p4 }
  0xd2   : > { %p6820_p3 = pneg %p6819_p2 }
  0xd4   : > { %p6827_p11 = pnand %p6826_p8, %p6820_p3 }
  0xd6   : > { %6830 = shalt.err (!%p6827_p11)
}
  0xd7   : > { %6022 = dma.hbm_to_vmem [thread:$0]  (!%p7400_p12), %s8983_s19, 32, %s777_s29, [#allocation22], %s8944_s0, %s8944_s0, %s8946_s3  }
  0xd8   : > { %s8984_s21 = sld [smem:[#allocation58_spill]] }
  0xde   : > { %s6831_s22 = scalar_lea.hbm %s8984_s21, 32 }
  0xdf   : > { %p6832_p13 = scmp.ne.s32.totalorder %s8984_s21, %s6831_s22  ;;  %p6838_p5 = scmp.lt.u32.totalorder %s6831_s22, %s8984_s21 }
  0xe1   : > { %p6834_p1 = pnand %p6832_p13, %p7416_p0 }
  0xe3   : > { %p6835_p6 = pneg %p6834_p1 }
  0xe5   : > { %p6840_p9 = pnand %p6838_p5, %p6835_p6 }
  0xe7   : > { %6843 = shalt.err (!%p6840_p9)
}
  0xe8   : > { %s6844_s9 = scalar_lea.vmem %s803_s26, 32  ;;  %p6852_p4 = scmp.lt.s32.totalorder %s803_s26, %s803_s26 }
  0xe9   : > { %p6845_p10 = scmp.ne.s32.totalorder %s803_s26, %s6844_s9  ;;  %p6853_p7 = scmp.lt.s32.totalorder %s6844_s9, %s6844_s9 }
  0xeb   : > { %p6847_p2 = pnand %p6845_p10, %p7416_p0  ;;  %p6854_p8 = por %p6853_p7, %p6852_p4 }
  0xed   : > { %p6848_p3 = pneg %p6847_p2 }
  0xef   : > { %p6855_p11 = pnand %p6854_p8, %p6848_p3 }
  0xf1   : > { %6858 = shalt.err (!%p6855_p11)
}
  0xf2   : > { %6028 = dma.hbm_to_vmem [thread:$0]  (!%p7400_p12), %s8984_s21, 32, %s803_s26, [#allocation25], %s8944_s0, %s8944_s0, %s8946_s3  }
  0xf3   : > { %s7188_s13 = smov [#allocation3]   ;;  %s7189_s1 = smov [#allocation8]  }
  0xf4   : > { %s621_s25 = sshll.u32 %s7188_s13, 4  ;;  %s651_s7 = sshll.u32 %s7189_s1, 4  ;;  %s622_s25 = int_to_ptr.vmem [resolvable:$true] %s621_s25  ;;  %s652_s7 = int_to_ptr.vmem [resolvable:$true] %s651_s7 }
  0xf5   : > { %s8985_s28 = sld [smem:[#allocation46_spill]] }
  0xfb   : > { %s6859_s4 = scalar_lea.hbm %s8985_s28, 64 }
  0xfc   : > { %p6860_p13 = scmp.ne.s32.totalorder %s8985_s28, %s6859_s4  ;;  %p6866_p5 = scmp.lt.u32.totalorder %s6859_s4, %s8985_s28 }
  0xfe   : > { %p6862_p1 = pnand %p6860_p13, %p7416_p0 }
 0x100   : > { %p6863_p6 = pneg %p6862_p1 }
 0x102   : > { %p6868_p9 = pnand %p6866_p5, %p6863_p6 }
 0x104   : > { %6871 = shalt.err (!%p6868_p9)
}
 0x105   : > { %s6872_s26 = scalar_lea.vmem %s622_s25, 64  ;;  %p6880_p4 = scmp.lt.s32.totalorder %s622_s25, %s622_s25 }
 0x106   : > { %p6873_p10 = scmp.ne.s32.totalorder %s622_s25, %s6872_s26  ;;  %p6881_p7 = scmp.lt.s32.totalorder %s6872_s26, %s6872_s26 }
 0x108   : > { %p6875_p2 = pnand %p6873_p10, %p7416_p0  ;;  %p6882_p8 = por %p6881_p7, %p6880_p4 }
 0x10a   : > { %p6876_p3 = pneg %p6875_p2 }
 0x10c   : > { %p6883_p11 = pnand %p6882_p8, %p6876_p3 }
 0x10e   : > { %6886 = shalt.err (!%p6883_p11)
}
 0x10f   : > { %5989 = dma.hbm_to_vmem [thread:$0]  (!%p7400_p12), %s8985_s28, 64, %s622_s25, [#allocation4]  }
 0x110   : > { %s8986_s22 = sld [smem:[#allocation51_spill]] }
 0x116   : > { %s6887_s30 = scalar_lea.hbm %s8986_s22, 256 }
 0x117   : > { %p6888_p13 = scmp.ne.s32.totalorder %s8986_s22, %s6887_s30  ;;  %p6894_p5 = scmp.lt.u32.totalorder %s6887_s30, %s8986_s22 }
 0x119   : > { %p6890_p1 = pnand %p6888_p13, %p7416_p0 }
 0x11b   : > { %p6891_p6 = pneg %p6890_p1 }
 0x11d   : > { %p6896_p9 = pnand %p6894_p5, %p6891_p6 }
 0x11f   : > { %6899 = shalt.err (!%p6896_p9)
}
 0x120   : > { %s6900_s26 = scalar_lea.vmem %s652_s7, 256  ;;  %p6908_p4 = scmp.lt.s32.totalorder %s652_s7, %s652_s7 }
 0x121   : > { %p6901_p10 = scmp.ne.s32.totalorder %s652_s7, %s6900_s26  ;;  %p6909_p7 = scmp.lt.s32.totalorder %s6900_s26, %s6900_s26 }
 0x123   : > { %p6903_p2 = pnand %p6901_p10, %p7416_p0  ;;  %p6910_p8 = por %p6909_p7, %p6908_p4 }
 0x125   : > { %p6904_p3 = pneg %p6903_p2 }
 0x127   : > { %p6911_p11 = pnand %p6910_p8, %p6904_p3 }
 0x129   : > { %6914 = shalt.err (!%p6911_p11)
}
 0x12a   : > { %s7190_s25 = smov 64   ;;  %s7191_s6 = smov 4  }
 0x12b   : > { %5995 = dma.hbm_to_vmem [thread:$0]  (!%p7400_p12), %s8986_s22, 256, %s652_s7, [#allocation7], %s7190_s25, %s7190_s25, %s7191_s6  }
 0x12c   : > { %s7192_s1 = smov [#allocation11]   ;;  %s7193_s4 = smov [#allocation14]  }
 0x12d   : > { %s675_s30 = sshll.u32 %s7192_s1, 4  ;;  %s702_s27 = sshll.u32 %s7193_s4, 4  ;;  %s676_s30 = int_to_ptr.vmem [resolvable:$true] %s675_s30  ;;  %s703_s27 = int_to_ptr.vmem [resolvable:$true] %s702_s27 }
 0x12e   : > { %s8987_s26 = sld [smem:[#allocation53_spill]] }
 0x134   : > { %s6915_s0 = scalar_lea.hbm %s8987_s26, 256 }
 0x135   : > { %p6916_p13 = scmp.ne.s32.totalorder %s8987_s26, %s6915_s0  ;;  %p6922_p5 = scmp.lt.u32.totalorder %s6915_s0, %s8987_s26 }
 0x137   : > { %p6918_p1 = pnand %p6916_p13, %p7416_p0 }
 0x139   : > { %p6919_p6 = pneg %p6918_p1 }
 0x13b   : > { %p6924_p9 = pnand %p6922_p5, %p6919_p6 }
 0x13d   : > { %6927 = shalt.err (!%p6924_p9)
}
 0x13e   : > { %s6928_s7 = scalar_lea.vmem %s676_s30, 256  ;;  %p6936_p4 = scmp.lt.s32.totalorder %s676_s30, %s676_s30 }
 0x13f   : > { %p6929_p10 = scmp.ne.s32.totalorder %s676_s30, %s6928_s7  ;;  %p6937_p7 = scmp.lt.s32.totalorder %s6928_s7, %s6928_s7 }
 0x141   : > { %p6931_p2 = pnand %p6929_p10, %p7416_p0  ;;  %p6938_p8 = por %p6937_p7, %p6936_p4 }
 0x143   : > { %p6932_p3 = pneg %p6931_p2 }
 0x145   : > { %p6939_p11 = pnand %p6938_p8, %p6932_p3 }
 0x147   : > { %6942 = shalt.err (!%p6939_p11)
}
 0x148   : > { %6001 = dma.hbm_to_vmem [thread:$0]  (!%p7400_p12), %s8987_s26, 256, %s676_s30, [#allocation10], %s7190_s25, %s7190_s25, %s7191_s6  }
 0x149   : > { %s6943_s28 = scalar_lea.hbm %s8904_s11, 32 }
 0x14a   : > { %p6944_p13 = scmp.ne.s32.totalorder %s8904_s11, %s6943_s28  ;;  %p6950_p5 = scmp.lt.u32.totalorder %s6943_s28, %s8904_s11 }
 0x14c   : > { %p6946_p1 = pnand %p6944_p13, %p7416_p0 }
 0x14e   : > { %p6947_p6 = pneg %p6946_p1 }
 0x150   : > { %p6952_p9 = pnand %p6950_p5, %p6947_p6 }
 0x152   : > { %6955 = shalt.err (!%p6952_p9)
}
 0x153   : > { %s6956_s9 = scalar_lea.vmem %s703_s27, 32  ;;  %p6964_p4 = scmp.lt.s32.totalorder %s703_s27, %s703_s27 }
 0x154   : > { %p6957_p10 = scmp.ne.s32.totalorder %s703_s27, %s6956_s9  ;;  %p6965_p7 = scmp.lt.s32.totalorder %s6956_s9, %s6956_s9 }
 0x156   : > { %p6959_p2 = pnand %p6957_p10, %p7416_p0  ;;  %p6966_p8 = por %p6965_p7, %p6964_p4 }
 0x158   : > { %p6960_p3 = pneg %p6959_p2 }
 0x15a   : > { %p6967_p11 = pnand %p6966_p8, %p6960_p3 }
 0x15c   : > { %6970 = shalt.err (!%p6967_p11)
}
 0x15d   : > { %s8988_s25 = smov 1   ;;  %s8989_s6 = smov 16  }
 0x15e   : > { %6007 = dma.hbm_to_vmem [thread:$0]  (!%p7400_p12), %s8904_s11, 32, %s703_s27, [#allocation13], %s8989_s6, %s8989_s6, %s8988_s25  }
 0x15f   : > { %s7194_s7 = smov [#allocation17]   ;;  %s7195_s3 = smov [#allocation20]  }
 0x160   : > { %s731_s19 = sshll.u32 %s7194_s7, 4  ;;  %s760_s21 = sshll.u32 %s7195_s3, 4  ;;  %s732_s19 = int_to_ptr.vmem [resolvable:$true] %s731_s19  ;;  %s761_s21 = int_to_ptr.vmem [resolvable:$true] %s760_s21 }
 0x161   : > { %s6971_s13 = scalar_lea.hbm %s8907_s14, 32 }
 0x162   : > { %p6972_p13 = scmp.ne.s32.totalorder %s8907_s14, %s6971_s13  ;;  %p6978_p5 = scmp.lt.u32.totalorder %s6971_s13, %s8907_s14 }
 0x164   : > { %p6974_p1 = pnand %p6972_p13, %p7416_p0 }
 0x166   : > { %p6975_p6 = pneg %p6974_p1 }
 0x168   : > { %p6980_p9 = pnand %p6978_p5, %p6975_p6 }
 0x16a   : > { %6983 = shalt.err (!%p6980_p9)
}
 0x16b   : > { %s6984_s27 = scalar_lea.vmem %s732_s19, 32  ;;  %p6992_p4 = scmp.lt.s32.totalorder %s732_s19, %s732_s19 }
 0x16c   : > { %p6985_p10 = scmp.ne.s32.totalorder %s732_s19, %s6984_s27  ;;  %p6993_p7 = scmp.lt.s32.totalorder %s6984_s27, %s6984_s27 }
 0x16e   : > { %p6987_p2 = pnand %p6985_p10, %p7416_p0  ;;  %p6994_p8 = por %p6993_p7, %p6992_p4 }
 0x170   : > { %p6988_p3 = pneg %p6987_p2 }
 0x172   : > { %p6995_p11 = pnand %p6994_p8, %p6988_p3 }
 0x174   : > { %6998 = shalt.err (!%p6995_p11)
}
 0x175   : > { %6013 = dma.hbm_to_vmem [thread:$0]  (!%p7400_p12), %s8907_s14, 32, %s732_s19, [#allocation16], %s8989_s6, %s8989_s6, %s8988_s25  }
 0x176   : > { %s6999_s0 = scalar_lea.hbm %s8910_s17, 32 }
 0x177   : > { %p7000_p13 = scmp.ne.s32.totalorder %s8910_s17, %s6999_s0  ;;  %p7006_p5 = scmp.lt.u32.totalorder %s6999_s0, %s8910_s17 }
 0x179   : > { %p7002_p1 = pnand %p7000_p13, %p7416_p0 }
 0x17b   : > { %p7003_p6 = pneg %p7002_p1 }
 0x17d   : > { %p7008_p9 = pnand %p7006_p5, %p7003_p6 }
 0x17f   : > { %7011 = shalt.err (!%p7008_p9)
}
 0x180   : > { %s7012_s4 = scalar_lea.vmem %s761_s21, 32  ;;  %p7020_p4 = scmp.lt.s32.totalorder %s761_s21, %s761_s21 }
 0x181   : > { %p7013_p10 = scmp.ne.s32.totalorder %s761_s21, %s7012_s4  ;;  %p7021_p7 = scmp.lt.s32.totalorder %s7012_s4, %s7012_s4 }
 0x183   : > { %p7015_p2 = pnand %p7013_p10, %p7416_p0  ;;  %p7022_p8 = por %p7021_p7, %p7020_p4 }
 0x185   : > { %p7016_p3 = pneg %p7015_p2 }
 0x187   : > { %p7023_p11 = pnand %p7022_p8, %p7016_p3 }
 0x189   : > { %7026 = shalt.err (!%p7023_p11)
}
 0x18a   : > { %6019 = dma.hbm_to_vmem [thread:$0]  (!%p7400_p12), %s8910_s17, 32, %s761_s21, [#allocation19], %s8989_s6, %s8989_s6, %s8988_s25  }
 0x18b   : > { %s7196_s27 = smov [#allocation23]   ;;  %s7197_s29 = smov [#allocation26]  }
 0x18c   : > { %s789_s30 = sshll.u32 %s7196_s27, 4  ;;  %s819_s7 = sshll.u32 %s7197_s29, 4  ;;  %s790_s30 = int_to_ptr.vmem [resolvable:$true] %s789_s30  ;;  %s820_s7 = int_to_ptr.vmem [resolvable:$true] %s819_s7 }
 0x18d   : > { %s7027_s28 = scalar_lea.hbm %s8913_s20, 32 }
 0x18e   : > { %p7028_p13 = scmp.ne.s32.totalorder %s8913_s20, %s7027_s28  ;;  %p7034_p5 = scmp.lt.u32.totalorder %s7027_s28, %s8913_s20 }
 0x190   : > { %p7030_p1 = pnand %p7028_p13, %p7416_p0 }
 0x192   : > { %p7031_p6 = pneg %p7030_p1 }
 0x194   : > { %p7036_p9 = pnand %p7034_p5, %p7031_p6 }
 0x196   : > { %7039 = shalt.err (!%p7036_p9)
}
 0x197   : > { %s7040_s21 = scalar_lea.vmem %s790_s30, 32  ;;  %p7048_p4 = scmp.lt.s32.totalorder %s790_s30, %s790_s30 }
 0x198   : > { %p7041_p10 = scmp.ne.s32.totalorder %s790_s30, %s7040_s21  ;;  %p7049_p7 = scmp.lt.s32.totalorder %s7040_s21, %s7040_s21 }
 0x19a   : > { %p7043_p2 = pnand %p7041_p10, %p7416_p0  ;;  %p7050_p8 = por %p7049_p7, %p7048_p4 }
 0x19c   : > { %p7044_p3 = pneg %p7043_p2 }
 0x19e   : > { %p7051_p11 = pnand %p7050_p8, %p7044_p3 }
 0x1a0   : > { %7054 = shalt.err (!%p7051_p11)
}
 0x1a1   : > { %6025 = dma.hbm_to_vmem [thread:$0]  (!%p7400_p12), %s8913_s20, 32, %s790_s30, [#allocation22], %s8989_s6, %s8989_s6, %s8988_s25  }
 0x1a2   : > { %s7055_s3 = scalar_lea.hbm %s8916_s23, 16 }
 0x1a3   : > { %p7056_p13 = scmp.ne.s32.totalorder %s8916_s23, %s7055_s3  ;;  %p7062_p5 = scmp.lt.u32.totalorder %s7055_s3, %s8916_s23 }
 0x1a5   : > { %p7058_p1 = pnand %p7056_p13, %p7416_p0 }
 0x1a7   : > { %p7059_p6 = pneg %p7058_p1 }
 0x1a9   : > { %p7064_p9 = pnand %p7062_p5, %p7059_p6 }
 0x1ab   : > { %7067 = shalt.err (!%p7064_p9)
}
 0x1ac   : > { %s7068_s1 = scalar_lea.vmem %s820_s7, 16  ;;  %s7075_s25 = scalar_lea.vmem %s820_s7, 32 }
 0x1ad   : > { %p7069_p10 = scmp.ne.s32.totalorder %s820_s7, %s7068_s1  ;;  %p7076_p4 = scmp.lt.s32.totalorder %s820_s7, %s820_s7 }
 0x1ae   : > { %p7077_p7 = scmp.lt.s32.totalorder %s7075_s25, %s7068_s1 }
 0x1af   : > { %p7071_p2 = pnand %p7069_p10, %p7416_p0 }
 0x1b0   : > { %p7078_p8 = por %p7077_p7, %p7076_p4 }
 0x1b1   : > { %p7072_p3 = pneg %p7071_p2 }
 0x1b3   : > { %p7079_p11 = pnand %p7078_p8, %p7072_p3 }
 0x1b5   : > { %7082 = shalt.err (!%p7079_p11)
}
 0x1b6   : > { %6031 = dma.hbm_to_vmem [thread:$0]  (!%p7400_p12), %s8916_s23, 16, %s820_s7, [#allocation25]  }
 0x1b7   : > { %p8990_p13 = scmp.ne.s32.totalorder %s8975_s5, 0 }
 0x1b8   : > { %p8991_p1 = scmp.eq.s32.totalorder (!%p8990_p13), %s7364_s24, 0 }
 0x1b9   : > { %843 = sbr.rel (%p8990_p13) target bundleno = 8376 (0x20b8), region = 120 }
 0x1c0   : > { %7128 = dma.done.wait (%p8991_p1), [#allocation4], 64   ;;  %p8992_p0 = pmov %p8991_p1 }
 0x1c2   : > { %7130 = vsyncadd (%p8992_p0), [#allocation4], 4294967232  ;;  %p8993_p6 = pmov %p8992_p0 }
 0x1c3   : > { %p8994_p5 = pmov %p8992_p0 }
 0x1c4   : > { %7132 = dma.done.wait (%p8993_p6), [#allocation7], 272  }
 0x1c5   : > { %7134 = vsyncadd (%p8994_p5), [#allocation7], 4294967024  ;;  %p8995_p9 = pmov %p8992_p0 }
 0x1c6   : > { %p8996_p12 = pmov %p8992_p0 }
 0x1c7   : > { %7136 = dma.done.wait (%p8995_p9), [#allocation10], 272  }
 0x1c8   : > { %7138 = vsyncadd (%p8996_p12), [#allocation10], 4294967024  ;;  %p8997_p10 = pmov %p8992_p0 }
 0x1c9   : > { %p8998_p2 = pmov %p8992_p0 }
 0x1ca   : > { %7140 = dma.done.wait (%p8997_p10), [#allocation13], 48  }
 0x1cb   : > { %7142 = vsyncadd (%p8998_p2), [#allocation13], 4294967248  ;;  %p8999_p3 = pmov %p8992_p0 }
 0x1cc   : > { %p9000_p4 = pmov %p8992_p0 }
 0x1cd   : > { %7144 = dma.done.wait (%p8999_p3), [#allocation16], 64  }
 0x1ce   : > { %7146 = vsyncadd (%p9000_p4), [#allocation16], 4294967232  ;;  %p9001_p7 = pmov %p8992_p0 }
 0x1cf   : > { %p9002_p8 = pmov %p8992_p0 }
 0x1d0   : > { %7148 = dma.done.wait (%p9001_p7), [#allocation19], 64  }
 0x1d1   : > { %7150 = vsyncadd (%p9002_p8), [#allocation19], 4294967232  ;;  %p9003_p11 = pmov %p8992_p0 }
 0x1d2   : > { %p9004_p13 = pmov %p8992_p0 }
 0x1d3   : > { %7152 = dma.done.wait (%p9003_p11), [#allocation22], 64  }
 0x1d4   : > { %7154 = vsyncadd (%p9004_p13), [#allocation22], 4294967232  ;;  %p9005_p1 = pmov %p8992_p0 }
 0x1d6   : > { %7156 = dma.done.wait (%p9005_p1), [#allocation25], 48  }
 0x1d7   : > { %7158 = vsyncadd (%p8992_p0), [#allocation25], 4294967248  ;;  %p966_p6 = scmp.lt.s32.totalorder %s7364_s24, 1  ;;  %vm993_vm0 = vcmask 1043456   ;;  %s9006_s4 = sld [smem:[#allocation45_spill]]  ;;  %vm986_vm1 = vcmask 64512  }
 0x1d8   : > { %v978_v0 = vld [vmem:[#allocation3] sm:$0xf]  ;;  %v6399_v8 = vld [vmem:[#allocation8] sm:$0xff]   ;;  %v6400_v9 = vld [vmem:[#allocation8 + $0x8] sm:$0xff]   ;;  %s9007_s27 = sld [smem:[#allocation48_spill]]  ;;  %vm1088_vm2 = vcmask 261120  }
 0x1d9   : > { %s967_s5 = scalar_select %p966_p6, %s7364_s24, 1  ;;  %5899 = vmatprep.subr.msk.bf16.mxu0 %vm993_vm0, %v978_v0  ;;  %v995_v3 = vsel %vm993_vm0, %v978_v0, 0  ;;  %v5265_v10 = vld [vmem:[#allocation6] ss:$0 sm:$0xff]  ;;  %v5268_v29 = vld [vmem:[#allocation9] ss:$0 sm:$0xff] }
 0x1da   : > { %5576 = vmatpush3.bf16.msra.mxu0 %v995_v3  ;;  %s7198_s1 = smov 112   ;;  %s7199_s25 = smov 120   ;;  %vm1992_vm3 = vcmask 130048   ;;  %vm1997_vm4 = vcmask 195584   ;;  %vm7207_vm5 = vmmov 0   ;;  %vm5003_vm6 = vcmask 24576  }
 0x1db   : > { %s5416_s8 = sshll.u32 %s967_s5, 5  ;;  %5581 = vmatprep.subr.bf16.mxu0 %v6399_v8  ;;  %s7200_s6 = smov 104  }
 0x1dc   : > { %s7201_s30 = smov 96   ;;  %s7202_s5 = smov 64  }
 0x1dd   : > { %s970_s21 = scalar_lea.vmem %s9006_s4, %s5416_s8  ;;  %s9008_s7 = sld [smem:[#allocation49_spill]] }
 0x1de   : > { %v972_v1 = vld [vmem:[%s970_s21] sm:$0xff]  ;;  %v973_v2 = vld [vmem:[%s970_s21 + $0x8] sm:$0xff]  ;;  %v974_v5 = vld [vmem:[%s970_s21 + $0x10] sm:$0xff]  ;;  %s7203_s28 = smov 8   ;;  %s7204_s13 = smov 16  }
 0x1df   : > { %v976_v4 = vpack.c.bf16 %v973_v2, %v972_v1  ;;  %v975_v6 = vld [vmem:[%s970_s21 + $0x18] sm:$0xff]  ;;  %v1048_v14 = vld [vmem:[%s9007_s27 + $0x10] sm:$0xff]  ;;  %v1046_v18 = vld [vmem:[%s9007_s27] sm:$0xff]  ;;  %s7205_s15 = smov 24   ;;  %s9010_s29 = sld [smem:[#allocation50_spill]] }
 0x1e0   : > { %v977_v7 = vpack.c.bf16 %v975_v6, %v974_v5  ;;  %v1049_v17 = vld [vmem:[%s9007_s27 + $0x18] sm:$0xff]  ;;  %v1047_v21 = vld [vmem:[%s9007_s27 + $0x8] sm:$0xff]  ;;  %s9012_s8 = sld [smem:[#allocation38_spill]]  ;;  %s9013_s2 = sld [smem:[#allocation43_spill]] }
 0x1e1   : > { %5577 = vmatprep.mubr.msk.bf16.mxu0 %vm986_vm1, %v976_v4  ;;  %s5413_s21 = sshll.u32 %s7364_s24, 4  ;;  %s7209_s24 = smov [#allocation27]  }
 0x1e2   : > { %5578 = vmatmul.mubr.msk.bf16.vlgmr.msra.gmra.mrb[0].mxu0 %vm986_vm1, %v977_v7 }
 0x1e3   : > { %5582 = vmatpush3.bf16.msra.mxu0 %v6399_v8  ;;  %s9009_s4 = smov %s9008_s7 }
 0x1e4   : > { %5583 = vmatprep.subr.bf16.mxu0 %v6400_v9 }
 0x1e6   : > { %p9015_p9 = scmp.ne.s32.totalorder %s9013_s2, 0 }
 0x1e7   : > { %5584 = vmatpush3.bf16.msra.mxu0 %v6400_v9 }
 0x2b5   : > { %v5579_v11 = vpop.f32.mrb[0].mxu0 }
 0x2b6   : > { %v1040_v12 = vadd.f32 %v5579_v11, %v5265_v10  ;;  %v1031_v13 = vpop.f32.mrb[1].mxu0 }
 0x2b7   : > { %v1032_v15 = vadd.f32 %v5265_v10, %v1031_v13  ;;  %v5580_v16 = vpop.f32.mrb[2].mxu0 }
 0x2b8   : > { %v1043_v19 = vadd.f32 %v5580_v16, %v5265_v10  ;;  %v1034_v20 = vpop.f32.mrb[3].mxu0  ;;  %v1052_v23 = vadd.f32 %v1048_v14, %v1040_v12 }
 0x2b9   : > { %v1035_v22 = vadd.f32 %v5265_v10, %v1034_v20  ;;  %v1050_v25 = vadd.f32 %v1046_v18, %v1032_v15 }
 0x2ba   : > { %v1053_v24 = vadd.f32 %v1049_v17, %v1043_v19 }
 0x2bb   : > { %v1051_v26 = vadd.f32 %v1047_v21, %v1035_v22 }
 0x2bc   : > { %v1069_v27 = vpack.c.bf16 %v1053_v24, %v1052_v23 }
 0x2bd   : > { %v1068_v28 = vpack.c.bf16 %v1051_v26, %v1050_v25 }
 0x2bf   : > { %5585 = vmatprep.mubr.msk.bf16.mxu0 %vm1088_vm2, %v1068_v28 }
 0x2c0   : > { %5586 = vmatmul.mubr.msk.bf16.vlgmr.msra.gmra.mrb[4].mxu0 %vm1088_vm2, %v1069_v27 }
 0x393   : > { %v5587_v30 = vpop.f32.mrb[4].mxu0 }
 0x394   : > { %v1129_v31 = vpop.f32.mrb[5].mxu0  ;;  %v1138_v34 = vadd.f32 %v5587_v30, %v5268_v29 }
 0x395   : > { %v1130_v32 = vadd.f32 %v5268_v29, %v1129_v31  ;;  %v5588_v33 = vpop.f32.mrb[6].mxu0 }
 0x396   : > { %v1141_v35 = vadd.f32 %v5588_v33, %v5268_v29  ;;  %v1132_v36 = vpop.f32.mrb[7].mxu0  ;;  %v7779_v44 = vmul.f32 0.35355338, %v1138_v34 }
 0x397   : > { %v1144_v37 = vmul.f32 0.35355338, %v1130_v32  ;;  %v1133_v38 = vadd.f32 %v5268_v29, %v1132_v36 }
 0x398   : > { %v6134_v39 = vpack.i.bf16 %v1141_v35, %v1138_v34  ;;  %v7775_v40 = vpack.c.bf16 %v1141_v35, %v1138_v34  ;;  %v7781_v45 = vmul.f32 0.35355338, %v1141_v35 }
 0x399   : > { %v1145_v41 = vmul.f32 0.35355338, %v1133_v38  ;;  %v6139_v42 = vpack.i.bf16 %v1133_v38, %v1130_v32  ;;  %v7777_v43 = vpack.c.bf16 %v1133_v38, %v1130_v32 }
 0x39a   : > { %v6164_v48 = vpack.i.bf16 %v7781_v45, %v7779_v44  ;;  %v1229_v49 = vpack.c.bf16 %v7781_v45, %v7779_v44 }
 0x39b   : > { %6140 = vrot.lane.b32.xlu1 %v6139_v42, %s7198_s1  ;;  %6130 = vrot.lane.b32.xlu0 %v6139_v42, %s7199_s25  ;;  %v1228_v46 = vpack.c.bf16 %v1145_v41, %v1144_v37  ;;  %v6159_v47 = vpack.i.bf16 %v1145_v41, %v1144_v37 }
 0x39d   : > { %5593 = vmatprep.mubr.msk.bf16.mxu0 %vm986_vm1, %v1228_v46 }
 0x39f   : > { %6145 = vrot.lane.b32.xlu1 %v6139_v42, %s7200_s6  ;;  %6135 = vrot.lane.b32.xlu0 %v6134_v39, %s7199_s25 }
 0x3a3   : > { %6155 = vrot.lane.b32.xlu1 %v6134_v39, %s7200_s6  ;;  %6150 = vrot.lane.b32.xlu0 %v6134_v39, %s7198_s1 }
 0x3a7   : > { %1246 = vrot.lane.b32.xlu0 %v7777_v43, %s7201_s30 }
 0x3ab   : > { %1248 = vrot.lane.b32.xlu0 %v7775_v40, %s7201_s30 }
 0x3af   : > { %6160 = vrot.lane.b32.xlu0 %v6159_v47, %s7199_s25 }
 0x40d   : > { %v6141_v50 = vpop.permute.xlu1 %6140  ;;  %v6131_v51 = vpop.permute.xlu0 %6130 }
 0x40e   : > { %v6143_v52 = vunpack.i.h.bf16 %v6141_v50  ;;  %v6142_v53 = vunpack.i.l.bf16 %v6141_v50  ;;  %v6133_v54 = vunpack.i.h.bf16 %v6131_v51  ;;  %v6132_v55 = vunpack.i.l.bf16 %v6131_v51 }
 0x410   : > { %v7799_v56 = vpack.c.bf16 %v6133_v54, %v6132_v55  ;;  %v7801_v57 = vpack.c.bf16 %v6143_v52, %v6142_v53  ;;  %v1066_v52 = vld [vmem:[%s9008_s7 + $0x10] sm:$0xff]  ;;  %v1064_v54 = vld [vmem:[%s9009_s4] sm:$0xff]  ;;  %s964_s7 = sand.u32 1, %s9012_s8  }
 0x411   : > { %v6136_v58 = vpop.permute.xlu0 %6135  ;;  %v6146_v61 = vpop.permute.xlu1 %6145 }
 0x412   : > { %v6138_v59 = vunpack.i.h.bf16 %v6136_v58  ;;  %v6137_v60 = vunpack.i.l.bf16 %v6136_v58  ;;  %1313 = vrot.lane.b32.xlu1 %v7799_v56, %s7201_s30  ;;  %1380 = vrot.lane.b32.xlu0 %v7801_v57, %s7201_s30  ;;  %v6148_v2 = vunpack.i.h.bf16 %v6146_v61  ;;  %v6147_v3 = vunpack.i.l.bf16 %v6146_v61 }
 0x414   : > { %v7807_v62 = vpack.c.bf16 %v6138_v59, %v6137_v60  ;;  %v7818_v10 = vpack.c.bf16 %v6148_v2, %v6147_v3  ;;  %v1065_v59 = vld [vmem:[%s9009_s4 + $0x8] sm:$0xff] }
 0x415   : > { %v6151_v63 = vpop.permute.xlu0 %6150  ;;  %v6156_v5 = vpop.permute.xlu1 %6155 }
 0x416   : > { %v6153_v0 = vunpack.i.h.bf16 %v6151_v63  ;;  %v6152_v1 = vunpack.i.l.bf16 %v6151_v63  ;;  %1315 = vrot.lane.b32.xlu1 %v7807_v62, %s7201_s30  ;;  %v6158_v8 = vunpack.i.h.bf16 %v6156_v5  ;;  %v6157_v9 = vunpack.i.l.bf16 %v6156_v5 }
 0x418   : > { %v7811_v4 = vpack.c.bf16 %v6153_v0, %v6152_v1  ;;  %v7824_v12 = vpack.c.bf16 %v6158_v8, %v6157_v9  ;;  %v1067_v1 = vld [vmem:[%s9009_s4 + $0x18] sm:$0xff] }
 0x419   : > { %v1247_v6 = vpop.permute.xlu0 %1246 }
 0x41a   : > { %6165 = vrot.lane.b32.xlu1 %v6164_v48, %s7199_s25  ;;  %5900 = vmatprep.subr.msk.bf16.mxu0 %vm986_vm1, %v1247_v6  ;;  %v1257_v7 = vsel %vm986_vm1, %v1247_v6, 0 }
 0x41b   : > { %1382 = vrot.lane.b32.xlu0 %v7811_v4, %s7201_s30  ;;  %5590 = vmatpush3.bf16.xpose.msra.mxu0 %v1257_v7 }
 0x41d   : > { %v1249_v11 = vpop.permute.xlu0 %1248 }
 0x41e   : > { %1447 = vrot.lane.b32.xlu1 %v7818_v10, %s7201_s30  ;;  %5901 = vmatprep.subr.msk.bf16.mxu0 %vm986_vm1, %v1249_v11  ;;  %v1260_v14 = vsel %vm986_vm1, %v1249_v11, 0 }
 0x41f   : > { %6170 = vrot.lane.b32.xlu0 %v6159_v47, %s7198_s1 }
 0x421   : > { %v6161_v13 = vpop.permute.xlu0 %6160 }
 0x422   : > { %1449 = vrot.lane.b32.xlu1 %v7824_v12, %s7201_s30  ;;  %v6163_v15 = vunpack.i.h.bf16 %v6161_v13  ;;  %v6162_v16 = vunpack.i.l.bf16 %v6161_v13 }
 0x423   : > { %6180 = vrot.lane.b32.xlu0 %v6159_v47, %s7200_s6  ;;  %5592 = vmatpush3.bf16.xpose.msra.mxu0 %v1260_v14 }
 0x424   : > { %v1230_v17 = vpack.c.bf16 %v6163_v15, %v6162_v16 }
 0x426   : > { %6175 = vrot.lane.b32.xlu1 %v6164_v48, %s7198_s1  ;;  %5601 = vmatprep.mubr.msk.bf16.mxu1 %vm986_vm1, %v1230_v17 }
 0x42a   : > { %6185 = vrot.lane.b32.xlu1 %v6164_v48, %s7200_s6  ;;  %5594 = vmatmul.mubr.msk.bf16.vlgmr.msra.gmra.mrb[8].mxu0 %vm986_vm1, %v1229_v49 }
 0x42e   : > { %1696 = vrot.lane.b32.xlu1 %v7777_v43, %s7202_s5 }
 0x484   : > { %v1314_v18 = vpop.permute.xlu1 %1313  ;;  %v1381_v19 = vpop.permute.xlu0 %1380 }
 0x485   : > { %5902 = vmatprep.subr.msk.bf16.mxu1 %vm986_vm1, %v1314_v18  ;;  %5904 = vmatprep.subr.msk.bf16.mxu0 %vm986_vm1, %v1381_v19  ;;  %v1324_v20 = vsel %vm986_vm1, %v1314_v18, 0  ;;  %v1391_v21 = vsel %vm986_vm1, %v1381_v19, 0 }
 0x486   : > { %5598 = vmatpush3.bf16.xpose.msra.mxu1 %v1324_v20  ;;  %5606 = vmatpush3.bf16.xpose.msra.mxu0 %v1391_v21 }
 0x488   : > { %v1316_v22 = vpop.permute.xlu1 %1315 }
 0x489   : > { %5903 = vmatprep.subr.msk.bf16.mxu1 %vm986_vm1, %v1316_v22  ;;  %v1327_v25 = vsel %vm986_vm1, %v1316_v22, 0 }
 0x48c   : > { %v6166_v23 = vpop.permute.xlu1 %6165 }
 0x48d   : > { %v1383_v24 = vpop.permute.xlu0 %1382  ;;  %v6168_v27 = vunpack.i.h.bf16 %v6166_v23  ;;  %v6167_v28 = vunpack.i.l.bf16 %v6166_v23 }
 0x48e   : > { %5905 = vmatprep.subr.msk.bf16.mxu0 %vm986_vm1, %v1383_v24  ;;  %5600 = vmatpush3.bf16.xpose.msra.mxu1 %v1327_v25  ;;  %v1394_v26 = vsel %vm986_vm1, %v1383_v24, 0 }
 0x48f   : > { %5608 = vmatpush3.bf16.xpose.msra.mxu0 %v1394_v26  ;;  %v1231_v33 = vpack.c.bf16 %v6168_v27, %v6167_v28 }
 0x490   : > { %v1448_v29 = vpop.permute.xlu1 %1447 }
 0x491   : > { %v6171_v30 = vpop.permute.xlu0 %6170  ;;  %5906 = vmatprep.subr.msk.bf16.mxu1 %vm986_vm1, %v1448_v29  ;;  %v1458_v37 = vsel %vm986_vm1, %v1448_v29, 0 }
 0x492   : > { %v6173_v31 = vunpack.i.h.bf16 %v6171_v30  ;;  %v6172_v32 = vunpack.i.l.bf16 %v6171_v30 }
 0x494   : > { %v1232_v34 = vpack.c.bf16 %v6173_v31, %v6172_v32  ;;  %v1450_v35 = vpop.permute.xlu1 %1449 }
 0x495   : > { %v6181_v36 = vpop.permute.xlu0 %6180  ;;  %5602 = vmatmul.mubr.msk.bf16.vlgmr.msra.gmra.mrb[0].mxu1 %vm986_vm1, %v1231_v33  ;;  %v1461_v47 = vsel %vm986_vm1, %v1450_v35, 0 }
 0x496   : > { %v6183_v38 = vunpack.i.h.bf16 %v6181_v36  ;;  %v6182_v39 = vunpack.i.l.bf16 %v6181_v36  ;;  %5609 = vmatprep.mubr.msk.bf16.mxu0 %vm986_vm1, %v1232_v34  ;;  %5614 = vmatpush3.bf16.xpose.msra.mxu1 %v1458_v37 }
 0x497   : > { %5907 = vmatprep.subr.msk.bf16.mxu1 %vm986_vm1, %v1450_v35 }
 0x498   : > { %v1234_v41 = vpack.c.bf16 %v6183_v38, %v6182_v39  ;;  %v6176_v42 = vpop.permute.xlu1 %6175 }
 0x499   : > { %v6178_v43 = vunpack.i.h.bf16 %v6176_v42  ;;  %v6177_v44 = vunpack.i.l.bf16 %v6176_v42 }
 0x49a   : > { %5617 = vmatprep.mubr.msk.bf16.mxu1 %vm986_vm1, %v1234_v41 }
 0x49b   : > { %v1233_v45 = vpack.c.bf16 %v6178_v43, %v6177_v44 }
 0x49c   : > { %v6186_v46 = vpop.permute.xlu1 %6185 }
 0x49d   : > { %5610 = vmatmul.mubr.msk.bf16.vlgmr.msra.gmra.mrb[12].mxu0 %vm986_vm1, %v1233_v45  ;;  %v6188_v48 = vunpack.i.h.bf16 %v6186_v46  ;;  %v6187_v49 = vunpack.i.l.bf16 %v6186_v46 }
 0x49e   : > { %5616 = vmatpush3.bf16.xpose.msra.mxu1 %v1461_v47 }
 0x49f   : > { %v1235_v51 = vpack.c.bf16 %v6188_v48, %v6187_v49 }
 0x4a0   : > { %v1697_v50 = vpop.permute.xlu1 %1696 }
 0x4a1   : > { %5621 = vmatprep.subr.bf16.mxu0 %v1697_v50 }
 0x4a2   : > { %5622 = vmatpush3.bf16.msra.mxu0 %v1697_v50 }
 0x4a5   : > { %5618 = vmatmul.mubr.msk.bf16.vlgmr.msra.gmra.mrb[4].mxu1 %vm986_vm1, %v1235_v51 }
 0x4fd   : > { %v5595_v53 = vpop.f32.mrb[8].mxu0 }
 0x4fe   : > { %v7859_v55 = vadd.f32 %v5595_v53, %v1066_v52  ;;  %v1296_v58 = vpop.f32.mrb[9].mxu0 }
 0x4ff   : > { %v5596_v60 = vpop.f32.mrb[10].mxu0  ;;  %v7864_v61 = vadd.f32 %v1296_v58, %v1064_v54 }
 0x500   : > { %v1299_v63 = vpop.f32.mrb[11].mxu0  ;;  %v1518_v0 = vsel %vm1088_vm2, %v7859_v55, -inf  ;;  %v7875_v5 = vadd.f32 %v5596_v60, %v1067_v1 }
 0x501   : > { %v7871_v2 = vadd.f32 %v1299_v63, %v1065_v59  ;;  %1519 = vmax.xlane.f32.xlu0 %v1518_v0  ;;  %v1512_v6 = vsel %vm1088_vm2, %v7864_v61, -inf }
 0x502   : > { %v1521_v7 = vsel %vm1088_vm2, %v7875_v5, -inf }
 0x503   : > { %v1515_v3 = vsel %vm1088_vm2, %v7871_v2, -inf }
 0x504   : > { %1516 = vmax.xlane.f32.xlu1 %v1515_v3 }
 0x505   : > { %1513 = vmax.xlane.f32.xlu0 %v1512_v6 }
 0x509   : > { %1522 = vmax.xlane.f32.xlu0 %v1521_v7 }
 0x568   : > { %v5603_v8 = vpop.f32.mrb[0].mxu1 }
 0x569   : > { %v7881_v9 = vadd.f32 %v5603_v8, %v1066_v52  ;;  %v1363_v11 = vpop.f32.mrb[1].mxu1 }
 0x56a   : > { %v5604_v13 = vpop.f32.mrb[2].mxu1  ;;  %v7891_v22 = vadd.f32 %v1363_v11, %v1064_v54 }
 0x56b   : > { %v7883_v14 = vadd.f32 %v5604_v13, %v1067_v1  ;;  %v1366_v15 = vpop.f32.mrb[3].mxu1  ;;  %v1530_v16 = vsel %vm1088_vm2, %v7881_v9, -inf }
 0x56c   : > { %1531 = vmax.xlane.f32.xlu1 %v1530_v16  ;;  %v7897_v26 = vadd.f32 %v1366_v15, %v1065_v59  ;;  %v1524_v29 = vsel %vm1088_vm2, %v7891_v22, -inf }
 0x56d   : > { %v1533_v17 = vsel %vm1088_vm2, %v7883_v14, -inf }
 0x56e   : > { %1534 = vmax.xlane.f32.xlu0 %v1533_v17  ;;  %v1527_v33 = vsel %vm1088_vm2, %v7897_v26, -inf }
 0x570   : > { %v5611_v18 = vpop.f32.mrb[12].mxu0 }
 0x571   : > { %v7889_v19 = vadd.f32 %v5611_v18, %v1066_v52  ;;  %v1430_v20 = vpop.f32.mrb[13].mxu0 }
 0x572   : > { %v5612_v21 = vpop.f32.mrb[14].mxu0  ;;  %v7901_v28 = vadd.f32 %v1430_v20, %v1064_v54 }
 0x573   : > { %v7893_v23 = vadd.f32 %v5612_v21, %v1067_v1  ;;  %v1433_v24 = vpop.f32.mrb[15].mxu0  ;;  %v1542_v25 = vsel %vm1088_vm2, %v7889_v19, -inf }
 0x574   : > { %1543 = vmax.xlane.f32.xlu1 %v1542_v25  ;;  %v7905_v31 = vadd.f32 %v1433_v24, %v1065_v59  ;;  %v1536_v37 = vsel %vm1088_vm2, %v7901_v28, -inf }
 0x575   : > { %v1545_v27 = vsel %vm1088_vm2, %v7893_v23, -inf }
 0x576   : > { %1546 = vmax.xlane.f32.xlu0 %v1545_v27  ;;  %v1539_v39 = vsel %vm1088_vm2, %v7905_v31, -inf }
 0x578   : > { %v5619_v30 = vpop.f32.mrb[4].mxu1  ;;  %1525 = vmax.xlane.f32.xlu1 %v1524_v29 }
 0x579   : > { %v1497_v32 = vpop.f32.mrb[5].mxu1  ;;  %v7909_v35 = vadd.f32 %v5619_v30, %v1066_v52 }
 0x57a   : > { %v5620_v34 = vpop.f32.mrb[6].mxu1  ;;  %1528 = vmax.xlane.f32.xlu0 %v1527_v33  ;;  %v7917_v41 = vadd.f32 %v1497_v32, %v1064_v54 }
 0x57b   : > { %v1500_v36 = vpop.f32.mrb[7].mxu1  ;;  %v7913_v38 = vadd.f32 %v5620_v34, %v1067_v1  ;;  %v1554_v42 = vsel %vm1088_vm2, %v7909_v35, -inf }
 0x57c   : > { %1537 = vmax.xlane.f32.xlu1 %v1536_v37  ;;  %v7921_v43 = vadd.f32 %v1500_v36, %v1065_v59  ;;  %v1548_v45 = vsel %vm1088_vm2, %v7917_v41, -inf }
 0x57d   : > { %v1557_v44 = vsel %vm1088_vm2, %v7913_v38, -inf }
 0x57e   : > { %1540 = vmax.xlane.f32.xlu0 %v1539_v39  ;;  %v1551_v46 = vsel %vm1088_vm2, %v7921_v43, -inf }
 0x580   : > { %1555 = vmax.xlane.f32.xlu1 %v1554_v42 }
 0x582   : > { %1558 = vmax.xlane.f32.xlu0 %v1557_v44 }
 0x584   : > { %1549 = vmax.xlane.f32.xlu1 %v1548_v45 }
 0x586   : > { %1552 = vmax.xlane.f32.xlu0 %v1551_v46 }
 0x58e   : > { %v1520_v47 = vpop.xlane.xlu0 %1519 }
 0x591   : > { %v1517_v51 = vpop.xlane.xlu1 %1516 }
 0x592   : > { %v1514_v48 = vpop.xlane.xlu0 %1513  ;;  %v1561_v52 = vsub.f32 %v7871_v2, %v1517_v51 }
 0x593   : > { %v1560_v54 = vsub.f32 %v7864_v61, %v1514_v48 }
 0x595   : > { %1698 = vrot.lane.b32.xlu1 %v7775_v40, %s7202_s5  ;;  %v1562_v40 = vsub.f32 %v7859_v55, %v1520_v47 }
 0x596   : > { %v1523_v49 = vpop.xlane.xlu0 %1522 }
 0x597   : > { %v1563_v50 = vsub.f32 %v7875_v5, %v1523_v49  ;;  %v1580_v53 = vmul.f32 1.442695, %v1562_v40 }
 0x599   : > { %1759 = vrot.lane.b32.xlu1 %v7807_v62, %s7202_s5  ;;  %v1582_v62 = vmul.f32 1.442695, %v1563_v50 }
 0x59b   : > { %6431 = vpow2.f32 %v1582_v62 }
 0x59c   : > { %1757 = vrot.lane.b32.xlu0 %v7799_v56, %s7202_s5  ;;  %v1578_v56 = vmul.f32 1.442695, %v1561_v52  ;;  %6433 = vpow2.f32 %v1580_v53 }
 0x59d   : > { %1879 = vrot.lane.b32.xlu1 %v7818_v10, %s7202_s5  ;;  %v1576_v10 = vmul.f32 1.442695, %v1560_v54 }
 0x59e   : > { %6435 = vpow2.f32 %v1578_v56 }
 0x59f   : > { %6437 = vpow2.f32 %v1576_v10 }
 0x5a0   : > { %1818 = vrot.lane.b32.xlu0 %v7801_v57, %s7202_s5 }
 0x5a5   : > { %v7943_v58 = vpop.eup %6431 }
 0x5a6   : > { %v7945_v57 = vpop.eup %6433  ;;  %v1617_v59 = vsel %vm1088_vm2, %v7943_v58, 0.0 }
 0x5a7   : > { %v1614_v60 = vsel %vm1088_vm2, %v7945_v57, 0.0 }
 0x5a8   : > { %v7949_v55 = vpop.eup %6435 }
 0x5a9   : > { %v7953_v61 = vpop.eup %6437  ;;  %v1611_v63 = vsel %vm1088_vm2, %v7949_v55, 0.0 }
 0x5aa   : > { %v1608_v0 = vsel %vm1088_vm2, %v7953_v61, 0.0 }
 0x5bf   : > { %1618 = vadd.xlane.f32.xlu0 %v1617_v59 }
 0x5c1   : > { %1615 = vadd.xlane.f32.xlu1 %v1614_v60 }
 0x5c3   : > { %1612 = vadd.xlane.f32.xlu0 %v1611_v63 }
 0x5c5   : > { %1609 = vadd.xlane.f32.xlu1 %v1608_v0 }
 0x5f9   : > { %v1532_v1 = vpop.xlane.xlu1 %1531 }
 0x5fa   : > { %v1566_v2 = vsub.f32 %v7881_v9, %v1532_v1 }
 0x5fb   : > { %v1535_v3 = vpop.xlane.xlu0 %1534 }
 0x5fc   : > { %v1588_v5 = vmul.f32 1.442695, %v1566_v2  ;;  %v1567_v6 = vsub.f32 %v7883_v14, %v1535_v3 }
 0x5fe   : > { %6439 = vpow2.f32 %v1588_v5  ;;  %v1590_v7 = vmul.f32 1.442695, %v1567_v6 }
 0x600   : > { %6441 = vpow2.f32 %v1590_v7 }
 0x601   : > { %v1544_v8 = vpop.xlane.xlu1 %1543 }
 0x602   : > { %v1570_v11 = vsub.f32 %v7889_v19, %v1544_v8 }
 0x603   : > { %v1547_v13 = vpop.xlane.xlu0 %1546 }
 0x604   : > { %v1596_v15 = vmul.f32 1.442695, %v1570_v11  ;;  %v1571_v16 = vsub.f32 %v7893_v23, %v1547_v13 }
 0x605   : > { %v1526_v17 = vpop.xlane.xlu1 %1525 }
 0x606   : > { %6443 = vpow2.f32 %v1596_v15  ;;  %v1598_v18 = vmul.f32 1.442695, %v1571_v16  ;;  %v1564_v20 = vsub.f32 %v7891_v22, %v1526_v17 }
 0x607   : > { %v1529_v9 = vpop.xlane.xlu0 %1528 }
 0x608   : > { %v7964_v21 = vpop.eup %6439  ;;  %6445 = vpow2.f32 %v1598_v18  ;;  %v1584_v14 = vmul.f32 1.442695, %v1564_v20  ;;  %v1565_v24 = vsub.f32 %v7897_v26, %v1529_v9 }
 0x609   : > { %v1538_v25 = vpop.xlane.xlu1 %1537  ;;  %v1626_v19 = vsel %vm1088_vm2, %v7964_v21, 0.0 }
 0x60a   : > { %v7969_v27 = vpop.eup %6441  ;;  %6447 = vpow2.f32 %v1584_v14  ;;  %v1586_v23 = vmul.f32 1.442695, %v1565_v24  ;;  %v1568_v29 = vsub.f32 %v7901_v28, %v1538_v25  ;;  %1627 = vadd.xlane.f32.xlu1 %v1626_v19 }
 0x60b   : > { %v1541_v30 = vpop.xlane.xlu0 %1540  ;;  %v1629_v22 = vsel %vm1088_vm2, %v7969_v27, 0.0 }
 0x60c   : > { %6449 = vpow2.f32 %v1586_v23  ;;  %v1592_v32 = vmul.f32 1.442695, %v1568_v29  ;;  %v1569_v33 = vsub.f32 %v7905_v31, %v1541_v30  ;;  %1630 = vadd.xlane.f32.xlu0 %v1629_v22 }
 0x60d   : > { %v1556_v26 = vpop.xlane.xlu1 %1555 }
 0x60e   : > { %6451 = vpow2.f32 %v1592_v32  ;;  %v1594_v34 = vmul.f32 1.442695, %v1569_v33  ;;  %v1574_v36 = vsub.f32 %v7909_v35, %v1556_v26 }
 0x60f   : > { %v1559_v37 = vpop.xlane.xlu0 %1558 }
 0x610   : > { %v7976_v39 = vpop.eup %6443  ;;  %6453 = vpow2.f32 %v1594_v34  ;;  %v1604_v28 = vmul.f32 1.442695, %v1574_v36  ;;  %v1575_v42 = vsub.f32 %v7913_v38, %v1559_v37 }
 0x611   : > { %v1550_v44 = vpop.xlane.xlu1 %1549  ;;  %v1638_v45 = vsel %vm1088_vm2, %v7976_v39, 0.0 }
 0x612   : > { %v7981_v46 = vpop.eup %6445  ;;  %6455 = vpow2.f32 %v1604_v28  ;;  %v1606_v31 = vmul.f32 1.442695, %v1575_v42  ;;  %v1572_v47 = vsub.f32 %v7917_v41, %v1550_v44  ;;  %1639 = vadd.xlane.f32.xlu1 %v1638_v45 }
 0x613   : > { %v1553_v48 = vpop.xlane.xlu0 %1552  ;;  %v1641_v35 = vsel %vm1088_vm2, %v7981_v46, 0.0 }
 0x614   : > { %v7986_v49 = vpop.eup %6447  ;;  %6457 = vpow2.f32 %v1606_v31  ;;  %v1600_v50 = vmul.f32 1.442695, %v1572_v47  ;;  %v1573_v38 = vsub.f32 %v7921_v43, %v1553_v48  ;;  %1642 = vadd.xlane.f32.xlu0 %v1641_v35 }
 0x615   : > { %v1699_v51 = vpop.permute.xlu1 %1698  ;;  %v1620_v40 = vsel %vm1088_vm2, %v7986_v49, 0.0 }
 0x616   : > { %v7991_v52 = vpop.eup %6449  ;;  %6459 = vpow2.f32 %v1600_v50  ;;  %v1602_v41 = vmul.f32 1.442695, %v1573_v38  ;;  %5623 = vmatprep.subr.bf16.mxu0 %v1699_v51  ;;  %1621 = vadd.xlane.f32.xlu1 %v1620_v40 }
 0x617   : > { %5624 = vmatpush3.bf16.msra.mxu0 %v1699_v51  ;;  %v1758_v62 = vpop.permute.xlu0 %1757  ;;  %v1623_v53 = vsel %vm1088_vm2, %v7991_v52, 0.0 }
 0x618   : > { %v7995_v54 = vpop.eup %6451  ;;  %6461 = vpow2.f32 %v1602_v41  ;;  %1624 = vadd.xlane.f32.xlu0 %v1623_v53  ;;  %5629 = vmatprep.subr.bf16.mxu1 %v1758_v62 }
 0x619   : > { %v1760_v43 = vpop.permute.xlu1 %1759  ;;  %5630 = vmatpush3.bf16.msra.mxu1 %v1758_v62  ;;  %v1632_v56 = vsel %vm1088_vm2, %v7995_v54, 0.0 }
 0x61a   : > { %v7999_v10 = vpop.eup %6453  ;;  %1633 = vadd.xlane.f32.xlu1 %v1632_v56  ;;  %5631 = vmatprep.subr.bf16.mxu1 %v1760_v43 }
 0x61b   : > { %v1819_v59 = vpop.permute.xlu0 %1818  ;;  %v1635_v60 = vsel %vm1088_vm2, %v7999_v10, 0.0 }
 0x61c   : > { %v8003_v63 = vpop.eup %6455  ;;  %1636 = vadd.xlane.f32.xlu0 %v1635_v60  ;;  %5637 = vmatprep.subr.bf16.mxu0 %v1819_v59 }
 0x61d   : > { %v8005_v0 = vpop.permute.xlu1 %1879  ;;  %5632 = vmatpush3.bf16.msra.mxu1 %v1760_v43  ;;  %v1650_v1 = vsel %vm1088_vm2, %v8003_v63, 0.0 }
 0x61e   : > { %v8009_v2 = vpop.eup %6457  ;;  %1651 = vadd.xlane.f32.xlu1 %v1650_v1  ;;  %5645 = vmatprep.subr.bf16.mxu1 %v8005_v0 }
 0x61f   : > { %v1653_v3 = vsel %vm1088_vm2, %v8009_v2, 0.0 }
 0x620   : > { %v8014_v5 = vpop.eup %6459  ;;  %1654 = vadd.xlane.f32.xlu0 %v1653_v3 }
 0x621   : > { %v1644_v6 = vsel %vm1088_vm2, %v8014_v5, 0.0 }
 0x622   : > { %v8018_v7 = vpop.eup %6461  ;;  %1645 = vadd.xlane.f32.xlu1 %v1644_v6 }
 0x623   : > { %v1647_v8 = vsel %vm1088_vm2, %v8018_v7, 0.0 }
 0x624   : > { %1648 = vadd.xlane.f32.xlu0 %v1647_v8 }
 0x633   : > { %1881 = vrot.lane.b32.xlu1 %v7824_v12, %s7202_s5 }
 0x63a   : > { %1820 = vrot.lane.b32.xlu0 %v7811_v4, %s7202_s5 }
 0x64c   : > { %v1619_v11 = vpop.xlane.xlu0 %1618 }
 0x64e   : > { %v1616_v13 = vpop.xlane.xlu1 %1615 }
 0x64f   : > { %6463 = vrcp.f32 %v1616_v13 }
 0x650   : > { %v1613_v15 = vpop.xlane.xlu0 %1612 }
 0x651   : > { %6465 = vrcp.f32 %v1613_v15  ;;  %v6401_v15 = vld [vmem:[#allocation11] sm:$0xff]  }
 0x652   : > { %6467 = vrcp.f32 %v1619_v11  ;;  %v1610_v16 = vpop.xlane.xlu1 %1609 }
 0x653   : > { %6469 = vrcp.f32 %v1610_v16 }
 0x659   : > { %v6464_v17 = vpop.eup %6463 }
 0x65a   : > { %v1661_v14 = vmul.f32 %v6464_v17, %v7945_v57 }
 0x65b   : > { %v6466_v18 = vpop.eup %6465 }
 0x65c   : > { %v6468_v20 = vpop.eup %6467  ;;  %v1659_v12 = vmul.f32 %v6466_v18, %v7949_v55 }
 0x65d   : > { %v6470_v9 = vpop.eup %6469  ;;  %v1663_v4 = vmul.f32 %v6468_v20, %v7943_v58 }
 0x65e   : > { %v1657_v24 = vmul.f32 %v6470_v9, %v7953_v61 }
 0x65f   : > { %v1689_v19 = vpack.c.bf16 %v1663_v4, %v1661_v14 }
 0x660   : > { %v1688_v25 = vpack.c.bf16 %v1659_v12, %v1657_v24  ;;  %v6402_v12 = vld [vmem:[#allocation11 + $0x8] sm:$0xff]  }
 0x662   : > { %5625 = vmatprep.mubr.msk.bf16.mxu0 %vm1088_vm2, %v1688_v25 }
 0x663   : > { %5626 = vmatmul.mubr.msk.bf16.vlgmr.msra.gmra.mrb[16].mxu0 %vm1088_vm2, %v1689_v19 }
 0x664   : > { %5638 = vmatpush3.bf16.msra.mxu0 %v1819_v59 }
 0x697   : > { %v1628_v23 = vpop.xlane.xlu1 %1627 }
 0x699   : > { %v1631_v29 = vpop.xlane.xlu0 %1630 }
 0x69a   : > { %6471 = vrcp.f32 %v1631_v29 }
 0x69f   : > { %v1640_v30 = vpop.xlane.xlu1 %1639 }
 0x6a1   : > { %v1643_v22 = vpop.xlane.xlu0 %1642 }
 0x6a3   : > { %v1622_v32 = vpop.xlane.xlu1 %1621 }
 0x6a4   : > { %6473 = vrcp.f32 %v1622_v32  ;;  %v6472_v33 = vpop.eup %6471 }
 0x6a5   : > { %6475 = vrcp.f32 %v1628_v23  ;;  %v1625_v57 = vpop.xlane.xlu0 %1624  ;;  %v1671_v42 = vmul.f32 %v6472_v33, %v7969_v27 }
 0x6a6   : > { %6477 = vrcp.f32 %v1625_v57 }
 0x6a7   : > { %6479 = vrcp.f32 %v1643_v22  ;;  %v1634_v55 = vpop.xlane.xlu1 %1633 }
 0x6a8   : > { %6481 = vrcp.f32 %v1634_v55 }
 0x6a9   : > { %6483 = vrcp.f32 %v1640_v30  ;;  %v1637_v58 = vpop.xlane.xlu0 %1636 }
 0x6aa   : > { %6485 = vrcp.f32 %v1637_v58 }
 0x6ab   : > { %v1652_v61 = vpop.xlane.xlu1 %1651 }
 0x6ad   : > { %v1655_v26 = vpop.xlane.xlu0 %1654 }
 0x6ae   : > { %v6474_v34 = vpop.eup %6473  ;;  %6487 = vrcp.f32 %v1655_v26 }
 0x6af   : > { %v6476_v36 = vpop.eup %6475  ;;  %v1646_v37 = vpop.xlane.xlu1 %1645  ;;  %v1665_v31 = vmul.f32 %v6474_v34, %v7986_v49 }
 0x6b0   : > { %v6478_v28 = vpop.eup %6477  ;;  %6489 = vrcp.f32 %v1646_v37  ;;  %v1669_v35 = vmul.f32 %v6476_v36, %v7964_v21 }
 0x6b1   : > { %v6480_v44 = vpop.eup %6479  ;;  %6491 = vrcp.f32 %v1652_v61  ;;  %v1649_v45 = vpop.xlane.xlu0 %1648  ;;  %v1667_v47 = vmul.f32 %v6478_v28, %v7991_v52 }
 0x6b2   : > { %v6482_v48 = vpop.eup %6481  ;;  %6493 = vrcp.f32 %v1649_v45  ;;  %v1679_v40 = vmul.f32 %v6480_v44, %v7981_v46  ;;  %v1691_v41 = vpack.c.bf16 %v1671_v42, %v1669_v35 }
 0x6b3   : > { %v6484_v50 = vpop.eup %6483  ;;  %v1690_v38 = vpack.c.bf16 %v1667_v47, %v1665_v31  ;;  %v1673_v62 = vmul.f32 %v6482_v48, %v7995_v54  ;;  %v1882_v21 = vpop.permute.xlu1 %1881 }
 0x6b4   : > { %v6486_v51 = vpop.eup %6485  ;;  %v1677_v49 = vmul.f32 %v6484_v50, %v7976_v39 }
 0x6b5   : > { %5633 = vmatprep.mubr.msk.bf16.mxu1 %vm1088_vm2, %v1690_v38  ;;  %v1821_v27 = vpop.permute.xlu0 %1820  ;;  %v1675_v53 = vmul.f32 %v6486_v51, %v7999_v10 }
 0x6b6   : > { %5634 = vmatmul.mubr.msk.bf16.vlgmr.msra.gmra.mrb[8].mxu1 %vm1088_vm2, %v1691_v41  ;;  %5639 = vmatprep.subr.bf16.mxu0 %v1821_v27  ;;  %v1693_v46 = vpack.c.bf16 %v1679_v40, %v1677_v49 }
 0x6b7   : > { %5646 = vmatpush3.bf16.msra.mxu1 %v8005_v0  ;;  %5640 = vmatpush3.bf16.msra.mxu0 %v1821_v27  ;;  %v1692_v52 = vpack.c.bf16 %v1675_v53, %v1673_v62 }
 0x6b8   : > { %5647 = vmatprep.subr.bf16.mxu1 %v1882_v21  ;;  %v6488_v43 = vpop.eup %6487  ;;  %5653 = vmatprep.subr.bf16.mxu0 %v6401_v15 }
 0x6b9   : > { %5641 = vmatprep.mubr.msk.bf16.mxu0 %vm1088_vm2, %v1692_v52  ;;  %v1687_v39 = vmul.f32 %v6488_v43, %v8009_v2 }
 0x6ba   : > { %v6490_v56 = vpop.eup %6489  ;;  %5642 = vmatmul.mubr.msk.bf16.vlgmr.msra.gmra.mrb[20].mxu0 %vm1088_vm2, %v1693_v46 }
 0x6bb   : > { %v6492_v54 = vpop.eup %6491  ;;  %5648 = vmatpush3.bf16.msra.mxu1 %v1882_v21  ;;  %v1681_v59 = vmul.f32 %v6490_v56, %v8014_v5  ;;  %5654 = vmatpush3.bf16.msra.mxu0 %v6401_v15 }
 0x6bc   : > { %v6494_v10 = vpop.eup %6493  ;;  %v1685_v0 = vmul.f32 %v6492_v54, %v8003_v63  ;;  %5655 = vmatprep.subr.bf16.mxu0 %v6402_v12  ;;  %v6403_v54 = vld [vmem:[%s8903_s10] sm:$0xff]  }
 0x6bd   : > { %v1683_v60 = vmul.f32 %v6494_v10, %v8018_v7  ;;  %5661 = vmatprep.subr.bf16.mxu1 %v6403_v54  ;;  %v6404_v10 = vld [vmem:[%s8903_s10 + $0x8] sm:$0xff]  }
 0x6be   : > { %v1695_v3 = vpack.c.bf16 %v1687_v39, %v1685_v0 }
 0x6bf   : > { %v1694_v1 = vpack.c.bf16 %v1683_v60, %v1681_v59  ;;  %5656 = vmatpush3.bf16.msra.mxu0 %v6402_v12  ;;  %v5289_v59 = vld [vmem:[#allocation12] ss:$0 sm:$0xff] }
 0x6c1   : > { %5649 = vmatprep.mubr.msk.bf16.mxu1 %vm1088_vm2, %v1694_v1 }
 0x6c2   : > { %5650 = vmatmul.mubr.msk.bf16.vlgmr.msra.gmra.mrb[12].mxu1 %vm1088_vm2, %v1695_v3 }
 0x6c3   : > { %5662 = vmatpush3.bf16.msra.mxu1 %v6403_v54 }
 0x6c4   : > { %5663 = vmatprep.subr.bf16.mxu1 %v6404_v10 }
 0x6c7   : > { %5664 = vmatpush3.bf16.msra.mxu1 %v6404_v10 }
 0x736   : > { %v5627_v6 = vpop.f32.mrb[16].mxu0 }
 0x737   : > { %v1742_v8 = vpop.f32.mrb[17].mxu0 }
 0x738   : > { %v5628_v11 = vpop.f32.mrb[18].mxu0 }
 0x739   : > { %v1745_v13 = vpop.f32.mrb[19].mxu0 }
 0x789   : > { %v5635_v16 = vpop.f32.mrb[8].mxu1 }
 0x78a   : > { %v1803_v17 = vpop.f32.mrb[9].mxu1 }
 0x78b   : > { %v5636_v2 = vpop.f32.mrb[10].mxu1 }
 0x78c   : > { %v6189_v5 = vpack.i.bf16 %v5636_v2, %v5635_v16  ;;  %v1806_v7 = vpop.f32.mrb[11].mxu1  ;;  %v5294_v16 = vld [vmem:[#allocation14] ss:$0 sm:$0xff] }
 0x78d   : > { %v6199_v18 = vpack.i.bf16 %v1806_v7, %v1803_v17  ;;  %v5643_v63 = vpop.f32.mrb[20].mxu0 }
 0x78e   : > { %6190 = vrot.lane.b32.xlu1 %v6189_v5, %s7203_s28  ;;  %v1864_v20 = vpop.f32.mrb[21].mxu0 }
 0x78f   : > { %6200 = vrot.lane.b32.xlu0 %v6199_v18, %s7203_s28  ;;  %v5644_v9 = vpop.f32.mrb[22].mxu0 }
 0x790   : > { %v6194_v14 = vpack.i.bf16 %v5644_v9, %v5643_v63  ;;  %v1867_v24 = vpop.f32.mrb[23].mxu0 }
 0x791   : > { %v6204_v4 = vpack.i.bf16 %v1867_v24, %v1864_v20 }
 0x792   : > { %6195 = vrot.lane.b32.xlu1 %v6194_v14, %s7204_s13 }
 0x793   : > { %6205 = vrot.lane.b32.xlu0 %v6204_v4, %s7204_s13 }
 0x795   : > { %v5651_v25 = vpop.f32.mrb[12].mxu1 }
 0x796   : > { %v1925_v19 = vpop.f32.mrb[13].mxu1 }
 0x797   : > { %v5652_v23 = vpop.f32.mrb[14].mxu1 }
 0x798   : > { %v6214_v29 = vpack.i.bf16 %v5652_v23, %v5651_v25  ;;  %v1928_v30 = vpop.f32.mrb[15].mxu1 }
 0x799   : > { %v6209_v22 = vpack.i.bf16 %v1928_v30, %v1925_v19 }
 0x79a   : > { %6215 = vrot.lane.b32.xlu1 %v6214_v29, %s7205_s15 }
 0x79b   : > { %6210 = vrot.lane.b32.xlu0 %v6209_v22, %s7205_s15 }
 0x800   : > { %v6191_v32 = vpop.permute.xlu1 %6190 }
 0x801   : > { %v6201_v57 = vpop.permute.xlu0 %6200  ;;  %v6193_v58 = vunpack.i.h.bf16 %v6191_v32  ;;  %v6192_v61 = vunpack.i.l.bf16 %v6191_v32 }
 0x802   : > { %v6203_v26 = vunpack.i.h.bf16 %v6201_v57  ;;  %v6202_v34 = vunpack.i.l.bf16 %v6201_v57 }
 0x803   : > { %v1991_v44 = vsel %vm986_vm1, %v5628_v11, %v6193_v58  ;;  %v1990_v45 = vsel %vm986_vm1, %v5627_v6, %v6192_v61 }
 0x804   : > { %v6196_v55 = vpop.permute.xlu1 %6195  ;;  %v1989_v47 = vsel %vm986_vm1, %v1745_v13, %v6203_v26  ;;  %v1988_v48 = vsel %vm986_vm1, %v1742_v8, %v6202_v34 }
 0x805   : > { %v6206_v33 = vpop.permute.xlu0 %6205  ;;  %v6198_v36 = vunpack.i.h.bf16 %v6196_v55  ;;  %v6197_v37 = vunpack.i.l.bf16 %v6196_v55 }
 0x806   : > { %v6208_v28 = vunpack.i.h.bf16 %v6206_v33  ;;  %v6207_v42 = vunpack.i.l.bf16 %v6206_v33 }
 0x807   : > { %v1996_v51 = vsel %vm1992_vm3, %v1991_v44, %v6198_v36  ;;  %v1995_v40 = vsel %vm1992_vm3, %v1990_v45, %v6197_v37 }
 0x808   : > { %v1993_v62 = vsel %vm1992_vm3, %v1988_v48, %v6207_v42  ;;  %v1994_v53 = vsel %vm1992_vm3, %v1989_v47, %v6208_v28 }
 0x80c   : > { %v6216_v31 = vpop.permute.xlu1 %6215 }
 0x80d   : > { %v6218_v35 = vunpack.i.h.bf16 %v6216_v31  ;;  %v6217_v50 = vunpack.i.l.bf16 %v6216_v31  ;;  %v6211_v38 = vpop.permute.xlu0 %6210 }
 0x80e   : > { %v6213_v41 = vunpack.i.h.bf16 %v6211_v38  ;;  %v6212_v27 = vunpack.i.l.bf16 %v6211_v38 }
 0x80f   : > { %v2000_v49 = vsel %vm1997_vm4, %v1995_v40, %v6217_v50  ;;  %v2001_v21 = vsel %vm1997_vm4, %v1996_v51, %v6218_v35 }
 0x810   : > { %v2003_v52 = vpack.c.bf16 %v2001_v21, %v2000_v49  ;;  %v1998_v46 = vsel %vm1997_vm4, %v1993_v62, %v6212_v27  ;;  %v1999_v43 = vsel %vm1997_vm4, %v1994_v53, %v6213_v41 }
 0x811   : > { %v2002_v56 = vpack.c.bf16 %v1999_v43, %v1998_v46 }
 0x813   : > { %5657 = vmatprep.mubr.msk.bf16.mxu0 %vm1088_vm2, %v2002_v56 }
 0x814   : > { %5658 = vmatmul.mubr.msk.bf16.vlgmr.msra.gmra.mrb[24].mxu0 %vm1088_vm2, %v2003_v52 }
 0x8e7   : > { %v5659_v39 = vpop.f32.mrb[24].mxu0 }
 0x8e8   : > { %v2062_v60 = vpop.f32.mrb[25].mxu0  ;;  %v8083_v11 = vadd.f32 %v5659_v39, %v5289_v59 }
 0x8e9   : > { %v5660_v0 = vpop.f32.mrb[26].mxu0  ;;  %v8079_v6 = vadd.f32 %v5289_v59, %v2062_v60 }
 0x8ea   : > { %v8077_v1 = vadd.f32 %v5660_v0, %v5289_v59  ;;  %v2065_v3 = vpop.f32.mrb[27].mxu0 }
 0x8eb   : > { %v8081_v8 = vadd.f32 %v5289_v59, %v2065_v3 }
 0x8ec   : > { %v2092_v15 = vpack.c.bf16 %v8077_v1, %v8083_v11 }
 0x8ed   : > { %v2091_v13 = vpack.c.bf16 %v8081_v8, %v8079_v6 }
 0x8ef   : > { %5665 = vmatprep.mubr.msk.bf16.mxu1 %vm1088_vm2, %v2091_v13 }
 0x8f0   : > { %5666 = vmatmul.mubr.msk.bf16.vlgmr.msra.gmra.mrb[16].mxu1 %vm1088_vm2, %v2092_v15 }
 0x9c3   : > { %v5667_v17 = vpop.f32.mrb[16].mxu1 }
 0x9c4   : > { %v2151_v2 = vpop.f32.mrb[17].mxu1  ;;  %v2160_v18 = vadd.f32 %v5667_v17, %v5294_v16 }
 0x9c5   : > { %v2152_v5 = vadd.f32 %v5294_v16, %v2151_v2  ;;  %v5668_v7 = vpop.f32.mrb[18].mxu1 }
 0x9c6   : > { %v2163_v63 = vadd.f32 %v5668_v7, %v5294_v16  ;;  %v2154_v20 = vpop.f32.mrb[19].mxu1  ;;  %v8096_v23 = vmul.f32 0.35355338, %v2160_v18 }
 0x9c7   : > { %v2166_v9 = vmul.f32 0.35355338, %v2152_v5  ;;  %v2155_v14 = vadd.f32 %v5294_v16, %v2154_v20 }
 0x9c8   : > { %v6224_v24 = vpack.i.bf16 %v2163_v63, %v2160_v18  ;;  %v8091_v12 = vpack.c.bf16 %v2163_v63, %v2160_v18  ;;  %v8098_v29 = vmul.f32 0.35355338, %v2163_v63 }
 0x9c9   : > { %v2167_v4 = vmul.f32 0.35355338, %v2155_v14  ;;  %v6219_v25 = vpack.i.bf16 %v2155_v14, %v2152_v5  ;;  %v8094_v19 = vpack.c.bf16 %v2155_v14, %v2152_v5 }
 0x9ca   : > { %6225 = vrot.lane.b32.xlu1 %v6224_v24, %s7199_s25  ;;  %v6254_v32 = vpack.i.bf16 %v8098_v29, %v8096_v23  ;;  %v2251_v57 = vpack.c.bf16 %v8098_v29, %v8096_v23 }
 0x9cb   : > { %6220 = vrot.lane.b32.xlu0 %v6219_v25, %s7199_s25  ;;  %v2250_v30 = vpack.c.bf16 %v2167_v4, %v2166_v9  ;;  %v6249_v22 = vpack.i.bf16 %v2167_v4, %v2166_v9 }
 0x9cd   : > { %5673 = vmatprep.mubr.msk.bf16.mxu0 %vm986_vm1, %v2250_v30 }
 0x9ce   : > { %6235 = vrot.lane.b32.xlu1 %v6219_v25, %s7200_s6 }
 0x9cf   : > { %6230 = vrot.lane.b32.xlu0 %v6219_v25, %s7198_s1 }
 0x9d2   : > { %6245 = vrot.lane.b32.xlu1 %v6224_v24, %s7200_s6 }
 0x9d3   : > { %6240 = vrot.lane.b32.xlu0 %v6224_v24, %s7198_s1 }
 0x9d7   : > { %2268 = vrot.lane.b32.xlu0 %v8094_v19, %s7201_s30 }
 0x9db   : > { %2270 = vrot.lane.b32.xlu0 %v8091_v12, %s7201_s30 }
 0x9df   : > { %6250 = vrot.lane.b32.xlu0 %v6249_v22, %s7199_s25 }
 0xa3c   : > { %v6226_v55 = vpop.permute.xlu1 %6225 }
 0xa3d   : > { %v6221_v58 = vpop.permute.xlu0 %6220  ;;  %v6228_v26 = vunpack.i.h.bf16 %v6226_v55  ;;  %v6227_v34 = vunpack.i.l.bf16 %v6226_v55 }
 0xa3e   : > { %v6223_v61 = vunpack.i.h.bf16 %v6221_v58  ;;  %v6222_v33 = vunpack.i.l.bf16 %v6221_v58 }
 0xa3f   : > { %v8119_v45 = vpack.c.bf16 %v6228_v26, %v6227_v34 }
 0xa40   : > { %v8115_v36 = vpack.c.bf16 %v6223_v61, %v6222_v33  ;;  %v6236_v44 = vpop.permute.xlu1 %6235 }
 0xa41   : > { %v6231_v37 = vpop.permute.xlu0 %6230  ;;  %v6238_v50 = vunpack.i.h.bf16 %v6236_v44  ;;  %v6237_v38 = vunpack.i.l.bf16 %v6236_v44 }
 0xa42   : > { %v6233_v28 = vunpack.i.h.bf16 %v6231_v37  ;;  %v6232_v42 = vunpack.i.l.bf16 %v6231_v37  ;;  %2335 = vrot.lane.b32.xlu1 %v8115_v36, %s7201_s30  ;;  %v2079_v37 = vld [vmem:[%s9010_s29 + $0x10] sm:$0xff] }
 0xa43   : > { %v8134_v49 = vpack.c.bf16 %v6238_v50, %v6237_v38 }
 0xa44   : > { %v8121_v31 = vpack.c.bf16 %v6233_v28, %v6232_v42  ;;  %v6246_v40 = vpop.permute.xlu1 %6245  ;;  %v2077_v42 = vld [vmem:[%s9010_s29] sm:$0xff] }
 0xa45   : > { %v6241_v47 = vpop.permute.xlu0 %6240  ;;  %v6248_v62 = vunpack.i.h.bf16 %v6246_v40  ;;  %v6247_v53 = vunpack.i.l.bf16 %v6246_v40 }
 0xa46   : > { %v6243_v48 = vunpack.i.h.bf16 %v6241_v47  ;;  %v6242_v35 = vunpack.i.l.bf16 %v6241_v47  ;;  %2337 = vrot.lane.b32.xlu1 %v8119_v45, %s7201_s30  ;;  %2402 = vrot.lane.b32.xlu0 %v8121_v31, %s7201_s30 }
 0xa47   : > { %v8140_v52 = vpack.c.bf16 %v6248_v62, %v6247_v53 }
 0xa48   : > { %v8127_v51 = vpack.c.bf16 %v6243_v48, %v6242_v35  ;;  %v2078_v48 = vld [vmem:[%s9010_s29 + $0x8] sm:$0xff] }
 0xa49   : > { %v2269_v41 = vpop.permute.xlu0 %2268 }
 0xa4a   : > { %6255 = vrot.lane.b32.xlu1 %v6254_v32, %s7199_s25  ;;  %5908 = vmatprep.subr.msk.bf16.mxu0 %vm986_vm1, %v2269_v41  ;;  %v2279_v27 = vsel %vm986_vm1, %v2269_v41, 0  ;;  %v2080_v41 = vld [vmem:[%s9010_s29 + $0x18] sm:$0xff] }
 0xa4b   : > { %2404 = vrot.lane.b32.xlu0 %v8127_v51, %s7201_s30  ;;  %5670 = vmatpush3.bf16.xpose.msra.mxu0 %v2279_v27 }
 0xa4d   : > { %v2271_v21 = vpop.permute.xlu0 %2270 }
 0xa4e   : > { %2469 = vrot.lane.b32.xlu1 %v8134_v49, %s7201_s30  ;;  %5909 = vmatprep.subr.msk.bf16.mxu0 %vm986_vm1, %v2271_v21  ;;  %v2282_v54 = vsel %vm986_vm1, %v2271_v21, 0 }
 0xa4f   : > { %6260 = vrot.lane.b32.xlu0 %v6249_v22, %s7198_s1 }
 0xa51   : > { %v6251_v46 = vpop.permute.xlu0 %6250 }
 0xa52   : > { %v6253_v43 = vunpack.i.h.bf16 %v6251_v46  ;;  %v6252_v56 = vunpack.i.l.bf16 %v6251_v46  ;;  %2471 = vrot.lane.b32.xlu1 %v8140_v52, %s7201_s30 }
 0xa53   : > { %6270 = vrot.lane.b32.xlu0 %v6249_v22, %s7200_s6  ;;  %5672 = vmatpush3.bf16.xpose.msra.mxu0 %v2282_v54 }
 0xa54   : > { %v2252_v10 = vpack.c.bf16 %v6253_v43, %v6252_v56 }
 0xa56   : > { %6265 = vrot.lane.b32.xlu1 %v6254_v32, %s7198_s1  ;;  %5681 = vmatprep.mubr.msk.bf16.mxu1 %vm986_vm1, %v2252_v10 }
 0xa5a   : > { %6275 = vrot.lane.b32.xlu1 %v6254_v32, %s7200_s6  ;;  %5674 = vmatmul.mubr.msk.bf16.vlgmr.msra.gmra.mrb[28].mxu0 %vm986_vm1, %v2251_v57 }
 0xa5e   : > { %2718 = vrot.lane.b32.xlu1 %v8094_v19, %s7202_s5 }
 0xab4   : > { %v2336_v39 = vpop.permute.xlu1 %2335 }
 0xab5   : > { %5910 = vmatprep.subr.msk.bf16.mxu1 %vm986_vm1, %v2336_v39  ;;  %v2346_v59 = vsel %vm986_vm1, %v2336_v39, 0 }
 0xab6   : > { %5678 = vmatpush3.bf16.xpose.msra.mxu1 %v2346_v59 }
 0xab8   : > { %v2338_v60 = vpop.permute.xlu1 %2337  ;;  %v2403_v0 = vpop.permute.xlu0 %2402 }
 0xab9   : > { %5911 = vmatprep.subr.msk.bf16.mxu1 %vm986_vm1, %v2338_v60  ;;  %5912 = vmatprep.subr.msk.bf16.mxu0 %vm986_vm1, %v2403_v0  ;;  %v2413_v3 = vsel %vm986_vm1, %v2403_v0, 0  ;;  %v2349_v16 = vsel %vm986_vm1, %v2338_v60, 0 }
 0xaba   : > { %5686 = vmatpush3.bf16.xpose.msra.mxu0 %v2413_v3 }
 0xabc   : > { %v6256_v13 = vpop.permute.xlu1 %6255 }
 0xabd   : > { %v2405_v15 = vpop.permute.xlu0 %2404  ;;  %v6258_v17 = vunpack.i.h.bf16 %v6256_v13  ;;  %v6257_v2 = vunpack.i.l.bf16 %v6256_v13 }
 0xabe   : > { %5913 = vmatprep.subr.msk.bf16.mxu0 %vm986_vm1, %v2405_v15  ;;  %5680 = vmatpush3.bf16.xpose.msra.mxu1 %v2349_v16  ;;  %v2416_v18 = vsel %vm986_vm1, %v2405_v15, 0 }
 0xabf   : > { %v2253_v9 = vpack.c.bf16 %v6258_v17, %v6257_v2 }
 0xac0   : > { %v2470_v5 = vpop.permute.xlu1 %2469 }
 0xac1   : > { %v6261_v7 = vpop.permute.xlu0 %6260  ;;  %5914 = vmatprep.subr.msk.bf16.mxu1 %vm986_vm1, %v2470_v5  ;;  %v2480_v25 = vsel %vm986_vm1, %v2470_v5, 0 }
 0xac2   : > { %v6263_v63 = vunpack.i.h.bf16 %v6261_v7  ;;  %v6262_v20 = vunpack.i.l.bf16 %v6261_v7  ;;  %5688 = vmatpush3.bf16.xpose.msra.mxu0 %v2416_v18 }
 0xac4   : > { %v2254_v14 = vpack.c.bf16 %v6263_v63, %v6262_v20  ;;  %v2472_v24 = vpop.permute.xlu1 %2471 }
 0xac5   : > { %v6271_v4 = vpop.permute.xlu0 %6270  ;;  %5682 = vmatmul.mubr.msk.bf16.vlgmr.msra.gmra.mrb[20].mxu1 %vm986_vm1, %v2253_v9  ;;  %v2483_v58 = vsel %vm986_vm1, %v2472_v24, 0 }
 0xac6   : > { %v6273_v19 = vunpack.i.h.bf16 %v6271_v4  ;;  %v6272_v23 = vunpack.i.l.bf16 %v6271_v4  ;;  %5689 = vmatprep.mubr.msk.bf16.mxu0 %vm986_vm1, %v2254_v14  ;;  %5694 = vmatpush3.bf16.xpose.msra.mxu1 %v2480_v25 }
 0xac7   : > { %5915 = vmatprep.subr.msk.bf16.mxu1 %vm986_vm1, %v2472_v24 }
 0xac8   : > { %v2256_v29 = vpack.c.bf16 %v6273_v19, %v6272_v23  ;;  %v6266_v30 = vpop.permute.xlu1 %6265 }
 0xac9   : > { %v6268_v22 = vunpack.i.h.bf16 %v6266_v30  ;;  %v6267_v32 = vunpack.i.l.bf16 %v6266_v30 }
 0xaca   : > { %5697 = vmatprep.mubr.msk.bf16.mxu1 %vm986_vm1, %v2256_v29 }
 0xacb   : > { %v2255_v57 = vpack.c.bf16 %v6268_v22, %v6267_v32 }
 0xacc   : > { %v6276_v55 = vpop.permute.xlu1 %6275 }
 0xacd   : > { %5690 = vmatmul.mubr.msk.bf16.vlgmr.msra.gmra.mrb[32].mxu0 %vm986_vm1, %v2255_v57  ;;  %v6278_v61 = vunpack.i.h.bf16 %v6276_v55  ;;  %v6277_v33 = vunpack.i.l.bf16 %v6276_v55 }
 0xace   : > { %5696 = vmatpush3.bf16.xpose.msra.mxu1 %v2483_v58 }
 0xacf   : > { %v2257_v34 = vpack.c.bf16 %v6278_v61, %v6277_v33 }
 0xad0   : > { %v2719_v26 = vpop.permute.xlu1 %2718 }
 0xad1   : > { %5701 = vmatprep.subr.bf16.mxu0 %v2719_v26 }
 0xad2   : > { %5702 = vmatpush3.bf16.msra.mxu0 %v2719_v26 }
 0xad5   : > { %5698 = vmatmul.mubr.msk.bf16.vlgmr.msra.gmra.mrb[24].mxu1 %vm986_vm1, %v2257_v34 }
 0xb2d   : > { %v5675_v28 = vpop.f32.mrb[28].mxu0 }
 0xb2e   : > { %v8175_v44 = vadd.f32 %v5675_v28, %v2079_v37  ;;  %v2318_v47 = vpop.f32.mrb[29].mxu0 }
 0xb2f   : > { %v5676_v35 = vpop.f32.mrb[30].mxu0  ;;  %v8180_v50 = vadd.f32 %v2318_v47, %v2077_v42 }
 0xb30   : > { %v2321_v38 = vpop.f32.mrb[31].mxu0  ;;  %v2540_v40 = vsel %vm1088_vm2, %v8175_v44, -inf  ;;  %v8191_v53 = vadd.f32 %v5676_v35, %v2080_v41 }
 0xb31   : > { %v8187_v27 = vadd.f32 %v2321_v38, %v2078_v48  ;;  %2541 = vmax.xlane.f32.xlu0 %v2540_v40  ;;  %v2534_v21 = vsel %vm1088_vm2, %v8180_v50, -inf }
 0xb32   : > { %v2543_v46 = vsel %vm1088_vm2, %v8191_v53, -inf }
 0xb33   : > { %v2537_v62 = vsel %vm1088_vm2, %v8187_v27, -inf }
 0xb34   : > { %2538 = vmax.xlane.f32.xlu1 %v2537_v62 }
 0xb35   : > { %2535 = vmax.xlane.f32.xlu0 %v2534_v21 }
 0xb39   : > { %2544 = vmax.xlane.f32.xlu0 %v2543_v46 }
 0xb98   : > { %v5683_v43 = vpop.f32.mrb[20].mxu1 }
 0xb99   : > { %v8197_v56 = vadd.f32 %v5683_v43, %v2079_v37  ;;  %v2385_v54 = vpop.f32.mrb[21].mxu1 }
 0xb9a   : > { %v5684_v10 = vpop.f32.mrb[22].mxu1  ;;  %v8207_v17 = vadd.f32 %v2385_v54, %v2077_v42 }
 0xb9b   : > { %v8199_v39 = vadd.f32 %v5684_v10, %v2080_v41  ;;  %v2388_v59 = vpop.f32.mrb[23].mxu1  ;;  %v2552_v60 = vsel %vm1088_vm2, %v8197_v56, -inf }
 0xb9c   : > { %2553 = vmax.xlane.f32.xlu1 %v2552_v60  ;;  %v8213_v18 = vadd.f32 %v2388_v59, %v2078_v48  ;;  %v2546_v9 = vsel %vm1088_vm2, %v8207_v17, -inf }
 0xb9d   : > { %v2555_v0 = vsel %vm1088_vm2, %v8199_v39, -inf }
 0xb9e   : > { %2556 = vmax.xlane.f32.xlu0 %v2555_v0  ;;  %v2549_v25 = vsel %vm1088_vm2, %v8213_v18, -inf }
 0xba0   : > { %v5691_v3 = vpop.f32.mrb[32].mxu0 }
 0xba1   : > { %v8205_v13 = vadd.f32 %v5691_v3, %v2079_v37  ;;  %v2452_v15 = vpop.f32.mrb[33].mxu0 }
 0xba2   : > { %v5692_v16 = vpop.f32.mrb[34].mxu0  ;;  %v8217_v20 = vadd.f32 %v2452_v15, %v2077_v42 }
 0xba3   : > { %v8209_v2 = vadd.f32 %v5692_v16, %v2080_v41  ;;  %v2455_v5 = vpop.f32.mrb[35].mxu0  ;;  %v2564_v7 = vsel %vm1088_vm2, %v8205_v13, -inf }
 0xba4   : > { %2565 = vmax.xlane.f32.xlu1 %v2564_v7  ;;  %v8221_v24 = vadd.f32 %v2455_v5, %v2078_v48  ;;  %v2558_v30 = vsel %vm1088_vm2, %v8217_v20, -inf }
 0xba5   : > { %v2567_v63 = vsel %vm1088_vm2, %v8209_v2, -inf }
 0xba6   : > { %2568 = vmax.xlane.f32.xlu0 %v2567_v63  ;;  %v2561_v32 = vsel %vm1088_vm2, %v8221_v24, -inf }
 0xba8   : > { %v5699_v14 = vpop.f32.mrb[24].mxu1  ;;  %2547 = vmax.xlane.f32.xlu1 %v2546_v9 }
 0xba9   : > { %v2519_v4 = vpop.f32.mrb[25].mxu1  ;;  %v8225_v23 = vadd.f32 %v5699_v14, %v2079_v37 }
 0xbaa   : > { %v5700_v19 = vpop.f32.mrb[26].mxu1  ;;  %2550 = vmax.xlane.f32.xlu0 %v2549_v25  ;;  %v8233_v57 = vadd.f32 %v2519_v4, %v2077_v42 }
 0xbab   : > { %v2522_v29 = vpop.f32.mrb[27].mxu1  ;;  %v8229_v22 = vadd.f32 %v5700_v19, %v2080_v41  ;;  %v2576_v55 = vsel %vm1088_vm2, %v8225_v23, -inf }
 0xbac   : > { %2559 = vmax.xlane.f32.xlu1 %v2558_v30  ;;  %v8237_v58 = vadd.f32 %v2522_v29, %v2078_v48  ;;  %v2570_v33 = vsel %vm1088_vm2, %v8233_v57, -inf }
 0xbad   : > { %v2579_v61 = vsel %vm1088_vm2, %v8229_v22, -inf }
 0xbae   : > { %2562 = vmax.xlane.f32.xlu0 %v2561_v32  ;;  %v2573_v26 = vsel %vm1088_vm2, %v8237_v58, -inf }
 0xbb0   : > { %2577 = vmax.xlane.f32.xlu1 %v2576_v55 }
 0xbb2   : > { %2580 = vmax.xlane.f32.xlu0 %v2579_v61 }
 0xbb4   : > { %2571 = vmax.xlane.f32.xlu1 %v2570_v33 }
 0xbb6   : > { %2574 = vmax.xlane.f32.xlu0 %v2573_v26 }
 0xbbe   : > { %v2542_v34 = vpop.xlane.xlu0 %2541 }
 0xbc1   : > { %v2539_v47 = vpop.xlane.xlu1 %2538 }
 0xbc2   : > { %v2536_v37 = vpop.xlane.xlu0 %2535  ;;  %v2583_v48 = vsub.f32 %v8187_v27, %v2539_v47 }
 0xbc3   : > { %v2582_v38 = vsub.f32 %v8180_v50, %v2536_v37 }
 0xbc5   : > { %2720 = vrot.lane.b32.xlu1 %v8091_v12, %s7202_s5  ;;  %v2584_v12 = vsub.f32 %v8175_v44, %v2542_v34 }
 0xbc6   : > { %v2545_v28 = vpop.xlane.xlu0 %2544 }
 0xbc7   : > { %v2585_v42 = vsub.f32 %v8191_v53, %v2545_v28  ;;  %v2602_v35 = vmul.f32 1.442695, %v2584_v12 }
 0xbc9   : > { %2781 = vrot.lane.b32.xlu1 %v8119_v45, %s7202_s5  ;;  %v2604_v45 = vmul.f32 1.442695, %v2585_v42 }
 0xbcb   : > { %6495 = vpow2.f32 %v2604_v45 }
 0xbcc   : > { %2779 = vrot.lane.b32.xlu0 %v8115_v36, %s7202_s5  ;;  %v2600_v36 = vmul.f32 1.442695, %v2583_v48  ;;  %6497 = vpow2.f32 %v2602_v35 }
 0xbcd   : > { %2901 = vrot.lane.b32.xlu1 %v8134_v49, %s7202_s5  ;;  %v2598_v49 = vmul.f32 1.442695, %v2582_v38 }
 0xbce   : > { %6499 = vpow2.f32 %v2600_v36 }
 0xbcf   : > { %6501 = vpow2.f32 %v2598_v49 }
 0xbd0   : > { %2840 = vrot.lane.b32.xlu0 %v8121_v31, %s7202_s5 }
 0xbd5   : > { %v8259_v40 = vpop.eup %6495 }
 0xbd6   : > { %v8261_v31 = vpop.eup %6497  ;;  %v2639_v41 = vsel %vm1088_vm2, %v8259_v40, 0.0 }
 0xbd7   : > { %v2636_v27 = vsel %vm1088_vm2, %v8261_v31, 0.0 }
 0xbd8   : > { %v8265_v44 = vpop.eup %6499 }
 0xbd9   : > { %v8269_v50 = vpop.eup %6501  ;;  %v2633_v62 = vsel %vm1088_vm2, %v8265_v44, 0.0 }
 0xbda   : > { %v2630_v53 = vsel %vm1088_vm2, %v8269_v50, 0.0 }
 0xbef   : > { %2640 = vadd.xlane.f32.xlu0 %v2639_v41 }
 0xbf1   : > { %2637 = vadd.xlane.f32.xlu1 %v2636_v27 }
 0xbf3   : > { %2634 = vadd.xlane.f32.xlu0 %v2633_v62 }
 0xbf5   : > { %2631 = vadd.xlane.f32.xlu1 %v2630_v53 }
 0xc29   : > { %v2554_v21 = vpop.xlane.xlu1 %2553 }
 0xc2a   : > { %v2588_v46 = vsub.f32 %v8197_v56, %v2554_v21 }
 0xc2b   : > { %v2557_v43 = vpop.xlane.xlu0 %2556 }
 0xc2c   : > { %v2610_v54 = vmul.f32 1.442695, %v2588_v46  ;;  %v2589_v10 = vsub.f32 %v8199_v39, %v2557_v43 }
 0xc2e   : > { %6503 = vpow2.f32 %v2610_v54  ;;  %v2612_v59 = vmul.f32 1.442695, %v2589_v10 }
 0xc30   : > { %6505 = vpow2.f32 %v2612_v59 }
 0xc31   : > { %v2566_v60 = vpop.xlane.xlu1 %2565 }
 0xc32   : > { %v2592_v0 = vsub.f32 %v8205_v13, %v2566_v60 }
 0xc33   : > { %v2569_v3 = vpop.xlane.xlu0 %2568 }
 0xc34   : > { %v2618_v15 = vmul.f32 1.442695, %v2592_v0  ;;  %v2593_v16 = vsub.f32 %v8209_v2, %v2569_v3 }
 0xc35   : > { %v2548_v5 = vpop.xlane.xlu1 %2547 }
 0xc36   : > { %6507 = vpow2.f32 %v2618_v15  ;;  %v2620_v7 = vmul.f32 1.442695, %v2593_v16  ;;  %v2586_v63 = vsub.f32 %v8207_v17, %v2548_v5 }
 0xc37   : > { %v2551_v56 = vpop.xlane.xlu0 %2550 }
 0xc38   : > { %v8280_v9 = vpop.eup %6503  ;;  %6509 = vpow2.f32 %v2620_v7  ;;  %v2606_v39 = vmul.f32 1.442695, %v2586_v63  ;;  %v2587_v14 = vsub.f32 %v8213_v18, %v2551_v56 }
 0xc39   : > { %v2560_v4 = vpop.xlane.xlu1 %2559  ;;  %v2648_v13 = vsel %vm1088_vm2, %v8280_v9, 0.0 }
 0xc3a   : > { %v8285_v25 = vpop.eup %6505  ;;  %6511 = vpow2.f32 %v2606_v39  ;;  %v2608_v2 = vmul.f32 1.442695, %v2587_v14  ;;  %v2590_v19 = vsub.f32 %v8217_v20, %v2560_v4  ;;  %2649 = vadd.xlane.f32.xlu1 %v2648_v13 }
 0xc3b   : > { %v2563_v29 = vpop.xlane.xlu0 %2562  ;;  %v2651_v17 = vsel %vm1088_vm2, %v8285_v25, 0.0 }
 0xc3c   : > { %6513 = vpow2.f32 %v2608_v2  ;;  %v2614_v30 = vmul.f32 1.442695, %v2590_v19  ;;  %v2591_v32 = vsub.f32 %v8221_v24, %v2563_v29  ;;  %2652 = vadd.xlane.f32.xlu0 %v2651_v17 }
 0xc3d   : > { %v2578_v18 = vpop.xlane.xlu1 %2577 }
 0xc3e   : > { %6515 = vpow2.f32 %v2614_v30  ;;  %v2616_v55 = vmul.f32 1.442695, %v2591_v32  ;;  %v2596_v61 = vsub.f32 %v8225_v23, %v2578_v18 }
 0xc3f   : > { %v2581_v33 = vpop.xlane.xlu0 %2580 }
 0xc40   : > { %v8292_v26 = vpop.eup %6507  ;;  %6517 = vpow2.f32 %v2616_v55  ;;  %v2626_v20 = vmul.f32 1.442695, %v2596_v61  ;;  %v2597_v34 = vsub.f32 %v8229_v22, %v2581_v33 }
 0xc41   : > { %v2572_v37 = vpop.xlane.xlu1 %2571  ;;  %v2660_v28 = vsel %vm1088_vm2, %v8292_v26, 0.0 }
 0xc42   : > { %v8297_v42 = vpop.eup %6509  ;;  %6519 = vpow2.f32 %v2626_v20  ;;  %v2628_v24 = vmul.f32 1.442695, %v2597_v34  ;;  %v2594_v47 = vsub.f32 %v8233_v57, %v2572_v37  ;;  %2661 = vadd.xlane.f32.xlu1 %v2660_v28 }
 0xc43   : > { %v2575_v12 = vpop.xlane.xlu0 %2574  ;;  %v2663_v23 = vsel %vm1088_vm2, %v8297_v42, 0.0 }
 0xc44   : > { %v8302_v48 = vpop.eup %6511  ;;  %6521 = vpow2.f32 %v2628_v24  ;;  %v2622_v45 = vmul.f32 1.442695, %v2594_v47  ;;  %v2595_v22 = vsub.f32 %v8237_v58, %v2575_v12  ;;  %2664 = vadd.xlane.f32.xlu0 %v2663_v23 }
 0xc45   : > { %v2721_v35 = vpop.permute.xlu1 %2720  ;;  %v2642_v38 = vsel %vm1088_vm2, %v8302_v48, 0.0 }
 0xc46   : > { %v8307_v36 = vpop.eup %6513  ;;  %6523 = vpow2.f32 %v2622_v45  ;;  %v2624_v57 = vmul.f32 1.442695, %v2595_v22  ;;  %5703 = vmatprep.subr.bf16.mxu0 %v2721_v35  ;;  %2643 = vadd.xlane.f32.xlu1 %v2642_v38 }
 0xc47   : > { %5704 = vmatpush3.bf16.msra.mxu0 %v2721_v35  ;;  %v2780_v49 = vpop.permute.xlu0 %2779  ;;  %v2645_v41 = vsel %vm1088_vm2, %v8307_v36, 0.0 }
 0xc48   : > { %v8311_v27 = vpop.eup %6515  ;;  %6525 = vpow2.f32 %v2624_v57  ;;  %2646 = vadd.xlane.f32.xlu0 %v2645_v41  ;;  %5709 = vmatprep.subr.bf16.mxu1 %v2780_v49 }
 0xc49   : > { %v2782_v58 = vpop.permute.xlu1 %2781  ;;  %5710 = vmatpush3.bf16.msra.mxu1 %v2780_v49  ;;  %v2654_v62 = vsel %vm1088_vm2, %v8311_v27, 0.0 }
 0xc4a   : > { %v8315_v53 = vpop.eup %6517  ;;  %2655 = vadd.xlane.f32.xlu1 %v2654_v62  ;;  %5711 = vmatprep.subr.bf16.mxu1 %v2782_v58 }
 0xc4b   : > { %v2841_v21 = vpop.permute.xlu0 %2840  ;;  %v2657_v46 = vsel %vm1088_vm2, %v8315_v53, 0.0 }
 0xc4c   : > { %v8319_v43 = vpop.eup %6519  ;;  %2658 = vadd.xlane.f32.xlu0 %v2657_v46  ;;  %5717 = vmatprep.subr.bf16.mxu0 %v2841_v21 }
 0xc4d   : > { %v8321_v54 = vpop.permute.xlu1 %2901  ;;  %5712 = vmatpush3.bf16.msra.mxu1 %v2782_v58  ;;  %v2672_v10 = vsel %vm1088_vm2, %v8319_v43, 0.0 }
 0xc4e   : > { %v8325_v59 = vpop.eup %6521  ;;  %2673 = vadd.xlane.f32.xlu1 %v2672_v10  ;;  %5725 = vmatprep.subr.bf16.mxu1 %v8321_v54 }
 0xc4f   : > { %v2675_v60 = vsel %vm1088_vm2, %v8325_v59, 0.0 }
 0xc50   : > { %v8330_v0 = vpop.eup %6523  ;;  %2676 = vadd.xlane.f32.xlu0 %v2675_v60 }
 0xc51   : > { %v2666_v3 = vsel %vm1088_vm2, %v8330_v0, 0.0 }
 0xc52   : > { %v8334_v15 = vpop.eup %6525  ;;  %2667 = vadd.xlane.f32.xlu1 %v2666_v3 }
 0xc53   : > { %v2669_v16 = vsel %vm1088_vm2, %v8334_v15, 0.0 }
 0xc54   : > { %2670 = vadd.xlane.f32.xlu0 %v2669_v16 }
 0xc63   : > { %2903 = vrot.lane.b32.xlu1 %v8140_v52, %s7202_s5 }
 0xc6a   : > { %2842 = vrot.lane.b32.xlu0 %v8127_v51, %s7202_s5 }
 0xc7c   : > { %v2641_v5 = vpop.xlane.xlu0 %2640 }
 0xc7e   : > { %v2638_v7 = vpop.xlane.xlu1 %2637 }
 0xc7f   : > { %6527 = vrcp.f32 %v2638_v7 }
 0xc80   : > { %v2635_v63 = vpop.xlane.xlu0 %2634 }
 0xc81   : > { %6529 = vrcp.f32 %v2635_v63 }
 0xc82   : > { %6531 = vrcp.f32 %v2641_v5  ;;  %v2632_v56 = vpop.xlane.xlu1 %2631 }
 0xc83   : > { %6533 = vrcp.f32 %v2632_v56 }
 0xc89   : > { %v6528_v39 = vpop.eup %6527 }
 0xc8a   : > { %v2683_v2 = vmul.f32 %v6528_v39, %v8261_v31 }
 0xc8b   : > { %v6530_v14 = vpop.eup %6529 }
 0xc8c   : > { %v6532_v4 = vpop.eup %6531  ;;  %v2681_v52 = vmul.f32 %v6530_v14, %v8265_v44 }
 0xc8d   : > { %v6534_v13 = vpop.eup %6533  ;;  %v2685_v51 = vmul.f32 %v6532_v4, %v8259_v40 }
 0xc8e   : > { %v2679_v19 = vmul.f32 %v6534_v13, %v8269_v50 }
 0xc8f   : > { %v2711_v17 = vpack.c.bf16 %v2685_v51, %v2683_v2 }
 0xc90   : > { %v2710_v29 = vpack.c.bf16 %v2681_v52, %v2679_v19 }
 0xc92   : > { %5705 = vmatprep.mubr.msk.bf16.mxu0 %vm1088_vm2, %v2710_v29 }
 0xc93   : > { %5706 = vmatmul.mubr.msk.bf16.vlgmr.msra.gmra.mrb[36].mxu0 %vm1088_vm2, %v2711_v17 }
 0xc94   : > { %5718 = vmatpush3.bf16.msra.mxu0 %v2841_v21 }
 0xcc7   : > { %v2650_v30 = vpop.xlane.xlu1 %2649 }
 0xcc9   : > { %v2653_v32 = vpop.xlane.xlu0 %2652 }
 0xcca   : > { %6535 = vrcp.f32 %v2653_v32 }
 0xccf   : > { %v2662_v18 = vpop.xlane.xlu1 %2661 }
 0xcd1   : > { %v2665_v55 = vpop.xlane.xlu0 %2664 }
 0xcd3   : > { %v2644_v61 = vpop.xlane.xlu1 %2643 }
 0xcd4   : > { %6537 = vrcp.f32 %v2644_v61  ;;  %v6536_v33 = vpop.eup %6535 }
 0xcd5   : > { %6539 = vrcp.f32 %v2650_v30  ;;  %v2647_v31 = vpop.xlane.xlu0 %2646  ;;  %v2693_v47 = vmul.f32 %v6536_v33, %v8285_v25  ;;  %v6406_v30 = vld [vmem:[%s8905_s12 + $0x8] sm:$0xff]  }
 0xcd6   : > { %6541 = vrcp.f32 %v2647_v31 }
 0xcd7   : > { %6543 = vrcp.f32 %v2665_v55  ;;  %v2656_v44 = vpop.xlane.xlu1 %2655 }
 0xcd8   : > { %6545 = vrcp.f32 %v2656_v44 }
 0xcd9   : > { %6547 = vrcp.f32 %v2662_v18  ;;  %v2659_v40 = vpop.xlane.xlu0 %2658 }
 0xcda   : > { %6549 = vrcp.f32 %v2659_v40 }
 0xcdb   : > { %v2674_v50 = vpop.xlane.xlu1 %2673 }
 0xcdd   : > { %v2677_v20 = vpop.xlane.xlu0 %2676 }
 0xcde   : > { %v6538_v34 = vpop.eup %6537  ;;  %6551 = vrcp.f32 %v2677_v20 }
 0xcdf   : > { %v6540_v37 = vpop.eup %6539  ;;  %v2668_v28 = vpop.xlane.xlu1 %2667  ;;  %v2687_v45 = vmul.f32 %v6538_v34, %v8302_v48 }
 0xce0   : > { %v6542_v24 = vpop.eup %6541  ;;  %6553 = vrcp.f32 %v2668_v28  ;;  %v2691_v38 = vmul.f32 %v6540_v37, %v8280_v9 }
 0xce1   : > { %v6544_v12 = vpop.eup %6543  ;;  %6555 = vrcp.f32 %v2674_v50  ;;  %v2671_v23 = vpop.xlane.xlu0 %2670  ;;  %v2689_v22 = vmul.f32 %v6542_v24, %v8307_v36 }
 0xce2   : > { %v6546_v35 = vpop.eup %6545  ;;  %6557 = vrcp.f32 %v2671_v23  ;;  %v2701_v58 = vmul.f32 %v6544_v12, %v8297_v42  ;;  %v2713_v62 = vpack.c.bf16 %v2693_v47, %v2691_v38 }
 0xce3   : > { %v6548_v57 = vpop.eup %6547  ;;  %v2712_v49 = vpack.c.bf16 %v2689_v22, %v2687_v45  ;;  %v2695_v21 = vmul.f32 %v6546_v35, %v8311_v27  ;;  %v2904_v9 = vpop.permute.xlu1 %2903 }
 0xce4   : > { %v6550_v41 = vpop.eup %6549  ;;  %v2699_v48 = vmul.f32 %v6548_v57, %v8292_v26 }
 0xce5   : > { %5713 = vmatprep.mubr.msk.bf16.mxu1 %vm1088_vm2, %v2712_v49  ;;  %v2843_v25 = vpop.permute.xlu0 %2842  ;;  %v2697_v46 = vmul.f32 %v6550_v41, %v8315_v53 }
 0xce6   : > { %5714 = vmatmul.mubr.msk.bf16.vlgmr.msra.gmra.mrb[28].mxu1 %vm1088_vm2, %v2713_v62  ;;  %5719 = vmatprep.subr.bf16.mxu0 %v2843_v25  ;;  %v2715_v42 = vpack.c.bf16 %v2701_v58, %v2699_v48 }
 0xce7   : > { %5726 = vmatpush3.bf16.msra.mxu1 %v8321_v54  ;;  %5720 = vmatpush3.bf16.msra.mxu0 %v2843_v25  ;;  %v2714_v36 = vpack.c.bf16 %v2697_v46, %v2695_v21 }
 0xce8   : > { %5727 = vmatprep.subr.bf16.mxu1 %v2904_v9  ;;  %v6552_v10 = vpop.eup %6551 }
 0xce9   : > { %5721 = vmatprep.mubr.msk.bf16.mxu0 %vm1088_vm2, %v2714_v36  ;;  %v2709_v26 = vmul.f32 %v6552_v10, %v8325_v59  ;;  %v6405_v59 = vld [vmem:[%s8905_s12] sm:$0xff]  }
 0xcea   : > { %v6554_v60 = vpop.eup %6553  ;;  %5722 = vmatmul.mubr.msk.bf16.vlgmr.msra.gmra.mrb[40].mxu0 %vm1088_vm2, %v2715_v42  ;;  %5733 = vmatprep.subr.bf16.mxu0 %v6405_v59 }
 0xceb   : > { %v6556_v27 = vpop.eup %6555  ;;  %5728 = vmatpush3.bf16.msra.mxu1 %v2904_v9  ;;  %v2703_v3 = vmul.f32 %v6554_v60, %v8330_v0  ;;  %5734 = vmatpush3.bf16.msra.mxu0 %v6405_v59 }
 0xcec   : > { %v6558_v53 = vpop.eup %6557  ;;  %v2707_v54 = vmul.f32 %v6556_v27, %v8319_v43  ;;  %5735 = vmatprep.subr.bf16.mxu0 %v6406_v30 }
 0xced   : > { %v2705_v16 = vmul.f32 %v6558_v53, %v8334_v15 }
 0xcee   : > { %v2717_v7 = vpack.c.bf16 %v2709_v26, %v2707_v54 }
 0xcef   : > { %v2716_v5 = vpack.c.bf16 %v2705_v16, %v2703_v3  ;;  %5736 = vmatpush3.bf16.msra.mxu0 %v6406_v30  ;;  %v5315_v16 = vld [vmem:[#allocation15] ss:$0 sm:$0xff] }
 0xcf1   : > { %5729 = vmatprep.mubr.msk.bf16.mxu1 %vm1088_vm2, %v2716_v5 }
 0xcf2   : > { %5730 = vmatmul.mubr.msk.bf16.vlgmr.msra.gmra.mrb[32].mxu1 %vm1088_vm2, %v2717_v7 }
 0xd66   : > { %v5707_v63 = vpop.f32.mrb[36].mxu0 }
 0xd67   : > { %v2764_v56 = vpop.f32.mrb[37].mxu0 }
 0xd68   : > { %v5708_v39 = vpop.f32.mrb[38].mxu0 }
 0xd69   : > { %v2767_v14 = vpop.f32.mrb[39].mxu0 }
 0xdb9   : > { %v5715_v4 = vpop.f32.mrb[28].mxu1 }
 0xdba   : > { %v2825_v0 = vpop.f32.mrb[29].mxu1 }
 0xdbb   : > { %v5716_v15 = vpop.f32.mrb[30].mxu1 }
 0xdbc   : > { %v6279_v43 = vpack.i.bf16 %v5716_v15, %v5715_v4  ;;  %v2828_v13 = vpop.f32.mrb[31].mxu1 }
 0xdbd   : > { %v6289_v2 = vpack.i.bf16 %v2828_v13, %v2825_v0  ;;  %v5723_v19 = vpop.f32.mrb[40].mxu0 }
 0xdbe   : > { %6280 = vrot.lane.b32.xlu1 %v6279_v43, %s7203_s28  ;;  %v2886_v52 = vpop.f32.mrb[41].mxu0 }
 0xdbf   : > { %6290 = vrot.lane.b32.xlu0 %v6289_v2, %s7203_s28  ;;  %v5724_v51 = vpop.f32.mrb[42].mxu0 }
 0xdc0   : > { %v6284_v29 = vpack.i.bf16 %v5724_v51, %v5723_v19  ;;  %v2889_v17 = vpop.f32.mrb[43].mxu0 }
 0xdc1   : > { %v6294_v32 = vpack.i.bf16 %v2889_v17, %v2886_v52 }
 0xdc2   : > { %6285 = vrot.lane.b32.xlu1 %v6284_v29, %s7204_s13 }
 0xdc3   : > { %6295 = vrot.lane.b32.xlu0 %v6294_v32, %s7204_s13 }
 0xdc5   : > { %v5731_v18 = vpop.f32.mrb[32].mxu1 }
 0xdc6   : > { %v2947_v55 = vpop.f32.mrb[33].mxu1 }
 0xdc7   : > { %v5732_v61 = vpop.f32.mrb[34].mxu1 }
 0xdc8   : > { %v6304_v31 = vpack.i.bf16 %v5732_v61, %v5731_v18  ;;  %v2950_v44 = vpop.f32.mrb[35].mxu1 }
 0xdc9   : > { %v6299_v40 = vpack.i.bf16 %v2950_v44, %v2947_v55 }
 0xdca   : > { %6305 = vrot.lane.b32.xlu1 %v6304_v31, %s7205_s15 }
 0xdcb   : > { %6300 = vrot.lane.b32.xlu0 %v6299_v40, %s7205_s15 }
 0xe30   : > { %v6281_v50 = vpop.permute.xlu1 %6280 }
 0xe31   : > { %v6291_v33 = vpop.permute.xlu0 %6290  ;;  %v6283_v34 = vunpack.i.h.bf16 %v6281_v50  ;;  %v6282_v37 = vunpack.i.l.bf16 %v6281_v50 }
 0xe32   : > { %v6293_v24 = vunpack.i.h.bf16 %v6291_v33  ;;  %v6292_v47 = vunpack.i.l.bf16 %v6291_v33 }
 0xe33   : > { %v3013_v35 = vsel %vm986_vm1, %v5708_v39, %v6283_v34  ;;  %v3012_v38 = vsel %vm986_vm1, %v5707_v63, %v6282_v37 }
 0xe34   : > { %v6286_v20 = vpop.permute.xlu1 %6285  ;;  %v3011_v49 = vsel %vm986_vm1, %v2767_v14, %v6293_v24  ;;  %v3010_v41 = vsel %vm986_vm1, %v2764_v56, %v6292_v47  ;;  %v6408_v24 = vld [vmem:[%s8909_s16 + $0x8] sm:$0xff]   ;;  %v6409_v47 = vld [vmem:[%s8911_s18] sm:$0xff]  }
 0xe35   : > { %v6296_v28 = vpop.permute.xlu0 %6295  ;;  %v6288_v12 = vunpack.i.h.bf16 %v6286_v20  ;;  %v6287_v23 = vunpack.i.l.bf16 %v6286_v20  ;;  %5749 = vmatprep.subr.bf16.mxu0 %v6409_v47 }
 0xe36   : > { %v6298_v45 = vunpack.i.h.bf16 %v6296_v28  ;;  %v6297_v22 = vunpack.i.l.bf16 %v6296_v28  ;;  %v6407_v28 = vld [vmem:[%s8909_s16] sm:$0xff]  }
 0xe37   : > { %v3017_v21 = vsel %vm1992_vm3, %v3013_v35, %v6288_v12  ;;  %v3016_v46 = vsel %vm1992_vm3, %v3012_v38, %v6287_v23  ;;  %5741 = vmatprep.subr.bf16.mxu1 %v6407_v28  ;;  %v6410_v12 = vld [vmem:[%s8911_s18 + $0x8] sm:$0xff]   ;;  %v6411_v23 = vld [vmem:[%s8911_s18 + $0x10] sm:$0xff]  }
 0xe38   : > { %v3014_v36 = vsel %vm1992_vm3, %v3010_v41, %v6297_v22  ;;  %v3015_v42 = vsel %vm1992_vm3, %v3011_v49, %v6298_v45  ;;  %5742 = vmatpush3.bf16.msra.mxu1 %v6407_v28  ;;  %v6412_v45 = vld [vmem:[%s8911_s18 + $0x18] sm:$0xff]   ;;  %v6413_v22 = vld [vmem:[%s8911_s18 + $0x20] sm:$0xff]   ;;  %v6414_v35 = vld [vmem:[%s8911_s18 + $0x28] sm:$0xff]  }
 0xe39   : > { %5743 = vmatprep.subr.bf16.mxu1 %v6408_v24 }
 0xe3c   : > { %v6306_v57 = vpop.permute.xlu1 %6305  ;;  %5744 = vmatpush3.bf16.msra.mxu1 %v6408_v24 }
 0xe3d   : > { %v6308_v58 = vunpack.i.h.bf16 %v6306_v57  ;;  %v6307_v62 = vunpack.i.l.bf16 %v6306_v57  ;;  %v6301_v25 = vpop.permute.xlu0 %6300 }
 0xe3e   : > { %v6303_v48 = vunpack.i.h.bf16 %v6301_v25  ;;  %v6302_v9 = vunpack.i.l.bf16 %v6301_v25 }
 0xe3f   : > { %v3020_v10 = vsel %vm1997_vm4, %v3016_v46, %v6307_v62  ;;  %v3021_v60 = vsel %vm1997_vm4, %v3017_v21, %v6308_v58 }
 0xe40   : > { %v3023_v27 = vpack.c.bf16 %v3021_v60, %v3020_v10  ;;  %v3018_v53 = vsel %vm1997_vm4, %v3014_v36, %v6302_v9  ;;  %v3019_v26 = vsel %vm1997_vm4, %v3015_v42, %v6303_v48  ;;  %v5320_v10 = vld [vmem:[#allocation17] ss:$0 sm:$0xff] }
 0xe41   : > { %v3022_v3 = vpack.c.bf16 %v3019_v26, %v3018_v53 }
 0xe43   : > { %5737 = vmatprep.mubr.msk.bf16.mxu0 %vm1088_vm2, %v3022_v3 }
 0xe44   : > { %5738 = vmatmul.mubr.msk.bf16.vlgmr.msra.gmra.mrb[44].mxu0 %vm1088_vm2, %v3023_v27 }
 0xe45   : > { %5750 = vmatpush3.bf16.msra.mxu0 %v6409_v47 }
 0xe46   : > { %5751 = vmatprep.subr.bf16.mxu0 %v6410_v12 }
 0xe49   : > { %5752 = vmatpush3.bf16.msra.mxu0 %v6410_v12 }
 0xe4a   : > { %5753 = vmatprep.subr.bf16.mxu0 %v6411_v23 }
 0xe4d   : > { %5754 = vmatpush3.bf16.msra.mxu0 %v6411_v23 }
 0xe4e   : > { %5755 = vmatprep.subr.bf16.mxu0 %v6412_v45 }
 0xe51   : > { %5756 = vmatpush3.bf16.msra.mxu0 %v6412_v45 }
 0xe52   : > { %5757 = vmatprep.subr.bf16.mxu0 %v6413_v22 }
 0xe55   : > { %5758 = vmatpush3.bf16.msra.mxu0 %v6413_v22 }
 0xe56   : > { %5759 = vmatprep.subr.bf16.mxu0 %v6414_v35 }
 0xe59   : > { %5760 = vmatpush3.bf16.msra.mxu0 %v6414_v35 }
 0xf17   : > { %v5739_v54 = vpop.f32.mrb[44].mxu0 }
 0xf18   : > { %v3082_v5 = vpop.f32.mrb[45].mxu0  ;;  %v3091_v7 = vadd.f32 %v5739_v54, %v5315_v16 }
 0xf19   : > { %v3083_v63 = vadd.f32 %v5315_v16, %v3082_v5  ;;  %v5740_v56 = vpop.f32.mrb[46].mxu0 }
 0xf1a   : > { %v3085_v39 = vpop.f32.mrb[47].mxu0  ;;  %v3099_v4 = vadd.f32 %v3091_v7, %v8083_v11  ;;  %v3094_v0 = vadd.f32 %v5740_v56, %v5315_v16 }
 0xf1b   : > { %v3097_v14 = vadd.f32 %v3083_v63, %v8079_v6  ;;  %v3086_v59 = vadd.f32 %v5315_v16, %v3085_v39  ;;  %v5321_v16 = vld [vmem:[#allocation18] ss:$0 sm:$0xff] }
 0xf1c   : > { %v3100_v2 = vadd.f32 %v3094_v0, %v8077_v1  ;;  %v3109_v19 = vsel %vm1088_vm2, %v3099_v4, 0.0 }
 0xf1d   : > { %v3098_v15 = vadd.f32 %v3086_v59, %v8081_v8  ;;  %v3103_v43 = vsel %vm1088_vm2, %v3097_v14, 0.0 }
 0xf1e   : > { %3104 = vadd.xlane.f32.xlu0 %v3103_v43  ;;  %v3112_v52 = vsel %vm1088_vm2, %v3100_v2, 0.0 }
 0xf1f   : > { %v3106_v13 = vsel %vm1088_vm2, %v3098_v15, 0.0 }
 0xf20   : > { %3107 = vadd.xlane.f32.xlu1 %v3106_v13  ;;  %v6415_v13 = vld [vmem:[%s8911_s18 + $0x30] sm:$0xff]  }
 0xf21   : > { %5761 = vmatprep.subr.bf16.mxu0 %v6415_v13 }
 0xf22   : > { %3110 = vadd.xlane.f32.xlu0 %v3109_v19  ;;  %5762 = vmatpush3.bf16.msra.mxu0 %v6415_v13  ;;  %v5322_v19 = vld [vmem:[#allocation20] ss:$0 sm:$0xff] }
 0xf26   : > { %3113 = vadd.xlane.f32.xlu0 %v3112_v52 }
 0xfab   : > { %v3105_v6 = vpop.xlane.xlu0 %3104 }
 0xfac   : > { %v3116_v51 = vmul.f32 0.03125, %v3105_v6 }
 0xfad   : > { %v3108_v11 = vpop.xlane.xlu1 %3107 }
 0xfae   : > { %v8401_v29 = vsub.f32 %v3097_v14, %v3116_v51  ;;  %v3117_v8 = vmul.f32 0.03125, %v3108_v11 }
 0xfaf   : > { %v3111_v17 = vpop.xlane.xlu0 %3110 }
 0xfb0   : > { %v3121_v30 = vsub.f32 %v3098_v15, %v3117_v8  ;;  %v3118_v32 = vmul.f32 0.03125, %v3111_v17  ;;  %v3124_v18 = vmul.f32 %v8401_v29, %v8401_v29 }
 0xfb2   : > { %v8405_v55 = vsub.f32 %v3099_v4, %v3118_v32  ;;  %v3128_v1 = vsel %vm1088_vm2, %v3124_v18, 0.0  ;;  %v3125_v61 = vmul.f32 %v3121_v30, %v3121_v30 }
 0xfb3   : > { %3129 = vadd.xlane.f32.xlu1 %v3128_v1  ;;  %v3114_v31 = vpop.xlane.xlu0 %3113 }
 0xfb4   : > { %v3119_v44 = vmul.f32 0.03125, %v3114_v31  ;;  %v3131_v40 = vsel %vm1088_vm2, %v3125_v61, 0.0  ;;  %v3126_v50 = vmul.f32 %v8405_v55, %v8405_v55 }
 0xfb5   : > { %3132 = vadd.xlane.f32.xlu0 %v3131_v40 }
 0xfb6   : > { %v3123_v33 = vsub.f32 %v3100_v2, %v3119_v44  ;;  %v3134_v20 = vsel %vm1088_vm2, %v3126_v50, 0.0  ;;  %v6416_v2 = vld [vmem:[%s8911_s18 + $0x38] sm:$0xff]   ;;  %v5327_v44 = vld [vmem:[#allocation21] ss:$0 sm:$0xff] }
 0xfb7   : > { %3135 = vadd.xlane.f32.xlu1 %v3134_v20  ;;  %5763 = vmatprep.subr.bf16.mxu0 %v6416_v2 }
 0xfb8   : > { %v3127_v34 = vmul.f32 %v3123_v33, %v3123_v33  ;;  %5764 = vmatpush3.bf16.msra.mxu0 %v6416_v2 }
 0xfba   : > { %v3137_v37 = vsel %vm1088_vm2, %v3127_v34, 0.0 }
 0xfbb   : > { %3138 = vadd.xlane.f32.xlu0 %v3137_v37 }
0x1040   : > { %v3130_v38 = vpop.xlane.xlu1 %3129 }
0x1041   : > { %v3140_v57 = vmul.f32 0.03125, %v3130_v38 }
0x1042   : > { %v3133_v49 = vpop.xlane.xlu0 %3132 }
0x1043   : > { %v3144_v41 = vadd.f32 1e-05, %v3140_v57  ;;  %v3141_v58 = vmul.f32 0.03125, %v3133_v49 }
0x1044   : > { %v3136_v62 = vpop.xlane.xlu1 %3135 }
0x1045   : > { %6559 = vrsqrt.f32 %v3144_v41  ;;  %v3145_v25 = vadd.f32 1e-05, %v3141_v58  ;;  %v3142_v21 = vmul.f32 0.03125, %v3136_v62 }
0x1047   : > { %6561 = vrsqrt.f32 %v3145_v25  ;;  %v3146_v46 = vadd.f32 1e-05, %v3142_v21 }
0x1048   : > { %v3139_v48 = vpop.xlane.xlu0 %3138 }
0x1049   : > { %6563 = vrsqrt.f32 %v3146_v46  ;;  %v3143_v9 = vmul.f32 0.03125, %v3139_v48 }
0x104b   : > { %v3147_v36 = vadd.f32 1e-05, %v3143_v9 }
0x104d   : > { %6565 = vrsqrt.f32 %v3147_v36 }
0x104f   : > { %v6560_v42 = vpop.eup %6559 }
0x1050   : > { %v3152_v60 = vmul.f32 %v6560_v42, %v8401_v29 }
0x1051   : > { %v6562_v27 = vpop.eup %6561 }
0x1052   : > { %v3153_v53 = vmul.f32 %v6562_v27, %v3121_v30  ;;  %v3162_v26 = vmul.f32 %v5320_v10, %v3152_v60 }
0x1053   : > { %v6564_v3 = vpop.eup %6563 }
0x1054   : > { %v3154_v54 = vmul.f32 %v6564_v3, %v8405_v55  ;;  %v3163_v5 = vmul.f32 %v5320_v10, %v3153_v53  ;;  %v3172_v7 = vadd.f32 %v5321_v16, %v3162_v26 }
0x1056   : > { %v3173_v63 = vadd.f32 %v5321_v16, %v3163_v5  ;;  %v3164_v39 = vmul.f32 %v5320_v10, %v3154_v54 }
0x1057   : > { %v6566_v56 = vpop.eup %6565 }
0x1058   : > { %v3155_v14 = vmul.f32 %v6566_v56, %v3123_v33  ;;  %v3176_v59 = vpack.c.bf16 %v3173_v63, %v3172_v7  ;;  %v3174_v0 = vadd.f32 %v5321_v16, %v3164_v39 }
0x105a   : > { %v3165_v4 = vmul.f32 %v5320_v10, %v3155_v14  ;;  %5745 = vmatprep.mubr.msk.bf16.mxu1 %vm1088_vm2, %v3176_v59 }
0x105c   : > { %v3175_v15 = vadd.f32 %v5321_v16, %v3165_v4 }
0x105e   : > { %v3177_v43 = vpack.c.bf16 %v3175_v15, %v3174_v0 }
0x1060   : > { %5746 = vmatmul.mubr.msk.bf16.vlgmr.msra.gmra.mrb[36].mxu1 %vm1088_vm2, %v3177_v43 }
0x1133   : > { %v5747_v52 = vpop.f32.mrb[36].mxu1 }
0x1134   : > { %v3250_v6 = vadd.f32 %v5747_v52, %v5322_v19  ;;  %v3241_v51 = vpop.f32.mrb[37].mxu1 }
0x1135   : > { %v3242_v11 = vadd.f32 %v5322_v19, %v3241_v51  ;;  %v5748_v29 = vpop.f32.mrb[38].mxu1  ;;  %v5336_v51 = vld [vmem:[#allocation23] ss:$0 sm:$0xff] }
0x1136   : > { %v3253_v8 = vadd.f32 %v5748_v29, %v5322_v19  ;;  %v3244_v17 = vpop.f32.mrb[39].mxu1  ;;  %v3258_v32 = vmax.f32 %v3250_v6, 0.0 }
0x1137   : > { %v3245_v30 = vadd.f32 %v5322_v19, %v3244_v17  ;;  %v3256_v55 = vmax.f32 %v3242_v11, 0.0 }
0x1138   : > { %v3259_v18 = vmax.f32 %v3253_v8, 0.0 }
0x1139   : > { %v3257_v1 = vmax.f32 %v3245_v30, 0.0 }
0x113a   : > { %v3261_v61 = vpack.c.bf16 %v3259_v18, %v3258_v32  ;;  %v5337_v32 = vld [vmem:[#allocation24] ss:$0 sm:$0xff] }
0x113b   : > { %v3260_v31 = vpack.c.bf16 %v3257_v1, %v3256_v55 }
0x113d   : > { %5765 = vmatprep.mubr.bf16.mxu0 %v3260_v31 }
0x113e   : > { %5766 = vmatmul.mubr.bf16.vlgmr.msra.gmra.mrb[48].mxu0 %v3261_v61 }
0x1211   : > { %v5767_v40 = vpop.f32.mrb[48].mxu0 }
0x1212   : > { %v3367_v50 = vpop.f32.mrb[49].mxu0  ;;  %v3376_v33 = vadd.f32 %v5767_v40, %v5327_v44 }
0x1213   : > { %v3368_v20 = vadd.f32 %v5327_v44, %v3367_v50  ;;  %v5768_v34 = vpop.f32.mrb[50].mxu0 }
0x1214   : > { %v3370_v37 = vpop.f32.mrb[51].mxu0  ;;  %v3379_v24 = vadd.f32 %v5768_v34, %v5327_v44  ;;  %v3384_v12 = vadd.f32 %v3376_v33, %v3174_v0 }
0x1215   : > { %v3382_v28 = vadd.f32 %v3368_v20, %v3172_v7  ;;  %v3371_v47 = vadd.f32 %v5327_v44, %v3370_v37  ;;  %v6417_v7 = vld [vmem:[%s8903_s10 + $0x10] sm:$0xff]  }
0x1216   : > { %v3385_v22 = vadd.f32 %v3379_v24, %v3175_v15  ;;  %v3394_v38 = vsel %vm1088_vm2, %v3384_v12, 0.0  ;;  %5769 = vmatprep.subr.bf16.mxu1 %v6417_v7 }
0x1217   : > { %v3383_v23 = vadd.f32 %v3371_v47, %v3173_v63  ;;  %v3388_v45 = vsel %vm1088_vm2, %v3382_v28, 0.0  ;;  %v6418_v63 = vld [vmem:[%s8903_s10 + $0x18] sm:$0xff]   ;;  %5770 = vmatpush3.bf16.msra.mxu1 %v6417_v7 }
0x1218   : > { %3389 = vadd.xlane.f32.xlu1 %v3388_v45  ;;  %v3397_v57 = vsel %vm1088_vm2, %v3385_v22, 0.0  ;;  %5771 = vmatprep.subr.bf16.mxu1 %v6418_v63 }
0x1219   : > { %v3391_v35 = vsel %vm1088_vm2, %v3383_v23, 0.0 }
0x121a   : > { %3392 = vadd.xlane.f32.xlu0 %v3391_v35 }
0x121b   : > { %5772 = vmatpush3.bf16.msra.mxu1 %v6418_v63 }
0x121c   : > { %3395 = vadd.xlane.f32.xlu1 %v3394_v38 }
0x121e   : > { %3398 = vadd.xlane.f32.xlu0 %v3397_v57 }
0x12a5   : > { %v3390_v49 = vpop.xlane.xlu1 %3389 }
0x12a6   : > { %v3400_v41 = vmul.f32 0.03125, %v3390_v49 }
0x12a7   : > { %v3393_v58 = vpop.xlane.xlu0 %3392 }
0x12a8   : > { %v3404_v62 = vsub.f32 %v3382_v28, %v3400_v41  ;;  %v3401_v25 = vmul.f32 0.03125, %v3393_v58  ;;  %v5346_v28 = vld [vmem:[#allocation14 + $0x1] ss:$0 sm:$0xff] }
0x12a9   : > { %v3396_v21 = vpop.xlane.xlu1 %3395 }
0x12aa   : > { %v3405_v46 = vsub.f32 %v3383_v23, %v3401_v25  ;;  %v3402_v48 = vmul.f32 0.03125, %v3396_v21  ;;  %v3408_v9 = vmul.f32 %v3404_v62, %v3404_v62 }
0x12ab   : > { %v3399_v36 = vpop.xlane.xlu0 %3398 }
0x12ac   : > { %v3406_v42 = vsub.f32 %v3384_v12, %v3402_v48  ;;  %v3403_v10 = vmul.f32 0.03125, %v3399_v36  ;;  %v3412_v60 = vsel %vm1088_vm2, %v3408_v9, 0.0  ;;  %v3409_v27 = vmul.f32 %v3405_v46, %v3405_v46 }
0x12ad   : > { %3413 = vadd.xlane.f32.xlu1 %v3412_v60 }
0x12ae   : > { %v3407_v53 = vsub.f32 %v3385_v22, %v3403_v10  ;;  %v3415_v26 = vsel %vm1088_vm2, %v3409_v27, 0.0  ;;  %v3410_v3 = vmul.f32 %v3406_v42, %v3406_v42 }
0x12af   : > { %3416 = vadd.xlane.f32.xlu0 %v3415_v26 }
0x12b0   : > { %v3418_v16 = vsel %vm1088_vm2, %v3410_v3, 0.0  ;;  %v3411_v54 = vmul.f32 %v3407_v53, %v3407_v53 }
0x12b1   : > { %3419 = vadd.xlane.f32.xlu1 %v3418_v16 }
0x12b2   : > { %v3421_v5 = vsel %vm1088_vm2, %v3411_v54, 0.0 }
0x12b3   : > { %3422 = vadd.xlane.f32.xlu0 %v3421_v5 }
0x133a   : > { %v3414_v56 = vpop.xlane.xlu1 %3413 }
0x133b   : > { %v3424_v39 = vmul.f32 0.03125, %v3414_v56 }
0x133c   : > { %v3417_v14 = vpop.xlane.xlu0 %3416 }
0x133d   : > { %v3428_v59 = vadd.f32 1e-05, %v3424_v39  ;;  %v3425_v4 = vmul.f32 0.03125, %v3417_v14 }
0x133e   : > { %v3420_v0 = vpop.xlane.xlu1 %3419 }
0x133f   : > { %6567 = vrsqrt.f32 %v3428_v59  ;;  %v3429_v15 = vadd.f32 1e-05, %v3425_v4  ;;  %v3426_v43 = vmul.f32 0.03125, %v3420_v0 }
0x1340   : > { %v3423_v13 = vpop.xlane.xlu0 %3422 }
0x1341   : > { %6569 = vrsqrt.f32 %v3429_v15  ;;  %v3430_v2 = vadd.f32 1e-05, %v3426_v43  ;;  %v3427_v19 = vmul.f32 0.03125, %v3423_v13 }
0x1343   : > { %6571 = vrsqrt.f32 %v3430_v2  ;;  %v3431_v52 = vadd.f32 1e-05, %v3427_v19 }
0x1345   : > { %6573 = vrsqrt.f32 %v3431_v52 }
0x1349   : > { %v6568_v6 = vpop.eup %6567 }
0x134a   : > { %v3436_v11 = vmul.f32 %v6568_v6, %v3404_v62 }
0x134b   : > { %v6570_v29 = vpop.eup %6569 }
0x134c   : > { %v3437_v8 = vmul.f32 %v6570_v29, %v3405_v46  ;;  %v3446_v17 = vmul.f32 %v5336_v51, %v3436_v11 }
0x134d   : > { %v6572_v30 = vpop.eup %6571 }
0x134e   : > { %v3438_v18 = vmul.f32 %v6572_v30, %v3406_v42  ;;  %v3447_v55 = vmul.f32 %v5336_v51, %v3437_v8  ;;  %v8461_v44 = vadd.f32 %v5337_v32, %v3446_v17 }
0x134f   : > { %v6574_v1 = vpop.eup %6573 }
0x1350   : > { %v3448_v61 = vmul.f32 %v5336_v51, %v3438_v18  ;;  %v3439_v31 = vmul.f32 %v6574_v1, %v3407_v53  ;;  %v8463_v40 = vadd.f32 %v5337_v32, %v3447_v55 }
0x1352   : > { %v3449_v50 = vmul.f32 %v5336_v51, %v3439_v31  ;;  %v3474_v33 = vpack.c.bf16 %v8463_v40, %v8461_v44  ;;  %v8468_v20 = vadd.f32 %v5337_v32, %v3448_v61 }
0x1354   : > { %5773 = vmatprep.mubr.msk.bf16.mxu1 %vm1088_vm2, %v3474_v33  ;;  %v8470_v34 = vadd.f32 %v5337_v32, %v3449_v50 }
0x1356   : > { %v3475_v37 = vpack.c.bf16 %v8470_v34, %v8468_v20 }
0x1358   : > { %5774 = vmatmul.mubr.msk.bf16.vlgmr.msra.gmra.mrb[40].mxu1 %vm1088_vm2, %v3475_v37 }
0x142b   : > { %v5775_v24 = vpop.f32.mrb[40].mxu1 }
0x142c   : > { %v3543_v47 = vadd.f32 %v5775_v24, %v5346_v28  ;;  %v3534_v12 = vpop.f32.mrb[41].mxu1 }
0x142d   : > { %v3535_v23 = vadd.f32 %v5346_v28, %v3534_v12  ;;  %v5776_v45 = vpop.f32.mrb[42].mxu1 }
0x142e   : > { %v3546_v22 = vadd.f32 %v5776_v45, %v5346_v28  ;;  %v3537_v35 = vpop.f32.mrb[43].mxu1  ;;  %v8475_v38 = vmul.f32 0.35355338, %v3543_v47 }
0x142f   : > { %v3549_v57 = vmul.f32 0.35355338, %v3535_v23  ;;  %v3538_v49 = vadd.f32 %v5346_v28, %v3537_v35 }
0x1430   : > { %v8477_v41 = vmul.f32 0.35355338, %v3546_v22  ;;  %v6314_v58 = vpack.i.bf16 %v3546_v22, %v3543_v47  ;;  %v8480_v46 = vpack.c.bf16 %v3546_v22, %v3543_v47 }
0x1431   : > { %v3550_v62 = vmul.f32 0.35355338, %v3538_v49  ;;  %v6309_v25 = vpack.i.bf16 %v3538_v49, %v3535_v23  ;;  %v3641_v21 = vpack.c.bf16 %v3538_v49, %v3535_v23 }
0x1432   : > { %6315 = vrot.lane.b32.xlu0 %v6314_v58, %s7199_s25  ;;  %v6344_v48 = vpack.i.bf16 %v8477_v41, %v8475_v38  ;;  %v3634_v42 = vpack.c.bf16 %v8477_v41, %v8475_v38 }
0x1433   : > { %6310 = vrot.lane.b32.xlu1 %v6309_v25, %s7199_s25  ;;  %v3633_v9 = vpack.c.bf16 %v3550_v62, %v3549_v57  ;;  %v6339_v36 = vpack.i.bf16 %v3550_v62, %v3549_v57 }
0x1435   : > { %5781 = vmatprep.mubr.msk.bf16.mxu1 %vm986_vm1, %v3633_v9 }
0x1436   : > { %6330 = vrot.lane.b32.xlu0 %v6314_v58, %s7198_s1 }
0x1437   : > { %6320 = vrot.lane.b32.xlu1 %v6309_v25, %s7198_s1 }
0x143a   : > { %3651 = vrot.lane.b32.xlu0 %v3641_v21, %s7201_s30 }
0x143b   : > { %6325 = vrot.lane.b32.xlu1 %v6309_v25, %s7200_s6 }
0x143f   : > { %6335 = vrot.lane.b32.xlu1 %v6314_v58, %s7200_s6 }
0x1443   : > { %3653 = vrot.lane.b32.xlu1 %v8480_v46, %s7201_s30 }
0x14a4   : > { %v6316_v10 = vpop.permute.xlu0 %6315 }
0x14a5   : > { %v6318_v60 = vunpack.i.h.bf16 %v6316_v10  ;;  %v6317_v27 = vunpack.i.l.bf16 %v6316_v10  ;;  %v6311_v53 = vpop.permute.xlu1 %6310 }
0x14a6   : > { %v6313_v26 = vunpack.i.h.bf16 %v6311_v53  ;;  %v6312_v3 = vunpack.i.l.bf16 %v6311_v53 }
0x14a7   : > { %v8495_v16 = vpack.c.bf16 %v6318_v60, %v6317_v27 }
0x14a8   : > { %v8497_v54 = vpack.c.bf16 %v6313_v26, %v6312_v3  ;;  %v6331_v5 = vpop.permute.xlu0 %6330 }
0x14a9   : > { %3720 = vrot.lane.b32.xlu1 %v8495_v16, %s7201_s30  ;;  %v6321_v7 = vpop.permute.xlu1 %6320  ;;  %v6333_v13 = vunpack.i.h.bf16 %v6331_v5  ;;  %v6332_v2 = vunpack.i.l.bf16 %v6331_v5 }
0x14aa   : > { %3718 = vrot.lane.b32.xlu0 %v8497_v54, %s7201_s30  ;;  %v6323_v63 = vunpack.i.h.bf16 %v6321_v7  ;;  %v6322_v56 = vunpack.i.l.bf16 %v6321_v7  ;;  %v6659_v7 = vld [vmem:[%s9010_s29 + $0x10] sm:$0xff] }
0x14ab   : > { %v8517_v11 = vpack.c.bf16 %v6333_v13, %v6332_v2  ;;  %v6661_v13 = vld [vmem:[%s9010_s29 + $0x8] sm:$0xff] }
0x14ac   : > { %v3652_v39 = vpop.permute.xlu0 %3651  ;;  %v8507_v15 = vpack.c.bf16 %v6323_v63, %v6322_v56 }
0x14ad   : > { %v3662_v14 = vsel %vm986_vm1, %v3652_v39, 0  ;;  %6345 = vrot.lane.b32.xlu1 %v6344_v48, %s7199_s25  ;;  %v6326_v59 = vpop.permute.xlu1 %6325  ;;  %5916 = vmatprep.subr.msk.bf16.mxu1 %vm986_vm1, %v3652_v39 }
0x14ae   : > { %v6328_v4 = vunpack.i.h.bf16 %v6326_v59  ;;  %v6327_v0 = vunpack.i.l.bf16 %v6326_v59  ;;  %5778 = vmatpush3.bf16.xpose.msra.mxu1 %v3662_v14  ;;  %6340 = vrot.lane.b32.xlu0 %v6339_v36, %s7199_s25  ;;  %v6660_v14 = vld [vmem:[%s9010_s29] sm:$0xff] }
0x14b0   : > { %v8509_v43 = vpack.c.bf16 %v6328_v4, %v6327_v0 }
0x14b1   : > { %v6336_v19 = vpop.permute.xlu1 %6335 }
0x14b2   : > { %v6338_v52 = vunpack.i.h.bf16 %v6336_v19  ;;  %v6337_v6 = vunpack.i.l.bf16 %v6336_v19  ;;  %3852 = vrot.lane.b32.xlu1 %v8509_v43, %s7201_s30  ;;  %3785 = vrot.lane.b32.xlu0 %v8507_v15, %s7201_s30 }
0x14b4   : > { %v8515_v51 = vpack.c.bf16 %v6338_v52, %v6337_v6  ;;  %v6662_v52 = vld [vmem:[%s9010_s29 + $0x18] sm:$0xff] }
0x14b5   : > { %v3654_v29 = vpop.permute.xlu1 %3653 }
0x14b6   : > { %v3665_v8 = vsel %vm986_vm1, %v3654_v29, 0  ;;  %3854 = vrot.lane.b32.xlu1 %v8515_v51, %s7201_s30  ;;  %5917 = vmatprep.subr.msk.bf16.mxu1 %vm986_vm1, %v3654_v29 }
0x14b7   : > { %3787 = vrot.lane.b32.xlu0 %v8517_v11, %s7201_s30  ;;  %5780 = vmatpush3.bf16.xpose.msra.mxu1 %v3665_v8  ;;  %s4925_s30 = sld [smem:[#allocation2]] }
0x14ba   : > { %6355 = vrot.lane.b32.xlu1 %v6344_v48, %s7198_s1 }
0x14bb   : > { %6350 = vrot.lane.b32.xlu0 %v6339_v36, %s7198_s1  ;;  %s7087_s1 = sshll.u32 %s7209_s24, 4  ;;  %s7088_s1 = int_to_ptr.vmem [resolvable:$false] %s7087_s1 }
0x14bc   : > { %s7089_s25 = scalar_lea.vmem %s7088_s1, 32 }
0x14be   : > { %6365 = vrot.lane.b32.xlu1 %v6344_v48, %s7200_s6  ;;  %5782 = vmatmul.mubr.msk.bf16.vlgmr.msra.gmra.mrb[44].mxu1 %vm986_vm1, %v3634_v42 }
0x14bf   : > { %6360 = vrot.lane.b32.xlu0 %v6339_v36, %s7200_s6  ;;  %s9011_s6 = sld [smem:[#allocation59_spill]] }
0x14c2   : > { %4101 = vrot.lane.b32.xlu1 %v3641_v21, %s7202_s5 }
0x151b   : > { %v3721_v17 = vpop.permute.xlu1 %3720 }
0x151c   : > { %v3719_v30 = vpop.permute.xlu0 %3718  ;;  %v3732_v37 = vsel %vm986_vm1, %v3721_v17, 0 }
0x151d   : > { %v3729_v32 = vsel %vm986_vm1, %v3719_v30, 0  ;;  %5918 = vmatprep.subr.msk.bf16.mxu1 %vm986_vm1, %v3719_v30 }
0x151e   : > { %5786 = vmatpush3.bf16.xpose.msra.mxu1 %v3729_v32 }
0x151f   : > { %v6346_v18 = vpop.permute.xlu1 %6345  ;;  %5919 = vmatprep.subr.msk.bf16.mxu1 %vm986_vm1, %v3721_v17 }
0x1520   : > { %v6341_v55 = vpop.permute.xlu0 %6340  ;;  %v6348_v24 = vunpack.i.h.bf16 %v6346_v18  ;;  %v6347_v47 = vunpack.i.l.bf16 %v6346_v18 }
0x1521   : > { %v6343_v1 = vunpack.i.h.bf16 %v6341_v55  ;;  %v6342_v61 = vunpack.i.l.bf16 %v6341_v55 }
0x1522   : > { %v3636_v45 = vpack.c.bf16 %v6348_v24, %v6347_v47 }
0x1523   : > { %v3635_v31 = vpack.c.bf16 %v6343_v1, %v6342_v61 }
0x1524   : > { %v3853_v50 = vpop.permute.xlu1 %3852  ;;  %v3786_v33 = vpop.permute.xlu0 %3785 }
0x1525   : > { %v3796_v28 = vsel %vm986_vm1, %v3786_v33, 0  ;;  %5789 = vmatprep.mubr.msk.bf16.mxu1 %vm986_vm1, %v3635_v31  ;;  %5920 = vmatprep.subr.msk.bf16.mxu0 %vm986_vm1, %v3786_v33  ;;  %v3863_v35 = vsel %vm986_vm1, %v3853_v50, 0 }
0x1526   : > { %5788 = vmatpush3.bf16.xpose.msra.mxu1 %v3732_v37  ;;  %5794 = vmatpush3.bf16.xpose.msra.mxu0 %v3796_v28 }
0x1527   : > { %5922 = vmatprep.subr.msk.bf16.mxu1 %vm986_vm1, %v3853_v50 }
0x1528   : > { %v3855_v12 = vpop.permute.xlu1 %3854 }
0x1529   : > { %v3788_v23 = vpop.permute.xlu0 %3787  ;;  %v3866_v27 = vsel %vm986_vm1, %v3855_v12, 0 }
0x152a   : > { %5921 = vmatprep.subr.msk.bf16.mxu0 %vm986_vm1, %v3788_v23  ;;  %v3799_v38 = vsel %vm986_vm1, %v3788_v23, 0 }
0x152c   : > { %v6356_v22 = vpop.permute.xlu1 %6355 }
0x152d   : > { %v6351_v57 = vpop.permute.xlu0 %6350  ;;  %5790 = vmatmul.mubr.msk.bf16.vlgmr.msra.gmra.mrb[48].mxu1 %vm986_vm1, %v3636_v45  ;;  %v6358_v58 = vunpack.i.h.bf16 %v6356_v22  ;;  %v6357_v62 = vunpack.i.l.bf16 %v6356_v22 }
0x152e   : > { %v6353_v49 = vunpack.i.h.bf16 %v6351_v57  ;;  %v6352_v41 = vunpack.i.l.bf16 %v6351_v57  ;;  %5796 = vmatpush3.bf16.xpose.msra.mxu0 %v3799_v38  ;;  %5802 = vmatpush3.bf16.xpose.msra.mxu1 %v3863_v35 }
0x152f   : > { %5923 = vmatprep.subr.msk.bf16.mxu1 %vm986_vm1, %v3855_v12  ;;  %v3638_v42 = vpack.c.bf16 %v6358_v58, %v6357_v62 }
0x1530   : > { %v3637_v25 = vpack.c.bf16 %v6353_v49, %v6352_v41  ;;  %v6366_v21 = vpop.permute.xlu1 %6365 }
0x1531   : > { %v6361_v48 = vpop.permute.xlu0 %6360  ;;  %v6368_v53 = vunpack.i.h.bf16 %v6366_v21  ;;  %v6367_v26 = vunpack.i.l.bf16 %v6366_v21 }
0x1532   : > { %v6363_v9 = vunpack.i.h.bf16 %v6361_v48  ;;  %v6362_v36 = vunpack.i.l.bf16 %v6361_v48  ;;  %5797 = vmatprep.mubr.msk.bf16.mxu0 %vm986_vm1, %v3637_v25 }
0x1533   : > { %v3640_v3 = vpack.c.bf16 %v6368_v53, %v6367_v26 }
0x1534   : > { %v3639_v10 = vpack.c.bf16 %v6363_v9, %v6362_v36  ;;  %v4102_v60 = vpop.permute.xlu1 %4101 }
0x1535   : > { %5798 = vmatmul.mubr.msk.bf16.vlgmr.msra.gmra.mrb[52].mxu0 %vm986_vm1, %v3638_v42  ;;  %5809 = vmatprep.subr.bf16.mxu0 %v4102_v60 }
0x1536   : > { %5805 = vmatprep.mubr.msk.bf16.mxu1 %vm986_vm1, %v3639_v10  ;;  %5804 = vmatpush3.bf16.xpose.msra.mxu1 %v3866_v27 }
0x1537   : > { %5810 = vmatpush3.bf16.msra.mxu0 %v4102_v60 }
0x153d   : > { %5806 = vmatmul.mubr.msk.bf16.vlgmr.msra.gmra.mrb[52].mxu1 %vm986_vm1, %v3640_v3 }
0x1591   : > { %v5783_v5 = vpop.f32.mrb[44].mxu1 }
0x1592   : > { %v8552_v63 = vadd.f32 %v6659_v7, %v5783_v5  ;;  %v3701_v56 = vpop.f32.mrb[45].mxu1 }
0x1593   : > { %v5784_v39 = vpop.f32.mrb[46].mxu1  ;;  %v8557_v59 = vadd.f32 %v6660_v14, %v3701_v56 }
0x1594   : > { %v3704_v4 = vpop.f32.mrb[47].mxu1  ;;  %v3923_v0 = vsel %vm1088_vm2, %v8552_v63, -inf  ;;  %v8571_v6 = vadd.f32 %v6662_v52, %v5784_v39 }
0x1595   : > { %v8564_v2 = vadd.f32 %v6661_v13, %v3704_v4  ;;  %3924 = vmax.xlane.f32.xlu0 %v3923_v0  ;;  %v3917_v29 = vsel %vm1088_vm2, %v8557_v59, -inf }
0x1596   : > { %v3926_v8 = vsel %vm1088_vm2, %v8571_v6, -inf }
0x1597   : > { %v3920_v19 = vsel %vm1088_vm2, %v8564_v2, -inf }
0x1598   : > { %3921 = vmax.xlane.f32.xlu1 %v3920_v19 }
0x1599   : > { %3918 = vmax.xlane.f32.xlu0 %v3917_v29 }
0x159d   : > { %3927 = vmax.xlane.f32.xlu0 %v3926_v8 }
0x1600   : > { %v5791_v17 = vpop.f32.mrb[48].mxu1 }
0x1601   : > { %v8577_v30 = vadd.f32 %v6659_v7, %v5791_v17  ;;  %v3768_v32 = vpop.f32.mrb[49].mxu1 }
0x1602   : > { %v5792_v18 = vpop.f32.mrb[50].mxu1  ;;  %v8587_v24 = vadd.f32 %v6660_v14, %v3768_v32 }
0x1603   : > { %v8579_v55 = vadd.f32 %v6662_v52, %v5792_v18  ;;  %v3771_v1 = vpop.f32.mrb[51].mxu1  ;;  %v3935_v61 = vsel %vm1088_vm2, %v8577_v30, -inf }
0x1604   : > { %3936 = vmax.xlane.f32.xlu1 %v3935_v61  ;;  %v8593_v45 = vadd.f32 %v6661_v13, %v3771_v1  ;;  %v3929_v38 = vsel %vm1088_vm2, %v8587_v24, -inf }
0x1605   : > { %v3938_v31 = vsel %vm1088_vm2, %v8579_v55, -inf }
0x1606   : > { %3939 = vmax.xlane.f32.xlu0 %v3938_v31  ;;  %v3932_v58 = vsel %vm1088_vm2, %v8593_v45, -inf }
0x1608   : > { %v5799_v50 = vpop.f32.mrb[52].mxu0 }
0x1609   : > { %v8585_v33 = vadd.f32 %v6659_v7, %v5799_v50  ;;  %v3835_v37 = vpop.f32.mrb[53].mxu0 }
0x160a   : > { %v5800_v28 = vpop.f32.mrb[54].mxu0  ;;  %v8597_v35 = vadd.f32 %v6660_v14, %v3835_v37 }
0x160b   : > { %v8589_v47 = vadd.f32 %v6662_v52, %v5800_v28  ;;  %v3838_v12 = vpop.f32.mrb[55].mxu0  ;;  %v3947_v23 = vsel %vm1088_vm2, %v8585_v33, -inf }
0x160c   : > { %3948 = vmax.xlane.f32.xlu1 %v3947_v23  ;;  %v8601_v49 = vadd.f32 %v6661_v13, %v3838_v12  ;;  %v3941_v48 = vsel %vm1088_vm2, %v8597_v35, -inf }
0x160d   : > { %v3950_v22 = vsel %vm1088_vm2, %v8589_v47, -inf }
0x160e   : > { %3951 = vmax.xlane.f32.xlu0 %v3950_v22  ;;  %v3944_v36 = vsel %vm1088_vm2, %v8601_v49, -inf }
0x1610   : > { %v5807_v57 = vpop.f32.mrb[52].mxu1  ;;  %3930 = vmax.xlane.f32.xlu1 %v3929_v38 }
0x1611   : > { %v3902_v41 = vpop.f32.mrb[53].mxu1  ;;  %v8605_v25 = vadd.f32 %v6659_v7, %v5807_v57 }
0x1612   : > { %v5808_v62 = vpop.f32.mrb[54].mxu1  ;;  %3933 = vmax.xlane.f32.xlu0 %v3932_v58  ;;  %v8613_v42 = vadd.f32 %v6660_v14, %v3902_v41 }
0x1613   : > { %v3905_v21 = vpop.f32.mrb[55].mxu1  ;;  %v8609_v9 = vadd.f32 %v6662_v52, %v5808_v62  ;;  %v3959_v10 = vsel %vm1088_vm2, %v8605_v25, -inf }
0x1614   : > { %3942 = vmax.xlane.f32.xlu1 %v3941_v48  ;;  %v8617_v60 = vadd.f32 %v6661_v13, %v3905_v21  ;;  %v3953_v53 = vsel %vm1088_vm2, %v8613_v42, -inf }
0x1615   : > { %v3962_v27 = vsel %vm1088_vm2, %v8609_v9, -inf }
0x1616   : > { %3945 = vmax.xlane.f32.xlu0 %v3944_v36  ;;  %v3956_v26 = vsel %vm1088_vm2, %v8617_v60, -inf }
0x1618   : > { %3960 = vmax.xlane.f32.xlu1 %v3959_v10 }
0x161a   : > { %3963 = vmax.xlane.f32.xlu0 %v3962_v27 }
0x161c   : > { %3954 = vmax.xlane.f32.xlu1 %v3953_v53 }
0x161e   : > { %3957 = vmax.xlane.f32.xlu0 %v3956_v26 }
0x1622   : > { %v3925_v3 = vpop.xlane.xlu0 %3924 }
0x1625   : > { %v3922_v39 = vpop.xlane.xlu1 %3921 }
0x1626   : > { %v3919_v5 = vpop.xlane.xlu0 %3918  ;;  %v3966_v14 = vsub.f32 %v8564_v2, %v3922_v39 }
0x1627   : > { %v3965_v0 = vsub.f32 %v8557_v59, %v3919_v5 }
0x162a   : > { %v3928_v7 = vpop.xlane.xlu0 %3927 }
0x162b   : > { %v3968_v56 = vsub.f32 %v8571_v6, %v3928_v7 }
0x162d   : > { %4162 = vrot.lane.b32.xlu1 %v8497_v54, %s7202_s5  ;;  %v3967_v54 = vsub.f32 %v8552_v63, %v3925_v3 }
0x162f   : > { %v3985_v4 = vmul.f32 1.442695, %v3967_v54 }
0x1631   : > { %4164 = vrot.lane.b32.xlu1 %v8495_v16, %s7202_s5  ;;  %v3987_v16 = vmul.f32 1.442695, %v3968_v56 }
0x1633   : > { %6575 = vpow2.f32 %v3987_v16 }
0x1634   : > { %4103 = vrot.lane.b32.xlu0 %v8480_v46, %s7202_s5  ;;  %v3983_v46 = vmul.f32 1.442695, %v3966_v14  ;;  %6577 = vpow2.f32 %v3985_v4 }
0x1635   : > { %4284 = vrot.lane.b32.xlu1 %v8509_v43, %s7202_s5  ;;  %v3981_v43 = vmul.f32 1.442695, %v3965_v0 }
0x1636   : > { %6579 = vpow2.f32 %v3983_v46 }
0x1637   : > { %6581 = vpow2.f32 %v3981_v43 }
0x1638   : > { %4223 = vrot.lane.b32.xlu0 %v8507_v15, %s7202_s5 }
0x163d   : > { %v8639_v13 = vpop.eup %6575 }
0x163e   : > { %v8641_v15 = vpop.eup %6577  ;;  %v4022_v19 = vsel %vm1088_vm2, %v8639_v13, 0.0 }
0x163f   : > { %v4019_v2 = vsel %vm1088_vm2, %v8641_v15, 0.0 }
0x1640   : > { %v8645_v63 = vpop.eup %6579 }
0x1641   : > { %v8649_v59 = vpop.eup %6581  ;;  %v4016_v52 = vsel %vm1088_vm2, %v8645_v63, 0.0 }
0x1642   : > { %v4013_v6 = vsel %vm1088_vm2, %v8649_v59, 0.0 }
0x1657   : > { %4023 = vadd.xlane.f32.xlu0 %v4022_v19 }
0x1659   : > { %4020 = vadd.xlane.f32.xlu1 %v4019_v2 }
0x165b   : > { %4017 = vadd.xlane.f32.xlu0 %v4016_v52 }
0x165d   : > { %4014 = vadd.xlane.f32.xlu1 %v4013_v6 }
0x1691   : > { %v3937_v29 = vpop.xlane.xlu1 %3936 }
0x1692   : > { %v3971_v8 = vsub.f32 %v8577_v30, %v3937_v29 }
0x1693   : > { %v3940_v17 = vpop.xlane.xlu0 %3939 }
0x1694   : > { %v3993_v32 = vmul.f32 1.442695, %v3971_v8  ;;  %v3972_v18 = vsub.f32 %v8579_v55, %v3940_v17 }
0x1696   : > { %6583 = vpow2.f32 %v3993_v32  ;;  %v3995_v1 = vmul.f32 1.442695, %v3972_v18 }
0x1698   : > { %6585 = vpow2.f32 %v3995_v1 }
0x1699   : > { %v3949_v61 = vpop.xlane.xlu1 %3948 }
0x169a   : > { %v3975_v31 = vsub.f32 %v8585_v33, %v3949_v61 }
0x169b   : > { %v3952_v50 = vpop.xlane.xlu0 %3951 }
0x169c   : > { %v4001_v37 = vmul.f32 1.442695, %v3975_v31  ;;  %v3976_v28 = vsub.f32 %v8589_v47, %v3952_v50 }
0x169d   : > { %v3931_v12 = vpop.xlane.xlu1 %3930 }
0x169e   : > { %6587 = vpow2.f32 %v4001_v37  ;;  %v4003_v23 = vmul.f32 1.442695, %v3976_v28  ;;  %v3969_v22 = vsub.f32 %v8587_v24, %v3931_v12 }
0x169f   : > { %v3934_v30 = vpop.xlane.xlu0 %3933 }
0x16a0   : > { %v8660_v38 = vpop.eup %6583  ;;  %6589 = vpow2.f32 %v4003_v23  ;;  %v3989_v55 = vmul.f32 1.442695, %v3969_v22  ;;  %v3970_v57 = vsub.f32 %v8593_v45, %v3934_v30 }
0x16a1   : > { %v3943_v41 = vpop.xlane.xlu1 %3942  ;;  %v4031_v33 = vsel %vm1088_vm2, %v8660_v38, 0.0 }
0x16a2   : > { %v8665_v58 = vpop.eup %6585  ;;  %6591 = vpow2.f32 %v3989_v55  ;;  %v3991_v47 = vmul.f32 1.442695, %v3970_v57  ;;  %v3973_v62 = vsub.f32 %v8597_v35, %v3943_v41  ;;  %4032 = vadd.xlane.f32.xlu1 %v4031_v33 }
0x16a3   : > { %v3946_v21 = vpop.xlane.xlu0 %3945  ;;  %v4034_v24 = vsel %vm1088_vm2, %v8665_v58, 0.0 }
0x16a4   : > { %6593 = vpow2.f32 %v3991_v47  ;;  %v3997_v48 = vmul.f32 1.442695, %v3973_v62  ;;  %v3974_v36 = vsub.f32 %v8601_v49, %v3946_v21  ;;  %4035 = vadd.xlane.f32.xlu0 %v4034_v24 }
0x16a5   : > { %v3961_v45 = vpop.xlane.xlu1 %3960 }
0x16a6   : > { %6595 = vpow2.f32 %v3997_v48  ;;  %v3999_v10 = vmul.f32 1.442695, %v3974_v36  ;;  %v3979_v27 = vsub.f32 %v8605_v25, %v3961_v45 }
0x16a7   : > { %v3964_v53 = vpop.xlane.xlu0 %3963 }
0x16a8   : > { %v8672_v26 = vpop.eup %6587  ;;  %6597 = vpow2.f32 %v3999_v10  ;;  %v4009_v35 = vmul.f32 1.442695, %v3979_v27  ;;  %v3980_v3 = vsub.f32 %v8609_v9, %v3964_v53 }
0x16a9   : > { %v3955_v5 = vpop.xlane.xlu1 %3954  ;;  %v4043_v7 = vsel %vm1088_vm2, %v8672_v26, 0.0 }
0x16aa   : > { %v8677_v56 = vpop.eup %6589  ;;  %6599 = vpow2.f32 %v4009_v35  ;;  %v4011_v49 = vmul.f32 1.442695, %v3980_v3  ;;  %v3977_v39 = vsub.f32 %v8613_v42, %v3955_v5  ;;  %4044 = vadd.xlane.f32.xlu1 %v4043_v7 }
0x16ab   : > { %v3958_v54 = vpop.xlane.xlu0 %3957  ;;  %v4046_v25 = vsel %vm1088_vm2, %v8677_v56, 0.0 }
0x16ac   : > { %v8682_v14 = vpop.eup %6591  ;;  %6601 = vpow2.f32 %v4011_v49  ;;  %v4005_v16 = vmul.f32 1.442695, %v3977_v39  ;;  %v3978_v9 = vsub.f32 %v8617_v60, %v3958_v54  ;;  %4047 = vadd.xlane.f32.xlu0 %v4046_v25 }
0x16ad   : > { %v4025_v4 = vsel %vm1088_vm2, %v8682_v14, 0.0  ;;  %v4163_v2 = vpop.permute.xlu1 %4162 }
0x16ae   : > { %v8687_v0 = vpop.eup %6593  ;;  %6603 = vpow2.f32 %v4005_v16  ;;  %v4007_v46 = vmul.f32 1.442695, %v3978_v9  ;;  %4026 = vadd.xlane.f32.xlu1 %v4025_v4 }
0x16af   : > { %v4104_v42 = vpop.permute.xlu0 %4103  ;;  %v4028_v43 = vsel %vm1088_vm2, %v8687_v0, 0.0 }
0x16b0   : > { %v8691_v19 = vpop.eup %6595  ;;  %6605 = vpow2.f32 %v4007_v46  ;;  %4029 = vadd.xlane.f32.xlu0 %v4028_v43  ;;  %5811 = vmatprep.subr.bf16.mxu0 %v4104_v42 }
0x16b1   : > { %5812 = vmatpush3.bf16.msra.mxu0 %v4104_v42  ;;  %v4037_v60 = vsel %vm1088_vm2, %v8691_v19, 0.0  ;;  %v4165_v37 = vpop.permute.xlu1 %4164 }
0x16b2   : > { %v8695_v52 = vpop.eup %6597  ;;  %4038 = vadd.xlane.f32.xlu1 %v4037_v60  ;;  %5817 = vmatprep.subr.bf16.mxu0 %v4163_v2 }
0x16b3   : > { %v4224_v6 = vpop.permute.xlu0 %4223  ;;  %v4040_v29 = vsel %vm1088_vm2, %v8695_v52, 0.0 }
0x16b4   : > { %v8699_v8 = vpop.eup %6599  ;;  %4041 = vadd.xlane.f32.xlu0 %v4040_v29  ;;  %5825 = vmatprep.subr.bf16.mxu1 %v4224_v6 }
0x16b5   : > { %5826 = vmatpush3.bf16.msra.mxu1 %v4224_v6  ;;  %v4055_v17 = vsel %vm1088_vm2, %v8699_v8, 0.0  ;;  %v8719_v28 = vpop.permute.xlu1 %4284 }
0x16b6   : > { %v8703_v32 = vpop.eup %6601  ;;  %4056 = vadd.xlane.f32.xlu1 %v4055_v17 }
0x16b7   : > { %v4058_v18 = vsel %vm1088_vm2, %v8703_v32, 0.0 }
0x16b8   : > { %v8707_v1 = vpop.eup %6603  ;;  %4059 = vadd.xlane.f32.xlu0 %v4058_v18 }
0x16b9   : > { %v4049_v61 = vsel %vm1088_vm2, %v8707_v1, 0.0 }
0x16ba   : > { %v8711_v31 = vpop.eup %6605  ;;  %4050 = vadd.xlane.f32.xlu1 %v4049_v61 }
0x16bb   : > { %v4052_v50 = vsel %vm1088_vm2, %v8711_v31, 0.0 }
0x16bc   : > { %4053 = vadd.xlane.f32.xlu0 %v4052_v50 }
0x16cb   : > { %4286 = vrot.lane.b32.xlu1 %v8515_v51, %s7202_s5 }
0x16d2   : > { %4225 = vrot.lane.b32.xlu0 %v8517_v11, %s7202_s5  ;;  %s965_s5 = scalar_lea.vmem [#allocation27], %s964_s7 }
0x16d3   : > { %s5029_s19 = sshll.u32 %s965_s5, 4  ;;  %s8852_s19 = int_to_ptr.vmem [resolvable:$true] %s5029_s19 }
0x16d4   : > { %s7083_s0 = scalar_lea.vmem %s8852_s19, 16  ;;  %p7090_p2 = scmp.lt.s32.totalorder %s8852_s19, %s7088_s1 }
0x16d5   : > { %p7084_p5 = scmp.ne.s32.totalorder %s8852_s19, %s7083_s0  ;;  %p7091_p3 = scmp.lt.s32.totalorder %s7089_s25, %s7083_s0 }
0x16d7   : > { %p7085_p12 = pnand %p7084_p5, %p9015_p9  ;;  %p7092_p4 = por %p7091_p3, %p7090_p2 }
0x16d9   : > { %p7086_p10 = pneg %p7085_p12 }
0x16db   : > { %p7093_p7 = pnand %p7092_p4, %p7086_p10 }
0x16e4   : > { %v4024_v12 = vpop.xlane.xlu0 %4023 }
0x16e6   : > { %v4021_v23 = vpop.xlane.xlu1 %4020 }
0x16e7   : > { %6607 = vrcp.f32 %v4021_v23 }
0x16e8   : > { %v4018_v22 = vpop.xlane.xlu0 %4017 }
0x16e9   : > { %6609 = vrcp.f32 %v4018_v22 }
0x16ea   : > { %6611 = vrcp.f32 %v4024_v12  ;;  %v4015_v30 = vpop.xlane.xlu1 %4014 }
0x16eb   : > { %6613 = vrcp.f32 %v4015_v30 }
0x16f1   : > { %v6608_v55 = vpop.eup %6607 }
0x16f2   : > { %v4066_v51 = vmul.f32 %v6608_v55, %v8641_v15 }
0x16f3   : > { %v6610_v57 = vpop.eup %6609 }
0x16f4   : > { %v6612_v41 = vpop.eup %6611  ;;  %v4064_v11 = vmul.f32 %v6610_v57, %v8645_v63 }
0x16f5   : > { %v6614_v33 = vpop.eup %6613  ;;  %v4068_v62 = vmul.f32 %v6612_v41, %v8639_v13 }
0x16f6   : > { %v4062_v47 = vmul.f32 %v6614_v33, %v8649_v59 }
0x16f7   : > { %v4094_v24 = vpack.c.bf16 %v4068_v62, %v4066_v51 }
0x16f8   : > { %v4093_v21 = vpack.c.bf16 %v4064_v11, %v4062_v47 }
0x16fa   : > { %5813 = vmatprep.mubr.msk.bf16.mxu0 %vm1088_vm2, %v4093_v21 }
0x16fb   : > { %5814 = vmatmul.mubr.msk.bf16.vlgmr.msra.gmra.mrb[56].mxu0 %vm1088_vm2, %v4094_v24 }
0x16fc   : > { %5818 = vmatpush3.bf16.msra.mxu0 %v4163_v2 }
0x16fd   : > { %5819 = vmatprep.subr.bf16.mxu0 %v4165_v37 }
0x1700   : > { %5820 = vmatpush3.bf16.msra.mxu0 %v4165_v37 }
0x1701   : > { %5833 = vmatprep.subr.bf16.mxu0 %v8719_v28 }
0x172f   : > { %v4033_v48 = vpop.xlane.xlu1 %4032 }
0x1731   : > { %v4036_v36 = vpop.xlane.xlu0 %4035 }
0x1732   : > { %6615 = vrcp.f32 %v4036_v36  ;;  %v6420_v36 = vld [vmem:[%s8905_s12 + $0x18] sm:$0xff]  }
0x1737   : > { %v4045_v15 = vpop.xlane.xlu1 %4044 }
0x1739   : > { %v4048_v45 = vpop.xlane.xlu0 %4047 }
0x173b   : > { %v4027_v59 = vpop.xlane.xlu1 %4026 }
0x173c   : > { %6617 = vrcp.f32 %v4027_v59  ;;  %v6616_v53 = vpop.eup %6615 }
0x173d   : > { %6619 = vrcp.f32 %v4033_v48  ;;  %v4030_v13 = vpop.xlane.xlu0 %4029  ;;  %v4076_v39 = vmul.f32 %v6616_v53, %v8665_v58 }
0x173e   : > { %6621 = vrcp.f32 %v4030_v13 }
0x173f   : > { %6623 = vrcp.f32 %v4048_v45  ;;  %v4039_v63 = vpop.xlane.xlu1 %4038 }
0x1740   : > { %6625 = vrcp.f32 %v4039_v63 }
0x1741   : > { %6627 = vrcp.f32 %v4045_v15  ;;  %v4042_v10 = vpop.xlane.xlu0 %4041 }
0x1742   : > { %6629 = vrcp.f32 %v4042_v10 }
0x1743   : > { %v4057_v27 = vpop.xlane.xlu1 %4056 }
0x1745   : > { %v4060_v35 = vpop.xlane.xlu0 %4059 }
0x1746   : > { %v6618_v3 = vpop.eup %6617  ;;  %6631 = vrcp.f32 %v4060_v35 }
0x1747   : > { %v6620_v5 = vpop.eup %6619  ;;  %v4051_v7 = vpop.xlane.xlu1 %4050  ;;  %v4070_v16 = vmul.f32 %v6618_v3, %v8682_v14 }
0x1748   : > { %v6622_v49 = vpop.eup %6621  ;;  %6633 = vrcp.f32 %v4051_v7  ;;  %v4074_v46 = vmul.f32 %v6620_v5, %v8660_v38 }
0x1749   : > { %v6624_v54 = vpop.eup %6623  ;;  %6635 = vrcp.f32 %v4057_v27  ;;  %v4054_v25 = vpop.xlane.xlu0 %4053  ;;  %v4072_v9 = vmul.f32 %v6622_v49, %v8687_v0 }
0x174a   : > { %v6626_v4 = vpop.eup %6625  ;;  %6637 = vrcp.f32 %v4054_v25  ;;  %v4084_v60 = vmul.f32 %v6624_v54, %v8677_v56  ;;  %v4096_v6 = vpack.c.bf16 %v4076_v39, %v4074_v46 }
0x174b   : > { %v6628_v42 = vpop.eup %6627  ;;  %v4095_v43 = vpack.c.bf16 %v4072_v9, %v4070_v16  ;;  %v4078_v29 = vmul.f32 %v6626_v4, %v8691_v19  ;;  %v4287_v38 = vpop.permute.xlu1 %4286 }
0x174c   : > { %v6630_v2 = vpop.eup %6629  ;;  %v4082_v14 = vmul.f32 %v6628_v42, %v8672_v26 }
0x174d   : > { %5821 = vmatprep.mubr.msk.bf16.mxu0 %vm1088_vm2, %v4095_v43  ;;  %v4226_v58 = vpop.permute.xlu0 %4225  ;;  %v4080_v17 = vmul.f32 %v6630_v2, %v8695_v52 }
0x174e   : > { %5822 = vmatmul.mubr.msk.bf16.vlgmr.msra.gmra.mrb[60].mxu0 %vm1088_vm2, %v4096_v6  ;;  %5827 = vmatprep.subr.bf16.mxu1 %v4226_v58  ;;  %v4098_v56 = vpack.c.bf16 %v4084_v60, %v4082_v14 }
0x174f   : > { %5834 = vmatpush3.bf16.msra.mxu0 %v8719_v28  ;;  %5828 = vmatpush3.bf16.msra.mxu1 %v4226_v58  ;;  %v4097_v0 = vpack.c.bf16 %v4080_v17, %v4078_v29 }
0x1750   : > { %5835 = vmatprep.subr.bf16.mxu0 %v4287_v38  ;;  %v6632_v18 = vpop.eup %6631 }
0x1751   : > { %5829 = vmatprep.mubr.msk.bf16.mxu1 %vm1088_vm2, %v4097_v0  ;;  %v4092_v26 = vmul.f32 %v6632_v18, %v8703_v32  ;;  %v6419_v32 = vld [vmem:[%s8905_s12 + $0x10] sm:$0xff]  }
0x1752   : > { %v6634_v61 = vpop.eup %6633  ;;  %5830 = vmatmul.mubr.msk.bf16.vlgmr.msra.gmra.mrb[56].mxu1 %vm1088_vm2, %v4098_v56  ;;  %5841 = vmatprep.subr.bf16.mxu1 %v6419_v32 }
0x1753   : > { %v6636_v19 = vpop.eup %6635  ;;  %5836 = vmatpush3.bf16.msra.mxu0 %v4287_v38  ;;  %v4086_v50 = vmul.f32 %v6634_v61, %v8707_v1  ;;  %5842 = vmatpush3.bf16.msra.mxu1 %v6419_v32 }
0x1754   : > { %v6638_v52 = vpop.eup %6637  ;;  %v4090_v28 = vmul.f32 %v6636_v19, %v8699_v8  ;;  %5843 = vmatprep.subr.bf16.mxu1 %v6420_v36 }
0x1755   : > { %v4088_v37 = vmul.f32 %v6638_v52, %v8711_v31 }
0x1756   : > { %v4100_v23 = vpack.c.bf16 %v4092_v26, %v4090_v28 }
0x1757   : > { %v4099_v12 = vpack.c.bf16 %v4088_v37, %v4086_v50  ;;  %5844 = vmatpush3.bf16.msra.mxu1 %v6420_v36  ;;  %v5367_v37 = vld [vmem:[#allocation15 + $0x1] ss:$0 sm:$0xff] }
0x1759   : > { %5837 = vmatprep.mubr.msk.bf16.mxu0 %vm1088_vm2, %v4099_v12 }
0x175a   : > { %5838 = vmatmul.mubr.msk.bf16.vlgmr.msra.gmra.mrb[64].mxu0 %vm1088_vm2, %v4100_v23 }
0x17ce   : > { %v5815_v22 = vpop.f32.mrb[56].mxu0 }
0x17cf   : > { %v4147_v30 = vpop.f32.mrb[57].mxu0 }
0x17d0   : > { %v5816_v55 = vpop.f32.mrb[58].mxu0 }
0x17d1   : > { %v4150_v57 = vpop.f32.mrb[59].mxu0 }
0x1821   : > { %v5823_v41 = vpop.f32.mrb[60].mxu0 }
0x1822   : > { %v4208_v1 = vpop.f32.mrb[61].mxu0 }
0x1823   : > { %v5824_v31 = vpop.f32.mrb[62].mxu0 }
0x1824   : > { %v6369_v8 = vpack.i.bf16 %v5824_v31, %v5823_v41  ;;  %v4211_v33 = vpop.f32.mrb[63].mxu0 }
0x1825   : > { %v6379_v51 = vpack.i.bf16 %v4211_v33, %v4208_v1  ;;  %v5831_v47 = vpop.f32.mrb[56].mxu1 }
0x1826   : > { %6370 = vrot.lane.b32.xlu1 %v6369_v8, %s7203_s28  ;;  %v4269_v11 = vpop.f32.mrb[57].mxu1 }
0x1827   : > { %6380 = vrot.lane.b32.xlu0 %v6379_v51, %s7203_s28  ;;  %v5832_v62 = vpop.f32.mrb[58].mxu1  ;;  %s9014_s28 = sld [smem:[#allocation60_spill]] }
0x1828   : > { %v6374_v21 = vpack.i.bf16 %v5832_v62, %v5831_v47  ;;  %v4272_v24 = vpop.f32.mrb[59].mxu1 }
0x1829   : > { %v6384_v48 = vpack.i.bf16 %v4272_v24, %v4269_v11 }
0x182a   : > { %6375 = vrot.lane.b32.xlu1 %v6374_v21, %s7204_s13 }
0x182b   : > { %6385 = vrot.lane.b32.xlu0 %v6384_v48, %s7204_s13 }
0x182d   : > { %v5839_v15 = vpop.f32.mrb[64].mxu0  ;;  %s8850_s13 = scalar_lea.hbm %s9014_s28, %s5413_s21 }
0x182e   : > { %v4330_v45 = vpop.f32.mrb[65].mxu0 }
0x182f   : > { %v5840_v59 = vpop.f32.mrb[66].mxu0 }
0x1830   : > { %v6394_v13 = vpack.i.bf16 %v5840_v59, %v5839_v15  ;;  %v4333_v63 = vpop.f32.mrb[67].mxu0 }
0x1831   : > { %v6389_v10 = vpack.i.bf16 %v4333_v63, %v4330_v45 }
0x1832   : > { %6395 = vrot.lane.b32.xlu1 %v6394_v13, %s7205_s15 }
0x1833   : > { %6390 = vrot.lane.b32.xlu0 %v6389_v10, %s7205_s15  ;;  %s5017_s15 = scalar_lea.sflag [#allocation5], %s964_s7 }
0x1898   : > { %v6371_v27 = vpop.permute.xlu1 %6370 }
0x1899   : > { %v6381_v53 = vpop.permute.xlu0 %6380  ;;  %v6373_v3 = vunpack.i.h.bf16 %v6371_v27  ;;  %v6372_v5 = vunpack.i.l.bf16 %v6371_v27 }
0x189a   : > { %v6383_v49 = vunpack.i.h.bf16 %v6381_v53  ;;  %v6382_v39 = vunpack.i.l.bf16 %v6381_v53 }
0x189b   : > { %v4396_v4 = vsel %vm986_vm1, %v5816_v55, %v6373_v3  ;;  %v4395_v46 = vsel %vm986_vm1, %v5815_v22, %v6372_v5 }
0x189c   : > { %v6376_v35 = vpop.permute.xlu1 %6375  ;;  %v4394_v43 = vsel %vm986_vm1, %v4150_v57, %v6383_v49  ;;  %v4393_v2 = vsel %vm986_vm1, %v4147_v30, %v6382_v39  ;;  %v6422_v49 = vld [vmem:[%s8909_s16 + $0x18] sm:$0xff]   ;;  %v6423_v39 = vld [vmem:[%s8911_s18 + $0x40] sm:$0xff]  }
0x189d   : > { %v6386_v7 = vpop.permute.xlu0 %6385  ;;  %v6378_v54 = vunpack.i.h.bf16 %v6376_v35  ;;  %v6377_v25 = vunpack.i.l.bf16 %v6376_v35  ;;  %5857 = vmatprep.subr.bf16.mxu1 %v6423_v39 }
0x189e   : > { %v6388_v16 = vunpack.i.h.bf16 %v6386_v7  ;;  %v6387_v9 = vunpack.i.l.bf16 %v6386_v7  ;;  %v6421_v7 = vld [vmem:[%s8909_s16 + $0x10] sm:$0xff]  }
0x189f   : > { %v4400_v29 = vsel %vm1992_vm3, %v4396_v4, %v6378_v54  ;;  %v4399_v17 = vsel %vm1992_vm3, %v4395_v46, %v6377_v25  ;;  %5849 = vmatprep.subr.bf16.mxu0 %v6421_v7  ;;  %v6424_v54 = vld [vmem:[%s8911_s18 + $0x48] sm:$0xff]   ;;  %v6425_v25 = vld [vmem:[%s8911_s18 + $0x50] sm:$0xff]  }
0x18a0   : > { %v4397_v0 = vsel %vm1992_vm3, %v4393_v2, %v6387_v9  ;;  %v4398_v56 = vsel %vm1992_vm3, %v4394_v43, %v6388_v16  ;;  %5850 = vmatpush3.bf16.msra.mxu0 %v6421_v7  ;;  %v6426_v16 = vld [vmem:[%s8911_s18 + $0x58] sm:$0xff]   ;;  %v6427_v9 = vld [vmem:[%s8911_s18 + $0x60] sm:$0xff]   ;;  %v6428_v4 = vld [vmem:[%s8911_s18 + $0x68] sm:$0xff]  }
0x18a1   : > { %5851 = vmatprep.subr.bf16.mxu0 %v6422_v49 }
0x18a4   : > { %v6396_v42 = vpop.permute.xlu1 %6395  ;;  %5852 = vmatpush3.bf16.msra.mxu0 %v6422_v49 }
0x18a5   : > { %v6398_v60 = vunpack.i.h.bf16 %v6396_v42  ;;  %v6397_v6 = vunpack.i.l.bf16 %v6396_v42  ;;  %v6391_v58 = vpop.permute.xlu0 %6390 }
0x18a6   : > { %v6393_v14 = vunpack.i.h.bf16 %v6391_v58  ;;  %v6392_v38 = vunpack.i.l.bf16 %v6391_v58 }
0x18a7   : > { %v4403_v18 = vsel %vm1997_vm4, %v4399_v17, %v6397_v6  ;;  %v4404_v61 = vsel %vm1997_vm4, %v4400_v29, %v6398_v60 }
0x18a8   : > { %v4406_v19 = vpack.c.bf16 %v4404_v61, %v4403_v18  ;;  %v4401_v52 = vsel %vm1997_vm4, %v4397_v0, %v6392_v38  ;;  %v4402_v26 = vsel %vm1997_vm4, %v4398_v56, %v6393_v14  ;;  %v5372_v18 = vld [vmem:[#allocation17 + $0x1] ss:$0 sm:$0xff] }
0x18a9   : > { %v4405_v50 = vpack.c.bf16 %v4402_v26, %v4401_v52 }
0x18ab   : > { %5845 = vmatprep.mubr.msk.bf16.mxu1 %vm1088_vm2, %v4405_v50 }
0x18ac   : > { %5846 = vmatmul.mubr.msk.bf16.vlgmr.msra.gmra.mrb[60].mxu1 %vm1088_vm2, %v4406_v19 }
0x18ad   : > { %5858 = vmatpush3.bf16.msra.mxu1 %v6423_v39 }
0x18ae   : > { %5859 = vmatprep.subr.bf16.mxu1 %v6424_v54 }
0x18b1   : > { %5860 = vmatpush3.bf16.msra.mxu1 %v6424_v54 }
0x18b2   : > { %5861 = vmatprep.subr.bf16.mxu1 %v6425_v25 }
0x18b5   : > { %5862 = vmatpush3.bf16.msra.mxu1 %v6425_v25 }
0x18b6   : > { %5863 = vmatprep.subr.bf16.mxu1 %v6426_v16 }
0x18b9   : > { %5864 = vmatpush3.bf16.msra.mxu1 %v6426_v16 }
0x18ba   : > { %5865 = vmatprep.subr.bf16.mxu1 %v6427_v9 }
0x18bd   : > { %5866 = vmatpush3.bf16.msra.mxu1 %v6427_v9 }
0x18be   : > { %5867 = vmatprep.subr.bf16.mxu1 %v6428_v4 }
0x18c1   : > { %5868 = vmatpush3.bf16.msra.mxu1 %v6428_v4 }
0x197f   : > { %v5847_v28 = vpop.f32.mrb[60].mxu1 }
0x1980   : > { %v4465_v12 = vpop.f32.mrb[61].mxu1  ;;  %v4474_v23 = vadd.f32 %v5847_v28, %v5367_v37 }
0x1981   : > { %v4466_v22 = vadd.f32 %v5367_v37, %v4465_v12  ;;  %v5848_v30 = vpop.f32.mrb[62].mxu1 }
0x1982   : > { %v4468_v55 = vpop.f32.mrb[63].mxu1  ;;  %v4482_v41 = vadd.f32 %v4474_v23, %v8468_v20  ;;  %v4477_v1 = vadd.f32 %v5848_v30, %v5367_v37 }
0x1983   : > { %v4480_v57 = vadd.f32 %v4466_v22, %v8461_v44  ;;  %v4469_v32 = vadd.f32 %v5367_v37, %v4468_v55  ;;  %v5373_v37 = vld [vmem:[#allocation18 + $0x1] ss:$0 sm:$0xff] }
0x1984   : > { %v4483_v51 = vadd.f32 %v4477_v1, %v8470_v34  ;;  %v4494_v47 = vsel %vm1088_vm2, %v4482_v41, 0.0 }
0x1985   : > { %v4481_v31 = vadd.f32 %v4469_v32, %v8463_v40  ;;  %v4488_v8 = vsel %vm1088_vm2, %v4480_v57, 0.0 }
0x1986   : > { %4489 = vadd.xlane.f32.xlu0 %v4488_v8  ;;  %v4497_v11 = vsel %vm1088_vm2, %v4483_v51, 0.0 }
0x1987   : > { %v4491_v33 = vsel %vm1088_vm2, %v4481_v31, 0.0 }
0x1988   : > { %4492 = vadd.xlane.f32.xlu1 %v4491_v33  ;;  %v6429_v33 = vld [vmem:[%s8911_s18 + $0x70] sm:$0xff]  }
0x1989   : > { %5869 = vmatprep.subr.bf16.mxu1 %v6429_v33 }
0x198a   : > { %4495 = vadd.xlane.f32.xlu0 %v4494_v47  ;;  %5870 = vmatpush3.bf16.msra.mxu1 %v6429_v33  ;;  %v5378_v47 = vld [vmem:[#allocation20 + $0x1] ss:$0 sm:$0xff] }
0x198e   : > { %4498 = vadd.xlane.f32.xlu0 %v4497_v11 }
0x1a13   : > { %v4490_v44 = vpop.xlane.xlu0 %4489 }
0x1a14   : > { %v4500_v62 = vmul.f32 0.03125, %v4490_v44 }
0x1a15   : > { %v4493_v20 = vpop.xlane.xlu1 %4492 }
0x1a16   : > { %v8781_v21 = vsub.f32 %v4480_v57, %v4500_v62  ;;  %v4501_v40 = vmul.f32 0.03125, %v4493_v20 }
0x1a17   : > { %v4496_v24 = vpop.xlane.xlu0 %4495 }
0x1a18   : > { %v4505_v48 = vsub.f32 %v4481_v31, %v4501_v40  ;;  %v4502_v36 = vmul.f32 0.03125, %v4496_v24  ;;  %v4508_v15 = vmul.f32 %v8781_v21, %v8781_v21 }
0x1a1a   : > { %v8785_v45 = vsub.f32 %v4482_v41, %v4502_v36  ;;  %v4512_v34 = vsel %vm1088_vm2, %v4508_v15, 0.0  ;;  %v4509_v59 = vmul.f32 %v4505_v48, %v4505_v48 }
0x1a1b   : > { %4513 = vadd.xlane.f32.xlu1 %v4512_v34  ;;  %v4499_v13 = vpop.xlane.xlu0 %4498 }
0x1a1c   : > { %v4503_v63 = vmul.f32 0.03125, %v4499_v13  ;;  %v4515_v10 = vsel %vm1088_vm2, %v4509_v59, 0.0  ;;  %v4510_v27 = vmul.f32 %v8785_v45, %v8785_v45 }
0x1a1d   : > { %4516 = vadd.xlane.f32.xlu0 %v4515_v10 }
0x1a1e   : > { %v4507_v53 = vsub.f32 %v4483_v51, %v4503_v63  ;;  %v4518_v35 = vsel %vm1088_vm2, %v4510_v27, 0.0  ;;  %v6430_v51 = vld [vmem:[%s8911_s18 + $0x78] sm:$0xff]   ;;  %v5399_v63 = vld [vmem:[#allocation21 + $0x1] ss:$0 sm:$0xff] }
0x1a1f   : > { %4519 = vadd.xlane.f32.xlu1 %v4518_v35  ;;  %5871 = vmatprep.subr.bf16.mxu1 %v6430_v51 }
0x1a20   : > { %v4511_v3 = vmul.f32 %v4507_v53, %v4507_v53  ;;  %5872 = vmatpush3.bf16.msra.mxu1 %v6430_v51 }
0x1a22   : > { %v4521_v5 = vsel %vm1088_vm2, %v4511_v3, 0.0 }
0x1a23   : > { %4522 = vadd.xlane.f32.xlu0 %v4521_v5 }
0x1aa8   : > { %v4514_v46 = vpop.xlane.xlu1 %4513 }
0x1aa9   : > { %v4524_v42 = vmul.f32 0.03125, %v4514_v46 }
0x1aaa   : > { %v4517_v43 = vpop.xlane.xlu0 %4516 }
0x1aab   : > { %v4528_v2 = vadd.f32 1e-05, %v4524_v42  ;;  %v4525_v60 = vmul.f32 0.03125, %v4517_v43 }
0x1aac   : > { %v4520_v6 = vpop.xlane.xlu1 %4519 }
0x1aad   : > { %6639 = vrsqrt.f32 %v4528_v2  ;;  %v4529_v58 = vadd.f32 1e-05, %v4525_v60  ;;  %v4526_v29 = vmul.f32 0.03125, %v4520_v6 }
0x1aaf   : > { %6641 = vrsqrt.f32 %v4529_v58  ;;  %v4530_v17 = vadd.f32 1e-05, %v4526_v29 }
0x1ab0   : > { %v4523_v14 = vpop.xlane.xlu0 %4522 }
0x1ab1   : > { %6643 = vrsqrt.f32 %v4530_v17  ;;  %v4527_v38 = vmul.f32 0.03125, %v4523_v14 }
0x1ab3   : > { %v4531_v0 = vadd.f32 1e-05, %v4527_v38 }
0x1ab5   : > { %6645 = vrsqrt.f32 %v4531_v0 }
0x1ab7   : > { %v6640_v56 = vpop.eup %6639 }
0x1ab8   : > { %v4536_v61 = vmul.f32 %v6640_v56, %v8781_v21 }
0x1ab9   : > { %v6642_v19 = vpop.eup %6641 }
0x1aba   : > { %v4537_v52 = vmul.f32 %v6642_v19, %v4505_v48  ;;  %v4546_v26 = vmul.f32 %v5372_v18, %v4536_v61 }
0x1abb   : > { %v6644_v50 = vpop.eup %6643 }
0x1abc   : > { %v4538_v28 = vmul.f32 %v6644_v50, %v8785_v45  ;;  %v4547_v12 = vmul.f32 %v5372_v18, %v4537_v52  ;;  %v4556_v23 = vadd.f32 %v5373_v37, %v4546_v26 }
0x1abe   : > { %v4557_v22 = vadd.f32 %v5373_v37, %v4547_v12  ;;  %v4548_v55 = vmul.f32 %v5372_v18, %v4538_v28 }
0x1abf   : > { %v6646_v30 = vpop.eup %6645 }
0x1ac0   : > { %v4539_v57 = vmul.f32 %v6646_v30, %v4507_v53  ;;  %v4560_v32 = vpack.c.bf16 %v4557_v22, %v4556_v23  ;;  %v4558_v1 = vadd.f32 %v5373_v37, %v4548_v55 }
0x1ac2   : > { %v4549_v41 = vmul.f32 %v5372_v18, %v4539_v57  ;;  %5853 = vmatprep.mubr.msk.bf16.mxu0 %vm1088_vm2, %v4560_v32 }
0x1ac4   : > { %v4559_v31 = vadd.f32 %v5373_v37, %v4549_v41 }
0x1ac6   : > { %v4561_v8 = vpack.c.bf16 %v4559_v31, %v4558_v1 }
0x1ac8   : > { %5854 = vmatmul.mubr.msk.bf16.vlgmr.msra.gmra.mrb[68].mxu0 %vm1088_vm2, %v4561_v8 }
0x1b9b   : > { %v5855_v11 = vpop.f32.mrb[68].mxu0 }
0x1b9c   : > { %v4636_v44 = vadd.f32 %v5855_v11, %v5378_v47  ;;  %v4627_v62 = vpop.f32.mrb[69].mxu0 }
0x1b9d   : > { %v4628_v20 = vadd.f32 %v5378_v47, %v4627_v62  ;;  %v5856_v21 = vpop.f32.mrb[70].mxu0  ;;  %v5408_v62 = vld [vmem:[#allocation23 + $0x1] ss:$0 sm:$0xff] }
0x1b9e   : > { %v4639_v40 = vadd.f32 %v5856_v21, %v5378_v47  ;;  %v4630_v24 = vpop.f32.mrb[71].mxu0  ;;  %v4644_v36 = vmax.f32 %v4636_v44, 0.0 }
0x1b9f   : > { %v4631_v48 = vadd.f32 %v5378_v47, %v4630_v24  ;;  %v4642_v45 = vmax.f32 %v4628_v20, 0.0 }
0x1ba0   : > { %v4645_v15 = vmax.f32 %v4639_v40, 0.0 }
0x1ba1   : > { %v4643_v34 = vmax.f32 %v4631_v48, 0.0 }
0x1ba2   : > { %v4647_v59 = vpack.c.bf16 %v4645_v15, %v4644_v36  ;;  %v5409_v36 = vld [vmem:[#allocation24 + $0x1] ss:$0 sm:$0xff] }
0x1ba3   : > { %v4646_v13 = vpack.c.bf16 %v4643_v34, %v4642_v45 }
0x1ba5   : > { %5873 = vmatprep.mubr.bf16.mxu1 %v4646_v13 }
0x1ba6   : > { %5874 = vmatmul.mubr.bf16.vlgmr.msra.gmra.mrb[64].mxu1 %v4647_v59 }
0x1c79   : > { %v5875_v10 = vpop.f32.mrb[64].mxu1 }
0x1c7a   : > { %v4755_v27 = vpop.f32.mrb[65].mxu1  ;;  %v4764_v53 = vadd.f32 %v5875_v10, %v5399_v63 }
0x1c7b   : > { %v4756_v35 = vadd.f32 %v5399_v63, %v4755_v27  ;;  %v5876_v3 = vpop.f32.mrb[66].mxu1 }
0x1c7c   : > { %v4758_v5 = vpop.f32.mrb[67].mxu1  ;;  %v4767_v49 = vadd.f32 %v5876_v3, %v5399_v63  ;;  %v4772_v54 = vadd.f32 %v4764_v53, %v4558_v1 }
0x1c7d   : > { %v4770_v7 = vadd.f32 %v4756_v35, %v4556_v23  ;;  %v4759_v39 = vadd.f32 %v5399_v63, %v4758_v5  ;;  %v7206_v23 = vmov 0.0|0.0  }
0x1c7e   : > { %v4773_v9 = vadd.f32 %v4767_v49, %v4559_v31  ;;  %v4784_v46 = vsel %vm1088_vm2, %v4772_v54, 0.0  ;;  %5893 = vmatprep.subr.bf16.mxu0 %v7206_v23 }
0x1c7f   : > { %v4771_v25 = vadd.f32 %v4759_v39, %v4557_v22  ;;  %v4778_v16 = vsel %vm1088_vm2, %v4770_v7, 0.0  ;;  %v7208_v22 = vmov 0.0  }
0x1c80   : > { %4779 = vadd.xlane.f32.xlu1 %v4778_v16  ;;  %v4787_v42 = vsel %vm1088_vm2, %v4773_v9, 0.0  ;;  %5885 = vmatprep.mubr.msk.f32.mxu0 %vm7207_vm5, %v7208_v22 }
0x1c81   : > { %v4781_v4 = vsel %vm1088_vm2, %v4771_v25, 0.0 }
0x1c82   : > { %4782 = vadd.xlane.f32.xlu0 %v4781_v4 }
0x1c84   : > { %4785 = vadd.xlane.f32.xlu1 %v4784_v46 }
0x1c86   : > { %4788 = vadd.xlane.f32.xlu0 %v4787_v42 }
0x1d0d   : > { %v4780_v43 = vpop.xlane.xlu1 %4779 }
0x1d0e   : > { %v4790_v2 = vmul.f32 0.03125, %v4780_v43 }
0x1d0f   : > { %v4783_v60 = vpop.xlane.xlu0 %4782 }
0x1d10   : > { %v4794_v6 = vsub.f32 %v4770_v7, %v4790_v2  ;;  %v4791_v58 = vmul.f32 0.03125, %v4783_v60  ;;  %v4850_v7 = vld [vmem:[%s9011_s6] sm:$0xf] }
0x1d11   : > { %v4786_v29 = vpop.xlane.xlu1 %4785 }
0x1d12   : > { %v4795_v17 = vsub.f32 %v4771_v25, %v4791_v58  ;;  %v4792_v14 = vmul.f32 0.03125, %v4786_v29  ;;  %v4798_v38 = vmul.f32 %v4794_v6, %v4794_v6  ;;  %v4926_v25 = vstv %s4925_s30 }
0x1d13   : > { %v4789_v0 = vpop.xlane.xlu0 %4788 }
0x1d14   : > { %v4796_v56 = vsub.f32 %v4772_v54, %v4792_v14  ;;  %v4793_v18 = vmul.f32 0.03125, %v4789_v0  ;;  %v4802_v61 = vsel %vm1088_vm2, %v4798_v38, 0.0  ;;  %v4799_v19 = vmul.f32 %v4795_v17, %v4795_v17  ;;  %v4924_v54 = vld [vmem:[#allocation26] sm:$0x1] }
0x1d15   : > { %4803 = vadd.xlane.f32.xlu1 %v4802_v61 }
0x1d16   : > { %v4797_v52 = vsub.f32 %v4773_v9, %v4793_v18  ;;  %v4805_v26 = vsel %vm1088_vm2, %v4799_v19, 0.0  ;;  %v4800_v50 = vmul.f32 %v4796_v56, %v4796_v56 }
0x1d17   : > { %4806 = vadd.xlane.f32.xlu0 %v4805_v26 }
0x1d18   : > { %v4808_v37 = vsel %vm1088_vm2, %v4800_v50, 0.0  ;;  %v4801_v28 = vmul.f32 %v4797_v52, %v4797_v52 }
0x1d19   : > { %4809 = vadd.xlane.f32.xlu1 %v4808_v37 }
0x1d1a   : > { %v4811_v12 = vsel %vm1088_vm2, %v4801_v28, 0.0 }
0x1d1b   : > { %4812 = vadd.xlane.f32.xlu0 %v4811_v12 }
0x1da2   : > { %v4804_v30 = vpop.xlane.xlu1 %4803 }
0x1da3   : > { %v4814_v55 = vmul.f32 0.03125, %v4804_v30 }
0x1da4   : > { %v4807_v57 = vpop.xlane.xlu0 %4806 }
0x1da5   : > { %v4818_v32 = vadd.f32 1e-05, %v4814_v55  ;;  %v4815_v41 = vmul.f32 0.03125, %v4807_v57 }
0x1da6   : > { %v4810_v1 = vpop.xlane.xlu1 %4809 }
0x1da7   : > { %6647 = vrsqrt.f32 %v4818_v32  ;;  %v4819_v31 = vadd.f32 1e-05, %v4815_v41  ;;  %v4816_v8 = vmul.f32 0.03125, %v4810_v1 }
0x1da8   : > { %v4813_v33 = vpop.xlane.xlu0 %4812 }
0x1da9   : > { %6649 = vrsqrt.f32 %v4819_v31  ;;  %v4820_v51 = vadd.f32 1e-05, %v4816_v8  ;;  %v4817_v47 = vmul.f32 0.03125, %v4813_v33 }
0x1dab   : > { %6651 = vrsqrt.f32 %v4820_v51  ;;  %v4821_v11 = vadd.f32 1e-05, %v4817_v47 }
0x1dad   : > { %6653 = vrsqrt.f32 %v4821_v11 }
0x1db1   : > { %v6648_v44 = vpop.eup %6647 }
0x1db2   : > { %v4826_v20 = vmul.f32 %v6648_v44, %v4794_v6 }
0x1db3   : > { %v6650_v21 = vpop.eup %6649 }
0x1db4   : > { %v4827_v40 = vmul.f32 %v6650_v21, %v4795_v17  ;;  %v4836_v24 = vmul.f32 %v5408_v62, %v4826_v20 }
0x1db5   : > { %v6652_v48 = vpop.eup %6651 }
0x1db6   : > { %v4828_v15 = vmul.f32 %v6652_v48, %v4796_v56  ;;  %v4837_v45 = vmul.f32 %v5408_v62, %v4827_v40  ;;  %v4846_v13 = vadd.f32 %v5409_v36, %v4836_v24 }
0x1db7   : > { %v6654_v34 = vpop.eup %6653 }
0x1db8   : > { %v4829_v59 = vmul.f32 %v6654_v34, %v4797_v52  ;;  %v4847_v63 = vadd.f32 %v5409_v36, %v4837_v45  ;;  %v4838_v10 = vmul.f32 %v5408_v62, %v4828_v15 }
0x1dba   : > { %v5894_v27 = vpack.c.bf16 %v4847_v63, %v4846_v13  ;;  %v4839_v53 = vmul.f32 %v5408_v62, %v4829_v59  ;;  %v4848_v35 = vadd.f32 %v5409_v36, %v4838_v10 }
0x1dbc   : > { %5895 = vmatpush3.bf16.msra.mxu0 %v5894_v27  ;;  %v4849_v3 = vadd.f32 %v5409_v36, %v4839_v53 }
0x1dbd   : > { %5896 = vmatprep.subr.bf16.mxu0 %v7206_v23 }
0x1dbe   : > { %v5897_v5 = vpack.c.bf16 %v4849_v3, %v4848_v35 }
0x1dc0   : > { %5898 = vmatpush3.bf16.msra.mxu0 %v5897_v5 }
0x1dc1   : > { %5888 = vmatprep.subr.mxu0 %v7208_v22 }
0x1dc3   : > { %5886 = vmatmul.mubr.msk.f32.vlgmr.msra.gmra.mrb[72].mxu0 %vm1088_vm2, %v4850_v7 }
0x1dc4   : > { %5890 = vmatprep.mubr.msk.f32.mxu0 %vm7207_vm5, %v7208_v22 }
0x1e96   : > { %v4920_v49 = vpop.f32.mrb[72].mxu0 }
0x1e97   : > { %v5887_v39 = vpop.f32.mrb[73].mxu0  ;;  %5889 = vmatpush3.xpose.msk.msra.mxu0 %vm1088_vm2, %v4920_v49 }
0x1e9a   : > { %5891 = vmatmul.mubr.msk.f32.vlgmr.msra.gmra.mrb[74].mxu0 %vm1088_vm2, %v4924_v54 }
0x1f6d   : > { %v4999_v16 = vpop.f32.mrb[74].mxu0 }
0x1f6e   : > { %v5000_v9 = vadd.f32 %v4999_v16, %v4926_v25  ;;  %v5892_v4 = vpop.f32.mrb[75].mxu0 }
0x1f70   : > { %v5004_v46 = vsel %vm5003_vm6, %v5000_v9, -inf }
0x1f71   : > { %5005 = vmax.xlane.f32.xlu1 %v5004_v46 }
0x1ffe   : > { %v5006_v42 = vpop.xlane.xlu1 %5005 }
0x1fff   : > { %v5007_v43 = vsub.f32 %v5000_v9, %v5006_v42 }
0x2001   : > { %v5008_v2 = vmul.f32 1.442695, %v5007_v43 }
0x2003   : > { %6655 = vpow2.f32 %v5008_v2 }
0x200d   : > { %v6656_v60 = vpop.eup %6655 }
0x200e   : > { %v5010_v6 = vsel %vm5003_vm6, %v6656_v60, 0.0 }
0x200f   : > { %5011 = vadd.xlane.f32.xlu0 %v5010_v6 }
0x209c   : > { %v5012_v58 = vpop.xlane.xlu0 %5011 }
0x209d   : > { %6657 = vrcp.f32 %v5012_v58 }
0x20a7   : > { %v6658_v29 = vpop.eup %6657 }
0x20a8   : > { %v5014_v17 = vmul.f32 %v6658_v29, %v6656_v60 }
0x20aa   : > { %5015 = vst.msk [vmem:[%s965_s5] sm:$0x1] %vm5003_vm6, %v5014_v17 }
0x20ab   : > { %7096 = shalt.err (!%p7093_p7)
}
0x20ac   : > { %s7097_s6 = scalar_lea.hbm %s8850_s13, 16  ;;  %s7101_s7 = scalar_lea.hbm %s9014_s28, 32 }
0x20ad   : > { %p7098_p8 = scmp.ne.s32.totalorder %s8850_s13, %s7097_s6  ;;  %p7102_p1 = scmp.lt.u32.totalorder %s8850_s13, %s9014_s28 }
0x20ae   : > { %p7103_p0 = scmp.lt.u32.totalorder %s7101_s7, %s7097_s6  ;;  %p7105_p5 = scmp.lt.u32.totalorder %s7097_s6, %s8850_s13 }
0x20af   : > { %p7099_p11 = pnand %p7098_p8, %p9015_p9 }
0x20b0   : > { %p7104_p6 = por %p7103_p0, %p7102_p1 }
0x20b1   : > { %p7100_p13 = pneg %p7099_p11 }
0x20b2   : > { %p7106_p12 = por %p7105_p5, %p7104_p6 }
0x20b4   : > { %p7107_p10 = pnand %p7106_p12, %p7100_p13 }
0x20b6   : > { %7110 = shalt.err (!%p7107_p10)
}
0x20b7   : > { %5984 = dma.vmem_to_hbm [thread:$0]  (%p9015_p9), %s8852_s19, 16, %s8850_s13, %s5017_s15  }
0x20b8 PF: > { %s9016_s9 = sld [smem:[#allocation40_spill]]  ;;  %s9017_s3 = sld [smem:[#allocation37_spill]] }
0x20b9   : > { %s9018_s0 = sld [smem:[#allocation44_spill]] }
0x20be   : > { %p6066_p2 = scmp.ge.s32.totalorder %s9016_s9, 2  ;;  %s5041_s24 = sand.u32 1, %s9017_s3  }
0x20bf   : > { %p9019_p3 = scmp.ne.s32.totalorder %s9018_s0, 0  ;;  %s5042_s1 = scalar_lea.sflag [#allocation5], %s5041_s24 }
0x20c1   : > { %p6033_p4 = pnand %p6066_p2, %p9019_p3 }
0x20c3   : > { %7160 = dma.done.wait (!%p6033_p4), %s5042_s1, 16  }
0x20c4   : > { %7162 = vsyncadd (!%p6033_p4), %s5042_s1, 4294967280  ;;  %s9020_s3 = sld [smem:[#allocation41_spill]]  ;;  %s9021_s6 = sld [smem:[#allocation38_spill]] }
0x20c5   : > { %s9022_s30 = sld [smem:[#allocation39_spill]]  ;;  %s9023_s7 = sld [smem:[#allocation42_spill]] }
0x20ca   : > { %p44_p7 = scmp.ge.s32.totalorder %s9020_s3, 4  }
0x20cc   :  { %46 = sbr.rel (!%p44_p7) target bundleno = 29 (0x1d), region = 228 }
0x20d3   :  { %5046 = vsyncpa [#allocation4], 1 }
0x20d4   :  { %5048 = vsyncpa [#allocation4 + $0x1], 1 }
0x20d5   :  { %5049 = vsyncpa [#allocation7], 1 }
0x20d6   :  { %5050 = vsyncpa [#allocation10], 1 }
0x20d7   :  { %5051 = vsyncpa [#allocation13], 1 }
0x20d8   :  { %5052 = vsyncpa [#allocation16], 1 }
0x20d9   :  { %5053 = vsyncpa [#allocation19], 1 }
0x20da   :  { %5054 = vsyncpa [#allocation22], 1 }
0x20db   :  { %5055 = vsyncpa [#allocation25], 1 }
0x20dc   :  { %5056 = vsyncpa [#allocation5], 1 }
0x20dd   :  { %5058 = vsyncpa [#allocation5 + $0x1], 1 }

</bundles_post_ra>
